<compile_context>
chip_gen: v7x
topology: tpu7x:2x2x1
jax: 0.10.0
libtpu: 0.0.40
codegen_flags: <defaults>
</compile_context>

<pallas_src>
import functools

import jax
import jax.numpy as jnp
from jax.experimental import pallas as pl
from jax.experimental.pallas import tpu as pltpu


# --------------------------------------------------------------------------
# Fused kernel: per grid step processes one image entirely in VMEM.
# --------------------------------------------------------------------------
def _fused_block_kernel(x_ref, w1_ref, w2_ref, g1_ref, b1_ref, g2_ref, b2_ref,
                        p_ref, o_ref, xp_ref, *, H, W, C, eps, matmul_dtype):
    HW = H * W

    def conv3x3(w_ref):
        # im2col from the padded VMEM scratch: gather the 9 taps into one
        # (H*W, 9*C) operand and do a single MXU matmul with K = 9*C.
        cols = []
        for dy in range(3):
            for dx in range(3):
                cols.append(xp_ref[dy:dy + H, dx:dx + W, :].reshape(HW, C))
        col = jnp.concatenate(cols, axis=-1).astype(matmul_dtype)     # (HW, 9C)
        return jnp.dot(col, w_ref[...], preferred_element_type=jnp.float32)

    def groupnorm(h, g_ref, b_ref):
        # p_ref: (C, C) block-diagonal group-membership matrix pre-divided by
        # (H*W*C/groups) -> one matmul turns per-channel sums into per-channel
        # group means (built once on the host, resident in VMEM).
        p = p_ref[...]
        mean_c = jnp.dot(jnp.sum(h, axis=0, keepdims=True), p,
                         preferred_element_type=jnp.float32)          # (1, C)
        d = h - mean_c                                                # two-pass variance
        var_c = jnp.dot(jnp.sum(d * d, axis=0, keepdims=True), p,
                        preferred_element_type=jnp.float32)           # (1, C)
        inv_c = jax.lax.rsqrt(var_c + eps)
        return d * (inv_c * g_ref[...]) + b_ref[...]                   # (HW, C)

    # Build the padded input inside VMEM (zero halo); no HBM-side padded copy.
    xp_ref[...] = jnp.zeros((H + 2, W + 2, C), jnp.float32)
    xp_ref[1:H + 1, 1:W + 1, :] = x_ref[0]

    h1 = conv3x3(w1_ref)                                              # conv1
    a1 = jnp.maximum(groupnorm(h1, g1_ref, b1_ref), 0.0)              # GN1 + ReLU

    # Reuse the padded scratch for conv2 (halo is still zero).
    xp_ref[1:H + 1, 1:W + 1, :] = a1.reshape(H, W, C)
    h2 = conv3x3(w2_ref)                                              # conv2
    y = groupnorm(h2, g2_ref, b2_ref) + x_ref[0].reshape(HW, C)       # GN2 + residual
    o_ref[0] = jnp.maximum(y, 0.0).reshape(H, W, C)                   # ReLU


# --------------------------------------------------------------------------
# BasicBlockGN forward (stride=1, no downsample, residual=True).
# --------------------------------------------------------------------------
def basic_block_gn(x_nchw, w1_pt, w2_pt, gamma1, beta1, gamma2, beta2,
                   n_gn=8, eps=1e-5, matmul_dtype=jnp.float32):
    """x_nchw: (N, C, H, W). Conv weights in PyTorch OIHW layout (Cout, Cin, 3, 3)."""
    N, C, H, W = x_nchw.shape
    cout1, cin1 = w1_pt.shape[0], w1_pt.shape[1]
    cout2, cin2 = w2_pt.shape[0], w2_pt.shape[1]
    # Default config: stride=1, downsample=None, residual=True -> residual is the raw
    # input, which requires inplanes == planes.  Guard against silent misuse.
    assert cin1 == C and cout1 == C and cin2 == C and cout2 == C, (
        "residual path without downsample requires inplanes == planes")
    assert C % n_gn == 0

    # TODO(synk): if the surrounding model can stay NHWC, drop these two transposes.
    x = jnp.transpose(x_nchw, (0, 2, 3, 1)).astype(jnp.float32)       # NHWC

    # OIHW -> (KH, KW, Cin, Cout) -> (9*Cin, Cout): row ordering (dy, dx, ci) matches
    # the im2col lane ordering inside the kernel.
    w1 = jnp.transpose(w1_pt, (2, 3, 1, 0)).reshape(9 * C, C).astype(matmul_dtype)
    w2 = jnp.transpose(w2_pt, (2, 3, 1, 0)).reshape(9 * C, C).astype(matmul_dtype)

    # Group-mean projector (built once, constant across the grid).
    cg = C // n_gn
    gid = jnp.arange(C, dtype=jnp.int32) // cg
    proj = (gid[:, None] == gid[None, :]).astype(jnp.float32) / float(H * W * cg)

    g1 = gamma1.reshape(1, C).astype(jnp.float32)
    b1 = beta1.reshape(1, C).astype(jnp.float32)
    g2 = gamma2.reshape(1, C).astype(jnp.float32)
    b2 = beta2.reshape(1, C).astype(jnp.float32)

    kernel = functools.partial(_fused_block_kernel, H=H, W=W, C=C, eps=eps,
                               matmul_dtype=matmul_dtype)

    def const2d(n):
        return (0, 0)

    out_nhwc = pl.pallas_call(
        kernel,
        out_shape=jax.ShapeDtypeStruct((N, H, W, C), jnp.float32),
        grid=(N,),
        in_specs=[
            pl.BlockSpec((1, H, W, C), lambda n: (n, 0, 0, 0)),        # x
            pl.BlockSpec((9 * C, C), const2d),                         # w1 (resident)
            pl.BlockSpec((9 * C, C), const2d),                         # w2 (resident)
            pl.BlockSpec((1, C), const2d),                             # gamma1
            pl.BlockSpec((1, C), const2d),                             # beta1
            pl.BlockSpec((1, C), const2d),                             # gamma2
            pl.BlockSpec((1, C), const2d),                             # beta2
            pl.BlockSpec((C, C), const2d),                             # group projector
        ],
        out_specs=pl.BlockSpec((1, H, W, C), lambda n: (n, 0, 0, 0)),
        scratch_shapes=[pltpu.VMEM((H + 2, W + 2, C), jnp.float32)],   # padded buffer
        compiler_params=pltpu.CompilerParams(
            dimension_semantics=("parallel",),
            vmem_limit_bytes=32 * 1024 * 1024),
    )(x, w1, w2, g1, b1, g2, b2, proj)

    return jnp.transpose(out_nhwc, (0, 3, 1, 2))                       # back to NCHW


# --------------------------------------------------------------------------
# Pure-JAX reference (numerical sanity check).
# --------------------------------------------------------------------------
def _ref_forward(x_nchw, w1, w2, g1, b1, g2, b2, n_gn=8, eps=1e-5):
    def conv(x, w):
        return jax.lax.conv_general_dilated(
            x, w, (1, 1), "SAME",
            dimension_numbers=("NCHW", "OIHW", "NCHW"),
            precision=jax.lax.Precision.HIGHEST)

    def gn(x, gamma, beta):
        N, C, H, W = x.shape
        xg = x.reshape(N, n_gn, C // n_gn, H, W)
        mean = xg.mean(axis=(2, 3, 4), keepdims=True)
        var = xg.var(axis=(2, 3, 4), keepdims=True)
        xn = ((xg - mean) / jnp.sqrt(var + eps)).reshape(N, C, H, W)
        return xn * gamma.reshape(1, C, 1, 1) + beta.reshape(1, C, 1, 1)

    out = jax.nn.relu(gn(conv(x_nchw, w1), g1, b1))
    out = gn(conv(out, w2), g2, b2)
    return jax.nn.relu(out + x_nchw)


if __name__ == "__main__":
    # Small config consistent with the module: inplanes = planes = 16, n_gn = 8,
    # batch = 2, spatial 16x16.
    N, C, H, W = 2, 16, 16, 16
    n_gn = 8

    key = jax.random.PRNGKey(0)
    kx, kw1, kw2, kg1, kb1, kg2, kb2 = jax.random.split(key, 7)

    x = jax.random.normal(kx, (N, C, H, W), jnp.float32)
    w1 = 0.1 * jax.random.normal(kw1, (C, C, 3, 3), jnp.float32)   # conv1 (OIHW)
    w2 = 0.1 * jax.random.normal(kw2, (C, C, 3, 3), jnp.float32)   # conv2 (OIHW)
    gamma1 = 1.0 + 0.05 * jax.random.normal(kg1, (C,), jnp.float32)
    beta1 = 0.05 * jax.random.normal(kb1, (C,), jnp.float32)
    gamma2 = 1.0 + 0.05 * jax.random.normal(kg2, (C,), jnp.float32)
    beta2 = 0.05 * jax.random.normal(kb2, (C,), jnp.float32)

    ref = jax.block_until_ready(
        _ref_forward(x, w1, w2, gamma1, beta1, gamma2, beta2, n_gn=n_gn))

    # f32 path (v5e-safe default).
    out = basic_block_gn(x, w1, w2, gamma1, beta1, gamma2, beta2, n_gn=n_gn)
    out = jax.block_until_ready(out)
    assert out.shape == (N, C, H, W), out.shape
    err = float(jnp.max(jnp.abs(out - ref)))
    assert err < 1e-2, f"f32 path max abs error {err}"

    # bf16-storage path (v6e / v7x option): bf16 MXU operands, f32 accumulation & GN.
    out_bf16 = basic_block_gn(x, w1, w2, gamma1, beta1, gamma2, beta2,
                              n_gn=n_gn, matmul_dtype=jnp.bfloat16)
    out_bf16 = jax.block_until_ready(out_bf16)
    err_bf16 = float(jnp.max(jnp.abs(out_bf16 - ref)))
    assert err_bf16 < 1.5e-1, f"bf16 path max abs error {err_bf16}"

    print("KERNEL_OK")
</pallas_src>

<mosaic_0001>
module attributes {stable_mosaic.version = 11 : i64} {
  func.func @_fused_block_kernel(%arg0: i32, %arg1: memref<1x16x16x16xf32, #tpu.memory_space<vmem>>, %arg2: memref<144x16xf32, #tpu.memory_space<vmem>>, %arg3: memref<144x16xf32, #tpu.memory_space<vmem>>, %arg4: memref<1x16xf32, #tpu.memory_space<vmem>>, %arg5: memref<1x16xf32, #tpu.memory_space<vmem>>, %arg6: memref<1x16xf32, #tpu.memory_space<vmem>>, %arg7: memref<1x16xf32, #tpu.memory_space<vmem>>, %arg8: memref<16x16xf32, #tpu.memory_space<vmem>>, %arg9: memref<1x16x16x16xf32, #tpu.memory_space<vmem>>, %arg10: memref<18x18x16xf32, #tpu.memory_space<vmem>>) attributes {dimension_semantics = [#tpu.dimension_semantics<parallel>], iteration_bounds = array<i64: 2>, scalar_prefetch = 0 : i64, scratch_operands = 1 : i64, tpu.core_type = #tpu.core_type<tc>, window_params = [{transform_indices = @transform_0, window_bounds = array<i64: 1, 16, 16, 16>}, {pipeline_mode = #tpu.pipeline_mode<synchronous>, transform_indices = @transform_1, window_bounds = array<i64: 144, 16>}, {pipeline_mode = #tpu.pipeline_mode<synchronous>, transform_indices = @transform_2, window_bounds = array<i64: 144, 16>}, {pipeline_mode = #tpu.pipeline_mode<synchronous>, transform_indices = @transform_3, window_bounds = array<i64: 1, 16>}, {pipeline_mode = #tpu.pipeline_mode<synchronous>, transform_indices = @transform_4, window_bounds = array<i64: 1, 16>}, {pipeline_mode = #tpu.pipeline_mode<synchronous>, transform_indices = @transform_5, window_bounds = array<i64: 1, 16>}, {pipeline_mode = #tpu.pipeline_mode<synchronous>, transform_indices = @transform_6, window_bounds = array<i64: 1, 16>}, {pipeline_mode = #tpu.pipeline_mode<synchronous>, transform_indices = @transform_7, window_bounds = array<i64: 16, 16>}, {transform_indices = @transform_8, window_bounds = array<i64: 1, 16, 16, 16>}]} {
    %cst = arith.constant 0.000000e+00 : f32
    %0 = vector.broadcast %cst : f32 to vector<18x18x16xf32>
    %c0 = arith.constant 0 : index
    %c0_0 = arith.constant 0 : index
    %c0_1 = arith.constant 0 : index
    %1 = vector.load %arg10[%c0, %c0_0, %c0_1] : memref<18x18x16xf32, #tpu.memory_space<vmem>>, vector<18x18x16xf32>
    tpu.vector_store %arg10[%c0, %c0_0, %c0_1], %0 {strides = array<i32>} : memref<18x18x16xf32, #tpu.memory_space<vmem>>, vector<18x18x16xf32>,
    %c0_2 = arith.constant 0 : index
    %c0_3 = arith.constant 0 : index
    %c0_4 = arith.constant 0 : index
    %c0_5 = arith.constant 0 : index
    %2 = vector.load %arg1[%c0_2, %c0_3, %c0_4, %c0_5] : memref<1x16x16x16xf32, #tpu.memory_space<vmem>>, vector<1x16x16x16xf32>
    %3 = vector.shape_cast %2 : vector<1x16x16x16xf32> to vector<16x16x16xf32>
    %c1 = arith.constant 1 : index
    %c1_6 = arith.constant 1 : index
    %c0_7 = arith.constant 0 : index
    %4 = vector.load %arg10[%c1, %c1_6, %c0_7] : memref<18x18x16xf32, #tpu.memory_space<vmem>>, vector<16x16x16xf32>
    tpu.vector_store %arg10[%c1, %c1_6, %c0_7], %3 {strides = array<i32>} : memref<18x18x16xf32, #tpu.memory_space<vmem>>, vector<16x16x16xf32>,
    %c0_8 = arith.constant 0 : index
    %c0_9 = arith.constant 0 : index
    %c0_10 = arith.constant 0 : index
    %5 = vector.load %arg10[%c0_8, %c0_9, %c0_10] : memref<18x18x16xf32, #tpu.memory_space<vmem>>, vector<16x16x16xf32>
    %6 = vector.shape_cast %5 : vector<16x16x16xf32> to vector<256x16xf32>
    %c0_11 = arith.constant 0 : index
    %c1_12 = arith.constant 1 : index
    %c0_13 = arith.constant 0 : index
    %7 = vector.load %arg10[%c0_11, %c1_12, %c0_13] : memref<18x18x16xf32, #tpu.memory_space<vmem>>, vector<16x16x16xf32>
    %8 = vector.shape_cast %7 : vector<16x16x16xf32> to vector<256x16xf32>
    %c0_14 = arith.constant 0 : index
    %c2 = arith.constant 2 : index
    %c0_15 = arith.constant 0 : index
    %9 = vector.load %arg10[%c0_14, %c2, %c0_15] : memref<18x18x16xf32, #tpu.memory_space<vmem>>, vector<16x16x16xf32>
    %10 = vector.shape_cast %9 : vector<16x16x16xf32> to vector<256x16xf32>
    %c1_16 = arith.constant 1 : index
    %c0_17 = arith.constant 0 : index
    %c0_18 = arith.constant 0 : index
    %11 = vector.load %arg10[%c1_16, %c0_17, %c0_18] : memref<18x18x16xf32, #tpu.memory_space<vmem>>, vector<16x16x16xf32>
    %12 = vector.shape_cast %11 : vector<16x16x16xf32> to vector<256x16xf32>
    %c1_19 = arith.constant 1 : index
    %c1_20 = arith.constant 1 : index
    %c0_21 = arith.constant 0 : index
    %13 = vector.load %arg10[%c1_19, %c1_20, %c0_21] : memref<18x18x16xf32, #tpu.memory_space<vmem>>, vector<16x16x16xf32>
    %14 = vector.shape_cast %13 : vector<16x16x16xf32> to vector<256x16xf32>
    %c1_22 = arith.constant 1 : index
    %c2_23 = arith.constant 2 : index
    %c0_24 = arith.constant 0 : index
    %15 = vector.load %arg10[%c1_22, %c2_23, %c0_24] : memref<18x18x16xf32, #tpu.memory_space<vmem>>, vector<16x16x16xf32>
    %16 = vector.shape_cast %15 : vector<16x16x16xf32> to vector<256x16xf32>
    %c2_25 = arith.constant 2 : index
    %c0_26 = arith.constant 0 : index
    %c0_27 = arith.constant 0 : index
    %17 = vector.load %arg10[%c2_25, %c0_26, %c0_27] : memref<18x18x16xf32, #tpu.memory_space<vmem>>, vector<16x16x16xf32>
    %18 = vector.shape_cast %17 : vector<16x16x16xf32> to vector<256x16xf32>
    %c2_28 = arith.constant 2 : index
    %c1_29 = arith.constant 1 : index
    %c0_30 = arith.constant 0 : index
    %19 = vector.load %arg10[%c2_28, %c1_29, %c0_30] : memref<18x18x16xf32, #tpu.memory_space<vmem>>, vector<16x16x16xf32>
    %20 = vector.shape_cast %19 : vector<16x16x16xf32> to vector<256x16xf32>
    %c2_31 = arith.constant 2 : index
    %c2_32 = arith.constant 2 : index
    %c0_33 = arith.constant 0 : index
    %21 = vector.load %arg10[%c2_31, %c2_32, %c0_33] : memref<18x18x16xf32, #tpu.memory_space<vmem>>, vector<16x16x16xf32>
    %22 = vector.shape_cast %21 : vector<16x16x16xf32> to vector<256x16xf32>
    %23 = tpu.concatenate %6, %8, %10, %12, %14, %16, %18, %20, %22 in 1 : vector<256x16xf32>, vector<256x16xf32>, vector<256x16xf32>, vector<256x16xf32>, vector<256x16xf32>, vector<256x16xf32>, vector<256x16xf32>, vector<256x16xf32>, vector<256x16xf32> -> vector<256x144xf32>
    %c0_34 = arith.constant 0 : index
    %c0_35 = arith.constant 0 : index
    %24 = vector.load %arg2[%c0_34, %c0_35] : memref<144x16xf32, #tpu.memory_space<vmem>>, vector<144x16xf32>
    %cst_36 = arith.constant dense<0.000000e+00> : vector<256x16xf32>
    %25 = tpu.matmul %23, %24, %cst_36 {dimension_numbers = #tpu.dot_dimension_numbers<[1], [0], [0], [1], [0, 0, 1, 1], [], []>} : vector<256x144xf32>, vector<144x16xf32>, vector<256x16xf32> -> vector<256x16xf32>
    %c0_37 = arith.constant 0 : index
    %c0_38 = arith.constant 0 : index
    %26 = vector.load %arg8[%c0_37, %c0_38] : memref<16x16xf32, #tpu.memory_space<vmem>>, vector<16x16xf32>
    %cst_39 = arith.constant dense<0.000000e+00> : vector<16xf32>
    %27 = vector.multi_reduction <add>, %25, %cst_39 [0] : vector<256x16xf32> to vector<16xf32>
    %28 = vector.shape_cast %27 : vector<16xf32> to vector<1x16xf32>
    %cst_40 = arith.constant dense<0.000000e+00> : vector<1x16xf32>
    %29 = tpu.matmul %28, %26, %cst_40 {dimension_numbers = #tpu.dot_dimension_numbers<[1], [0], [0], [1], [0, 0, 1, 1], [], []>} : vector<1x16xf32>, vector<16x16xf32>, vector<1x16xf32> -> vector<1x16xf32>
    %30 = vector.broadcast %29 : vector<1x16xf32> to vector<256x16xf32>
    %31 = arith.subf %25, %30 : vector<256x16xf32>
    %32 = arith.mulf %31, %31 : vector<256x16xf32>
    %cst_41 = arith.constant dense<0.000000e+00> : vector<16xf32>
    %33 = vector.multi_reduction <add>, %32, %cst_41 [0] : vector<256x16xf32> to vector<16xf32>
    %34 = vector.shape_cast %33 : vector<16xf32> to vector<1x16xf32>
    %cst_42 = arith.constant dense<0.000000e+00> : vector<1x16xf32>
    %35 = tpu.matmul %34, %26, %cst_42 {dimension_numbers = #tpu.dot_dimension_numbers<[1], [0], [0], [1], [0, 0, 1, 1], [], []>} : vector<1x16xf32>, vector<16x16xf32>, vector<1x16xf32> -> vector<1x16xf32>
    %cst_43 = arith.constant 9.99999974E-6 : f32
    %36 = vector.broadcast %cst_43 : f32 to vector<1x16xf32>
    %37 = arith.addf %35, %36 : vector<1x16xf32>
    %38 = math.rsqrt %37 : vector<1x16xf32>
    %c0_44 = arith.constant 0 : index
    %c0_45 = arith.constant 0 : index
    %39 = vector.load %arg4[%c0_44, %c0_45] : memref<1x16xf32, #tpu.memory_space<vmem>>, vector<1x16xf32>
    %40 = arith.mulf %38, %39 : vector<1x16xf32>
    %41 = vector.broadcast %40 : vector<1x16xf32> to vector<256x16xf32>
    %42 = arith.mulf %31, %41 : vector<256x16xf32>
    %c0_46 = arith.constant 0 : index
    %c0_47 = arith.constant 0 : index
    %43 = vector.load %arg5[%c0_46, %c0_47] : memref<1x16xf32, #tpu.memory_space<vmem>>, vector<1x16xf32>
    %44 = vector.broadcast %43 : vector<1x16xf32> to vector<256x16xf32>
    %45 = arith.addf %42, %44 : vector<256x16xf32>
    %cst_48 = arith.constant 0.000000e+00 : f32
    %46 = vector.broadcast %cst_48 : f32 to vector<256x16xf32>
    %47 = arith.maximumf %45, %46 : vector<256x16xf32>
    %48 = vector.shape_cast %47 : vector<256x16xf32> to vector<16x16x16xf32>
    %c1_49 = arith.constant 1 : index
    %c1_50 = arith.constant 1 : index
    %c0_51 = arith.constant 0 : index
    %49 = vector.load %arg10[%c1_49, %c1_50, %c0_51] : memref<18x18x16xf32, #tpu.memory_space<vmem>>, vector<16x16x16xf32>
    tpu.vector_store %arg10[%c1_49, %c1_50, %c0_51], %48 {strides = array<i32>} : memref<18x18x16xf32, #tpu.memory_space<vmem>>, vector<16x16x16xf32>,
    %c0_52 = arith.constant 0 : index
    %c0_53 = arith.constant 0 : index
    %c0_54 = arith.constant 0 : index
    %50 = vector.load %arg10[%c0_52, %c0_53, %c0_54] : memref<18x18x16xf32, #tpu.memory_space<vmem>>, vector<16x16x16xf32>
    %51 = vector.shape_cast %50 : vector<16x16x16xf32> to vector<256x16xf32>
    %c0_55 = arith.constant 0 : index
    %c1_56 = arith.constant 1 : index
    %c0_57 = arith.constant 0 : index
    %52 = vector.load %arg10[%c0_55, %c1_56, %c0_57] : memref<18x18x16xf32, #tpu.memory_space<vmem>>, vector<16x16x16xf32>
    %53 = vector.shape_cast %52 : vector<16x16x16xf32> to vector<256x16xf32>
    %c0_58 = arith.constant 0 : index
    %c2_59 = arith.constant 2 : index
    %c0_60 = arith.constant 0 : index
    %54 = vector.load %arg10[%c0_58, %c2_59, %c0_60] : memref<18x18x16xf32, #tpu.memory_space<vmem>>, vector<16x16x16xf32>
    %55 = vector.shape_cast %54 : vector<16x16x16xf32> to vector<256x16xf32>
    %c1_61 = arith.constant 1 : index
    %c0_62 = arith.constant 0 : index
    %c0_63 = arith.constant 0 : index
    %56 = vector.load %arg10[%c1_61, %c0_62, %c0_63] : memref<18x18x16xf32, #tpu.memory_space<vmem>>, vector<16x16x16xf32>
    %57 = vector.shape_cast %56 : vector<16x16x16xf32> to vector<256x16xf32>
    %c1_64 = arith.constant 1 : index
    %c1_65 = arith.constant 1 : index
    %c0_66 = arith.constant 0 : index
    %58 = vector.load %arg10[%c1_64, %c1_65, %c0_66] : memref<18x18x16xf32, #tpu.memory_space<vmem>>, vector<16x16x16xf32>
    %59 = vector.shape_cast %58 : vector<16x16x16xf32> to vector<256x16xf32>
    %c1_67 = arith.constant 1 : index
    %c2_68 = arith.constant 2 : index
    %c0_69 = arith.constant 0 : index
    %60 = vector.load %arg10[%c1_67, %c2_68, %c0_69] : memref<18x18x16xf32, #tpu.memory_space<vmem>>, vector<16x16x16xf32>
    %61 = vector.shape_cast %60 : vector<16x16x16xf32> to vector<256x16xf32>
    %c2_70 = arith.constant 2 : index
    %c0_71 = arith.constant 0 : index
    %c0_72 = arith.constant 0 : index
    %62 = vector.load %arg10[%c2_70, %c0_71, %c0_72] : memref<18x18x16xf32, #tpu.memory_space<vmem>>, vector<16x16x16xf32>
    %63 = vector.shape_cast %62 : vector<16x16x16xf32> to vector<256x16xf32>
    %c2_73 = arith.constant 2 : index
    %c1_74 = arith.constant 1 : index
    %c0_75 = arith.constant 0 : index
    %64 = vector.load %arg10[%c2_73, %c1_74, %c0_75] : memref<18x18x16xf32, #tpu.memory_space<vmem>>, vector<16x16x16xf32>
    %65 = vector.shape_cast %64 : vector<16x16x16xf32> to vector<256x16xf32>
    %c2_76 = arith.constant 2 : index
    %c2_77 = arith.constant 2 : index
    %c0_78 = arith.constant 0 : index
    %66 = vector.load %arg10[%c2_76, %c2_77, %c0_78] : memref<18x18x16xf32, #tpu.memory_space<vmem>>, vector<16x16x16xf32>
    %67 = vector.shape_cast %66 : vector<16x16x16xf32> to vector<256x16xf32>
    %68 = tpu.concatenate %51, %53, %55, %57, %59, %61, %63, %65, %67 in 1 : vector<256x16xf32>, vector<256x16xf32>, vector<256x16xf32>, vector<256x16xf32>, vector<256x16xf32>, vector<256x16xf32>, vector<256x16xf32>, vector<256x16xf32>, vector<256x16xf32> -> vector<256x144xf32>
    %c0_79 = arith.constant 0 : index
    %c0_80 = arith.constant 0 : index
    %69 = vector.load %arg3[%c0_79, %c0_80] : memref<144x16xf32, #tpu.memory_space<vmem>>, vector<144x16xf32>
    %cst_81 = arith.constant dense<0.000000e+00> : vector<256x16xf32>
    %70 = tpu.matmul %68, %69, %cst_81 {dimension_numbers = #tpu.dot_dimension_numbers<[1], [0], [0], [1], [0, 0, 1, 1], [], []>} : vector<256x144xf32>, vector<144x16xf32>, vector<256x16xf32> -> vector<256x16xf32>
    %c0_82 = arith.constant 0 : index
    %c0_83 = arith.constant 0 : index
    %71 = vector.load %arg8[%c0_82, %c0_83] : memref<16x16xf32, #tpu.memory_space<vmem>>, vector<16x16xf32>
    %cst_84 = arith.constant dense<0.000000e+00> : vector<16xf32>
    %72 = vector.multi_reduction <add>, %70, %cst_84 [0] : vector<256x16xf32> to vector<16xf32>
    %73 = vector.shape_cast %72 : vector<16xf32> to vector<1x16xf32>
    %cst_85 = arith.constant dense<0.000000e+00> : vector<1x16xf32>
    %74 = tpu.matmul %73, %71, %cst_85 {dimension_numbers = #tpu.dot_dimension_numbers<[1], [0], [0], [1], [0, 0, 1, 1], [], []>} : vector<1x16xf32>, vector<16x16xf32>, vector<1x16xf32> -> vector<1x16xf32>
    %75 = vector.broadcast %74 : vector<1x16xf32> to vector<256x16xf32>
    %76 = arith.subf %70, %75 : vector<256x16xf32>
    %77 = arith.mulf %76, %76 : vector<256x16xf32>
    %cst_86 = arith.constant dense<0.000000e+00> : vector<16xf32>
    %78 = vector.multi_reduction <add>, %77, %cst_86 [0] : vector<256x16xf32> to vector<16xf32>
    %79 = vector.shape_cast %78 : vector<16xf32> to vector<1x16xf32>
    %cst_87 = arith.constant dense<0.000000e+00> : vector<1x16xf32>
    %80 = tpu.matmul %79, %71, %cst_87 {dimension_numbers = #tpu.dot_dimension_numbers<[1], [0], [0], [1], [0, 0, 1, 1], [], []>} : vector<1x16xf32>, vector<16x16xf32>, vector<1x16xf32> -> vector<1x16xf32>
    %cst_88 = arith.constant 9.99999974E-6 : f32
    %81 = vector.broadcast %cst_88 : f32 to vector<1x16xf32>
    %82 = arith.addf %80, %81 : vector<1x16xf32>
    %83 = math.rsqrt %82 : vector<1x16xf32>
    %c0_89 = arith.constant 0 : index
    %c0_90 = arith.constant 0 : index
    %84 = vector.load %arg6[%c0_89, %c0_90] : memref<1x16xf32, #tpu.memory_space<vmem>>, vector<1x16xf32>
    %85 = arith.mulf %83, %84 : vector<1x16xf32>
    %86 = vector.broadcast %85 : vector<1x16xf32> to vector<256x16xf32>
    %87 = arith.mulf %76, %86 : vector<256x16xf32>
    %c0_91 = arith.constant 0 : index
    %c0_92 = arith.constant 0 : index
    %88 = vector.load %arg7[%c0_91, %c0_92] : memref<1x16xf32, #tpu.memory_space<vmem>>, vector<1x16xf32>
    %89 = vector.broadcast %88 : vector<1x16xf32> to vector<256x16xf32>
    %90 = arith.addf %87, %89 : vector<256x16xf32>
    %c0_93 = arith.constant 0 : index
    %c0_94 = arith.constant 0 : index
    %c0_95 = arith.constant 0 : index
    %c0_96 = arith.constant 0 : index
    %91 = vector.load %arg1[%c0_93, %c0_94, %c0_95, %c0_96] : memref<1x16x16x16xf32, #tpu.memory_space<vmem>>, vector<1x16x16x16xf32>
    %92 = vector.shape_cast %91 : vector<1x16x16x16xf32> to vector<16x16x16xf32>
    %93 = vector.shape_cast %92 : vector<16x16x16xf32> to vector<256x16xf32>
    %94 = arith.addf %90, %93 : vector<256x16xf32>
    %cst_97 = arith.constant 0.000000e+00 : f32
    %95 = vector.broadcast %cst_97 : f32 to vector<256x16xf32>
    %96 = arith.maximumf %94, %95 : vector<256x16xf32>
    %97 = vector.shape_cast %96 : vector<256x16xf32> to vector<16x16x16xf32>
    %c0_98 = arith.constant 0 : index
    %c0_99 = arith.constant 0 : index
    %c0_100 = arith.constant 0 : index
    %c0_101 = arith.constant 0 : index
    %98 = vector.load %arg9[%c0_98, %c0_99, %c0_100, %c0_101] : memref<1x16x16x16xf32, #tpu.memory_space<vmem>>, vector<1x16x16x16xf32>
    %99 = vector.shape_cast %98 : vector<1x16x16x16xf32> to vector<16x16x16xf32>
    %100 = vector.shape_cast %97 : vector<16x16x16xf32> to vector<1x16x16x16xf32>
    tpu.vector_store %arg9[%c0_98, %c0_99, %c0_100, %c0_101], %100 {strides = array<i32>} : memref<1x16x16x16xf32, #tpu.memory_space<vmem>>, vector<1x16x16x16xf32>,
    return
  }
  func.func @transform_0(%arg0: i32) -> (i32, i32, i32, i32) {
    %c0_i32 = arith.constant 0 : i32
    %c0_i32_0 = arith.constant 0 : i32
    %c0_i32_1 = arith.constant 0 : i32
    %c0_i32_2 = arith.constant 0 : i32
    return %arg0, %c0_i32, %c0_i32_0, %c0_i32_1 : i32, i32, i32, i32
  }
  func.func @transform_1(%arg0: i32) -> (i32, i32) {
    %c0_i32 = arith.constant 0 : i32
    %c0_i32_0 = arith.constant 0 : i32
    %c0_i32_1 = arith.constant 0 : i32
    return %c0_i32, %c0_i32_0 : i32, i32
  }
  func.func @transform_2(%arg0: i32) -> (i32, i32) {
    %c0_i32 = arith.constant 0 : i32
    %c0_i32_0 = arith.constant 0 : i32
    %c0_i32_1 = arith.constant 0 : i32
    return %c0_i32, %c0_i32_0 : i32, i32
  }
  func.func @transform_3(%arg0: i32) -> (i32, i32) {
    %c0_i32 = arith.constant 0 : i32
    %c0_i32_0 = arith.constant 0 : i32
    %c0_i32_1 = arith.constant 0 : i32
    return %c0_i32, %c0_i32_0 : i32, i32
  }
  func.func @transform_4(%arg0: i32) -> (i32, i32) {
    %c0_i32 = arith.constant 0 : i32
    %c0_i32_0 = arith.constant 0 : i32
    %c0_i32_1 = arith.constant 0 : i32
    return %c0_i32, %c0_i32_0 : i32, i32
  }
  func.func @transform_5(%arg0: i32) -> (i32, i32) {
    %c0_i32 = arith.constant 0 : i32
    %c0_i32_0 = arith.constant 0 : i32
    %c0_i32_1 = arith.constant 0 : i32
    return %c0_i32, %c0_i32_0 : i32, i32
  }
  func.func @transform_6(%arg0: i32) -> (i32, i32) {
    %c0_i32 = arith.constant 0 : i32
    %c0_i32_0 = arith.constant 0 : i32
    %c0_i32_1 = arith.constant 0 : i32
    return %c0_i32, %c0_i32_0 : i32, i32
  }
  func.func @transform_7(%arg0: i32) -> (i32, i32) {
    %c0_i32 = arith.constant 0 : i32
    %c0_i32_0 = arith.constant 0 : i32
    %c0_i32_1 = arith.constant 0 : i32
    return %c0_i32, %c0_i32_0 : i32, i32
  }
  func.func @transform_8(%arg0: i32) -> (i32, i32, i32, i32) {
    %c0_i32 = arith.constant 0 : i32
    %c0_i32_0 = arith.constant 0 : i32
    %c0_i32_1 = arith.constant 0 : i32
    %c0_i32_2 = arith.constant 0 : i32
    return %arg0, %c0_i32, %c0_i32_0, %c0_i32_1 : i32, i32, i32, i32
  }
}

</mosaic_0001>

<bundles_post_ra>
// kernel: tpu_custom_call.1
= control target key start
LH: loop header
LB: loop body
LE: loop exit
PB: predicated region body
PF: predicated region fallthrough
CT: control target
= control target key end

     0   :  { %s9094_s0 = inlined_call_operand.hbm [shape: f32[2,16,16,16], index: 0, kind: input, shape index: {}]   ;;  %s9095_s1 = inlined_call_operand.vmem [shape: f32[144,16], index: 1, kind: input, shape index: {}]   ;;  %s9096_s2 = inlined_call_operand.vmem [shape: f32[144,16], index: 2, kind: input, shape index: {}]   ;;  %s9097_s3 = inlined_call_operand.vmem [shape: f32[1,16], index: 3, kind: input, shape index: {}]   ;;  %s9098_s4 = inlined_call_operand.vmem [shape: f32[1,16], index: 4, kind: input, shape index: {}]   ;;  %s9099_s5 = inlined_call_operand.vmem [shape: f32[1,16], index: 5, kind: input, shape index: {}]   ;;  %s9100_s6 = inlined_call_operand.vmem [shape: f32[1,16], index: 6, kind: input, shape index: {}]   ;;  %s9101_s7 = inlined_call_operand.vmem [shape: f32[16,16], index: 7, kind: input, shape index: {}]   ;;  %s9102_s8 = inlined_call_operand.hbm [shape: f32[2,16,16,16], index: 8, kind: output, shape index: {}]  }
   0x1   :  { %9119 = sst [smem:[#allocation9_spill]] %s9094_s0 }
   0x2   :  { %13 = vsyncpa [#allocation4], 0 }
   0x3   :  { %15 = vsyncpa [#allocation4 + $0x1], 0 }
   0x4   :  { %16 = vsyncpa [#allocation5], 0 }
   0x5   :  { %18 = vsyncpa [#allocation5 + $0x1], 0  ;;  %s6594_s27 = smov 0   ;;  %s6596_s28 = smov 0  }
   0x6   :  { %s6598_s29 = smov 0   ;;  %s6600_s30 = smov 0  }
   0x7 LB: > { %s6615_s9 = sadd.s32 4294967295, %s6531_s30   ;;  %s5089_s10 = sadd.s32 4294967294, %s6531_s30   ;;  %s6531_s30 = sphi %s6600_s30, %s9140_s30   ;;  %s6527_s29 = sphi %s6598_s29, %s9139_s29   ;;  %s6523_s28 = sphi %s6596_s28, %s9138_s28   ;;  %s6519_s27 = sphi %s6594_s27, %s9137_s27  }
   0x8   : > { %s6619_s11 = sadd.s32 1, %s6531_s30   ;;  %s31_s12 = sadd.s32 1, %s6527_s29 }
   0x9   : > { %s28_s13 = ssub.s32 %s6531_s30, %s6619_s11  ;;  %p38_p0 = scmp.ne.s32.totalorder %s6527_s29, %s6523_s28 }
   0xa   : > { %p29_p1 = scmp.eq.s32.totalorder %s28_s13, 0  ;;  %p39_p2 = scmp.eq.s32.totalorder %s6531_s30, 0 }
   0xb   : > { %p44_p3 = scmp.ne.s32.totalorder %s6523_s28, %s6519_s27  ;;  %p45_p4 = scmp.eq.s32.totalorder %s6615_s9, 0 }
   0xc   : > { %s6631_s14 = scalar_select %p29_p1, %s6527_s29, %s31_s12  }
   0xd   : > { %p6633_p5 = por %p39_p2, %p38_p0  ;;  %p6637_p6 = por %p45_p4, %p44_p3 }
   0xe   : > { %p215_p7 = scmp.eq.s32.totalorder %s6615_s9, 1  ;;  %p221_p8 = scmp.eq.s32.totalorder %s5089_s10, 1 }
   0xf   : > { %p5293_p10 = scmp.lt.s32.totalorder %s6531_s30, 2  ;;  %s262_s19 = sand.u32 1, %s6527_s29  }
  0x10   : > { %p6644_p11 = por %p215_p7, %p38_p0  ;;  %p6648_p12 = por %p221_p8, %p44_p3 }
  0x11   : > { %s5173_s20 = sshll.u32 %s6531_s30, 12  ;;  %s5092_s21 = sshll.u32 %s262_s19, 8 }
  0x12   : > { %s9122_s17 = scalar_select %p6644_p11, 1, 0 }
  0x13   : > { %s9123_s18 = scalar_select %p6648_p12, 1, 0 }
  0x14   : > { %s9124_s0 = sld [smem:[#allocation9_spill]]  ;;  %s266_s25 = scalar_lea.vmem [#allocation3], %s5092_s21 }
  0x15   : > { %s273_s26 = sshll.u32 %s266_s25, 4  ;;  %p6661_p13 = pnand %p5293_p10, %p6633_p5  ;;  %s6665_s26 = int_to_ptr.vmem [resolvable:$true] %s273_s26 }
  0x16   : > { %s6667_s12 = scalar_lea.sflag [#allocation4], %s262_s19 }
  0x17   : > { %p6437_p1 = pneg %p6661_p13 }
  0x1a   : > { %s6657_s24 = scalar_lea.hbm %s9124_s0, %s5173_s20  ;;  %s6440_s21 = scalar_lea.hbm %s9124_s0, 8192 }
  0x1b   : > { %s6435_s13 = scalar_lea.hbm %s6657_s24, 4096  ;;  %p6441_p4 = scmp.lt.u32.totalorder %s6657_s24, %s9124_s0 }
  0x1c   : > { %p6436_p0 = scmp.ne.s32.totalorder %s6657_s24, %s6435_s13  ;;  %p6442_p5 = scmp.lt.u32.totalorder %s6440_s21, %s6435_s13 }
  0x1d   : > { %p6444_p8 = scmp.lt.u32.totalorder %s6435_s13, %s6657_s24 }
  0x1e   : > { %p6438_p2 = pnand %p6437_p1, %p6436_p0  ;;  %p6443_p7 = por %p6442_p5, %p6441_p4 }
  0x20   : > { %p6439_p3 = pneg %p6438_p2  ;;  %p6445_p10 = por %p6444_p8, %p6443_p7 }
  0x22   : > { %p6446_p9 = pnand %p6445_p10, %p6439_p3 }
  0x24   : > { %6449 = shalt.err (!%p6446_p9)
}
  0x25   : > { %s6450_s19 = scalar_lea.vmem %s6665_s26, 4096  ;;  %s6533_s25 = smov [#allocation3]  }
  0x26   : > { %p6451_p0 = scmp.ne.s32.totalorder %s6665_s26, %s6450_s19  ;;  %s6455_s20 = sshll.u32 %s6533_s25, 4  ;;  %s6456_s20 = int_to_ptr.vmem [resolvable:$false] %s6455_s20 }
  0x27   : > { %s6457_s15 = scalar_lea.vmem %s6456_s20, 8192  ;;  %p6458_p11 = scmp.lt.s32.totalorder %s6665_s26, %s6456_s20 }
  0x28   : > { %p6453_p2 = pnand %p6451_p0, %p6437_p1  ;;  %p6459_p4 = scmp.lt.s32.totalorder %s6457_s15, %s6450_s19 }
  0x2a   : > { %p6454_p12 = pneg %p6453_p2  ;;  %p6460_p5 = por %p6459_p4, %p6458_p11 }
  0x2c   : > { %p6461_p7 = pnand %p6460_p5, %p6454_p12 }
  0x2e   : > { %6464 = shalt.err (!%p6461_p7)
}
  0x2f   : > { %s6534_s13 = smov 128   ;;  %s6535_s21 = smov 8  }
  0x30   : > { %5288 = dma.hbm_to_vmem [thread:$0]  (!%p6661_p13), %s6657_s24, 4096, %s6665_s26, %s6667_s12, %s6534_s13, %s6534_s13, %s6535_s21  }
  0x31   : > { %p5095_p9 = scmp.ge.s32.totalorder %s6531_s30, 1  ;;  %p281_p1 = scmp.lt.s32.totalorder %s6531_s30, 3 }
  0x33   : > { %p282_p3 = pnand %p5095_p9, %p281_p1 }
  0x34   : > { %s6698_s22 = sand.u32 (!%p282_p3), 1, %s6523_s28  }
  0x35   : > { %285 = sbr.rel (%p282_p3) target bundleno = 2373 (0x945), region = 52  ;;  %s9104_s23 = sshll.u32 (!%p282_p3), %s6698_s22, 8 }
  0x36   : > { %s288_s19 = scalar_lea.sflag (!%p282_p3), [#allocation4], %s6698_s22  ;;  %s6704_s25 = scalar_lea.vmem (!%p282_p3), [#allocation3], %s9104_s23 }
  0x3c   : > { %6510 = dma.done.wait (%p6637_p6), %s288_s19, 4096  }
  0x3d   : > { %6512 = vsyncadd (%p6637_p6), %s288_s19, 4294963200  ;;  %vm324_vm0 = vcmask 130048   ;;  %vm327_vm1 = vcmask 123904   ;;  %v6536_v0 = vmov 0.0   ;;  %v6537_v1 = vmov 0.0|0.0   ;;  %v380_v2 = vld [vmem:[%s6704_s25] sm:$0xff] }
  0x3e   : > { %325 = vst.msk [vmem:[#allocation2] sm:$0xff] %vm324_vm0, %v6536_v0  ;;  %326 = vst.msk [vmem:[#allocation2 + $0x8] sm:$0xff] %vm324_vm0, %v6536_v0  ;;  %5215 = vmatprep.subr.bf16.mxu0 %v6537_v1  ;;  %5242 = vmatprep.subr.bf16.mxu1 %v6537_v1  ;;  %v381_v3 = vld [vmem:[%s6704_s25 + $0x8] sm:$0xff]  ;;  %v382_v4 = vld [vmem:[%s6704_s25 + $0x10] sm:$0xff]  ;;  %s9109_s16 = smov 16   ;;  %s9105_s19 = smov 32  }
  0x3f   : > { %328 = vst.msk [vmem:[#allocation2 + $0x10] sm:$0x3] %vm327_vm1, %v6536_v0  ;;  %331 = vst.msk [vmem:[#allocation2 + $0x28] sm:$0x3] %vm327_vm1, %v6536_v0  ;;  %v383_v10 = vld [vmem:[%s6704_s25 + $0x18] sm:$0xff]  ;;  %v384_v11 = vld [vmem:[%s6704_s25 + $0x20] sm:$0xff] }
  0x40   : > { %329 = vst.msk [vmem:[#allocation2 + $0x18] sm:$0xff] %vm324_vm0, %v6536_v0  ;;  %330 = vst.msk [vmem:[#allocation2 + $0x20] sm:$0xff] %vm324_vm0, %v6536_v0  ;;  %v385_v12 = vld [vmem:[%s6704_s25 + $0x28] sm:$0xff]  ;;  %v386_v13 = vld [vmem:[%s6704_s25 + $0x30] sm:$0xff]  ;;  %s9115_s24 = smov 48   ;;  %s9111_s26 = smov 80  }
  0x41   : > { %332 = vst.msk [vmem:[#allocation2 + $0x30] sm:$0xff] %vm324_vm0, %v6536_v0  ;;  %333 = vst.msk [vmem:[#allocation2 + $0x38] sm:$0xff] %vm324_vm0, %v6536_v0  ;;  %v387_v14 = vld [vmem:[%s6704_s25 + $0x38] sm:$0xff]  ;;  %v388_v16 = vld [vmem:[%s6704_s25 + $0x40] sm:$0xff]  ;;  %s9117_s10 = smov 64   ;;  %s9107_s12 = smov 112  }
  0x42   : > { %334 = vst.msk [vmem:[#allocation2 + $0x40] sm:$0x3] %vm327_vm1, %v6536_v0  ;;  %337 = vst.msk [vmem:[#allocation2 + $0x58] sm:$0x3] %vm327_vm1, %v6536_v0  ;;  %v389_v17 = vld [vmem:[%s6704_s25 + $0x48] sm:$0xff]  ;;  %v390_v18 = vld [vmem:[%s6704_s25 + $0x50] sm:$0xff] }
  0x43   : > { %335 = vst.msk [vmem:[#allocation2 + $0x48] sm:$0xff] %vm324_vm0, %v6536_v0  ;;  %336 = vst.msk [vmem:[#allocation2 + $0x50] sm:$0xff] %vm324_vm0, %v6536_v0  ;;  %v391_v19 = vld [vmem:[%s6704_s25 + $0x58] sm:$0xff]  ;;  %v392_v20 = vld [vmem:[%s6704_s25 + $0x60] sm:$0xff]  ;;  %s9113_s20 = smov 96   ;;  %s9126_s13 = smov 112  }
  0x44   : > { %338 = vst.msk [vmem:[#allocation2 + $0x60] sm:$0xff] %vm324_vm0, %v6536_v0  ;;  %339 = vst.msk [vmem:[#allocation2 + $0x68] sm:$0xff] %vm324_vm0, %v6536_v0  ;;  %v393_v21 = vld [vmem:[%s6704_s25 + $0x68] sm:$0xff]  ;;  %v394_v22 = vld [vmem:[%s6704_s25 + $0x70] sm:$0xff]  ;;  %vm1662_vm2 = vcmask 261120   ;;  %vm1695_vm3 = vcmask 392192  }
  0x45   : > { %340 = vst.msk [vmem:[#allocation2 + $0x70] sm:$0x3] %vm327_vm1, %v6536_v0  ;;  %343 = vst.msk [vmem:[#allocation2 + $0x88] sm:$0x3] %vm327_vm1, %v6536_v0  ;;  %v477_v5 = vld [vmem:[#allocation2 + $0x1] sm:$0xff]  ;;  %v1862_v26 = vld [vmem:[%s9095_s1 + $0x10] sm:$0xff] }
  0x46   : > { %341 = vst.msk [vmem:[#allocation2 + $0x78] sm:$0xff] %vm324_vm0, %v6536_v0  ;;  %342 = vst.msk [vmem:[#allocation2 + $0x80] sm:$0xff] %vm324_vm0, %v6536_v0  ;;  %v478_v6 = vld [vmem:[#allocation2 + $0x9] sm:$0xff]  ;;  %v1860_v24 = vld [vmem:[%s9095_s1] sm:$0xff]  ;;  %vm1728_vm4 = vcmask 523264   ;;  %vm1761_vm5 = vcmask 654336  }
  0x47   : > { %344 = vst.msk [vmem:[#allocation2 + $0x90] sm:$0xff] %vm324_vm0, %v6536_v0  ;;  %345 = vst.msk [vmem:[#allocation2 + $0x98] sm:$0xff] %vm324_vm0, %v6536_v0  ;;  %v509_v7 = vld [vmem:[#allocation2 + $0x2] sm:$0xff]  ;;  %v5341_v8 = vpack.i.bf16 %v478_v6, %v477_v5  ;;  %v510_v9 = vld [vmem:[#allocation2 + $0xa] sm:$0xff]  ;;  %vm1794_vm6 = vcmask 785408   ;;  %vm1827_vm7 = vcmask 916480  }
  0x48   : > { %346 = vst.msk [vmem:[#allocation2 + $0xa0] sm:$0x3] %vm327_vm1, %v6536_v0  ;;  %349 = vst.msk [vmem:[#allocation2 + $0xb8] sm:$0x3] %vm327_vm1, %v6536_v0  ;;  %v5346_v15 = vpack.i.bf16 %v510_v9, %v509_v7  ;;  %v395_v23 = vld [vmem:[%s6704_s25 + $0x78] sm:$0xff]  ;;  %v1863_v27 = vld [vmem:[%s9095_s1 + $0x18] sm:$0xff] }
  0x49   : > { %347 = vst.msk [vmem:[#allocation2 + $0xa8] sm:$0xff] %vm324_vm0, %v6536_v0  ;;  %348 = vst.msk [vmem:[#allocation2 + $0xb0] sm:$0xff] %vm324_vm0, %v6536_v0  ;;  %5342 = vrot.lane.b32.xlu0 %v5341_v8, %s9109_s16  ;;  %v1861_v25 = vld [vmem:[%s9095_s1 + $0x8] sm:$0xff]  ;;  %v5219_v39 = vpack.c.bf16 %v1863_v27, %v1862_v26  ;;  %v1864_v49 = vld [vmem:[%s9095_s1 + $0x20] sm:$0xff]  ;;  %vm6545_vm8 = vmmov 0   ;;  %s9128_s15 = smov 64  }
  0x4a   : > { %350 = vst.msk [vmem:[#allocation2 + $0xc0] sm:$0xff] %vm324_vm0, %v6536_v0  ;;  %351 = vst.msk [vmem:[#allocation2 + $0xc8] sm:$0xff] %vm324_vm0, %v6536_v0  ;;  %v5216_v31 = vpack.c.bf16 %v1861_v25, %v1860_v24  ;;  %v1865_v50 = vld [vmem:[%s9095_s1 + $0x28] sm:$0xff]  ;;  %v396_v53 = vld [vmem:[%s6704_s25 + $0x80] sm:$0xff]  ;;  %5191 = vmatprep.mubr.msk.f32.mxu1 %vm6545_vm8, %v6536_v0  ;;  %s9130_s0 = smov 96   ;;  %p9134_p11 = scmp.ne.s32.totalorder %s9122_s17, 0 }
  0x4b   : > { %352 = vst.msk [vmem:[#allocation2 + $0xd0] sm:$0x3] %vm327_vm1, %v6536_v0  ;;  %355 = vst.msk [vmem:[#allocation2 + $0xe8] sm:$0x3] %vm327_vm1, %v6536_v0  ;;  %v5222_v52 = vpack.c.bf16 %v1865_v50, %v1864_v49  ;;  %v397_v54 = vld [vmem:[%s6704_s25 + $0x88] sm:$0xff]  ;;  %v1866_v55 = vld [vmem:[%s9095_s1 + $0x30] sm:$0xff] }
  0x4c   : > { %353 = vst.msk [vmem:[#allocation2 + $0xd8] sm:$0xff] %vm324_vm0, %v6536_v0  ;;  %354 = vst.msk [vmem:[#allocation2 + $0xe0] sm:$0xff] %vm324_vm0, %v6536_v0  ;;  %5217 = vmatpush1.bf16.msra.mxu0 %v5216_v31  ;;  %v1867_v56 = vld [vmem:[%s9095_s1 + $0x38] sm:$0xff]  ;;  %v1868_v59 = vld [vmem:[%s9095_s1 + $0x40] sm:$0xff] }
  0x4d   : > { %356 = vst.msk [vmem:[#allocation2 + $0xf0] sm:$0xff] %vm324_vm0, %v6536_v0  ;;  %357 = vst.msk [vmem:[#allocation2 + $0xf8] sm:$0xff] %vm324_vm0, %v6536_v0  ;;  %5347 = vrot.lane.b32.xlu0 %v5346_v15, %s9105_s19  ;;  %5218 = vmatprep.subr.bf16.mxu0 %v6537_v1  ;;  %v5225_v57 = vpack.c.bf16 %v1867_v56, %v1866_v55  ;;  %v1869_v60 = vld [vmem:[%s9095_s1 + $0x48] sm:$0xff]  ;;  %v398_v63 = vld [vmem:[%s6704_s25 + $0x90] sm:$0xff] }
  0x4e   : > { %358 = vst.msk [vmem:[#allocation2 + $0x100] sm:$0x3] %vm327_vm1, %v6536_v0  ;;  %361 = vst.msk [vmem:[#allocation2 + $0x118] sm:$0x3] %vm327_vm1, %v6536_v0  ;;  %v1871_v5 = vld [vmem:[%s9095_s1 + $0x58] sm:$0xff]  ;;  %v400_v6 = vld [vmem:[%s6704_s25 + $0xa0] sm:$0xff] }
  0x4f   : > { %359 = vst.msk [vmem:[#allocation2 + $0x108] sm:$0xff] %vm324_vm0, %v6536_v0  ;;  %360 = vst.msk [vmem:[#allocation2 + $0x110] sm:$0xff] %vm324_vm0, %v6536_v0  ;;  %v401_v8 = vld [vmem:[%s6704_s25 + $0xa8] sm:$0xff]  ;;  %v402_v9 = vld [vmem:[%s6704_s25 + $0xb0] sm:$0xff] }
  0x50   : > { %362 = vst.msk [vmem:[#allocation2 + $0x120] sm:$0xff] %vm324_vm0, %v6536_v0  ;;  %363 = vst.msk [vmem:[#allocation2 + $0x128] sm:$0xff] %vm324_vm0, %v6536_v0  ;;  %5220 = vmatpush1.bf16.msra.mxu0 %v5219_v39  ;;  %v405_v15 = vld [vmem:[%s6704_s25 + $0xc8] sm:$0xff]  ;;  %v1876_v31 = vld [vmem:[%s9095_s1 + $0x80] sm:$0xff] }
  0x51   : > { %364 = vst.msk [vmem:[#allocation2 + $0x130] sm:$0x3] %vm327_vm1, %v6536_v0  ;;  %367 = vst.msk [vmem:[#allocation2 + $0x148] sm:$0x3] %vm327_vm1, %v6536_v0  ;;  %5221 = vmatprep.subr.bf16.mxu0 %v6537_v1  ;;  %v408_v49 = vld [vmem:[%s6704_s25 + $0xe0] sm:$0xff]  ;;  %v409_v50 = vld [vmem:[%s6704_s25 + $0xe8] sm:$0xff] }
  0x52   : > { %365 = vst.msk [vmem:[#allocation2 + $0x138] sm:$0xff] %vm324_vm0, %v6536_v0  ;;  %366 = vst.msk [vmem:[#allocation2 + $0x140] sm:$0xff] %vm324_vm0, %v6536_v0 }
  0x53   : > { %368 = vst.msk [vmem:[#allocation2 + $0x150] sm:$0xff] %vm324_vm0, %v6536_v0  ;;  %369 = vst.msk [vmem:[#allocation2 + $0x158] sm:$0xff] %vm324_vm0, %v6536_v0 }
  0x54   : > { %370 = vst.msk [vmem:[#allocation2 + $0x160] sm:$0x3] %vm327_vm1, %v6536_v0  ;;  %373 = vst.msk [vmem:[#allocation2 + $0x178] sm:$0x3] %vm327_vm1, %v6536_v0  ;;  %5223 = vmatpush1.bf16.msra.mxu0 %v5222_v52 }
  0x55   : > { %371 = vst.msk [vmem:[#allocation2 + $0x168] sm:$0xff] %vm324_vm0, %v6536_v0  ;;  %372 = vst.msk [vmem:[#allocation2 + $0x170] sm:$0xff] %vm324_vm0, %v6536_v0  ;;  %5224 = vmatprep.subr.bf16.mxu0 %v6537_v1 }
  0x56   : > { %374 = vst.msk [vmem:[#allocation2 + $0x180] sm:$0xff] %vm324_vm0, %v6536_v0  ;;  %375 = vst.msk [vmem:[#allocation2 + $0x188] sm:$0xff] %vm324_vm0, %v6536_v0 }
  0x57   : > { %376 = vst.msk [vmem:[#allocation2 + $0x190] sm:$0x3] %vm327_vm1, %v6536_v0  ;;  %379 = vst.msk [vmem:[#allocation2 + $0x1a8] sm:$0x3] %vm327_vm1, %v6536_v0 }
  0x58   : > { %377 = vst.msk [vmem:[#allocation2 + $0x198] sm:$0xff] %vm324_vm0, %v6536_v0  ;;  %378 = vst.msk [vmem:[#allocation2 + $0x1a0] sm:$0xff] %vm324_vm0, %v6536_v0  ;;  %5226 = vmatpush1.bf16.msra.mxu0 %v5225_v57 }
  0x59   : > { %413 = vst.msk [vmem:[#allocation2 + $0x19] sm:$0xff] %vm324_vm0, %v380_v2  ;;  %414 = vst.msk [vmem:[#allocation2 + $0x21] sm:$0xff] %vm324_vm0, %v381_v3  ;;  %v399_v2 = vld [vmem:[%s6704_s25 + $0x98] sm:$0xff]  ;;  %v5228_v3 = vpack.c.bf16 %v1869_v60, %v1868_v59  ;;  %5227 = vmatprep.subr.bf16.mxu0 %v6537_v1 }
  0x5a   : > { %415 = vst.msk [vmem:[#allocation2 + $0x31] sm:$0xff] %vm324_vm0, %v382_v4  ;;  %416 = vst.msk [vmem:[#allocation2 + $0x39] sm:$0xff] %vm324_vm0, %v383_v10  ;;  %v1870_v4 = vld [vmem:[%s9095_s1 + $0x50] sm:$0xff]  ;;  %v403_v10 = vld [vmem:[%s6704_s25 + $0xb8] sm:$0xff] }
  0x5b   : > { %417 = vst.msk [vmem:[#allocation2 + $0x49] sm:$0xff] %vm324_vm0, %v384_v11  ;;  %418 = vst.msk [vmem:[#allocation2 + $0x51] sm:$0xff] %vm324_vm0, %v385_v12 }
  0x5c   : > { %419 = vst.msk [vmem:[#allocation2 + $0x61] sm:$0xff] %vm324_vm0, %v386_v13  ;;  %420 = vst.msk [vmem:[#allocation2 + $0x69] sm:$0xff] %vm324_vm0, %v387_v14  ;;  %5229 = vmatpush1.bf16.msra.mxu0 %v5228_v3  ;;  %v5231_v13 = vpack.c.bf16 %v1871_v5, %v1870_v4  ;;  %v404_v14 = vld [vmem:[%s6704_s25 + $0xc0] sm:$0xff] }
  0x5d   : > { %421 = vst.msk [vmem:[#allocation2 + $0x79] sm:$0xff] %vm324_vm0, %v388_v16  ;;  %422 = vst.msk [vmem:[#allocation2 + $0x81] sm:$0xff] %vm324_vm0, %v389_v17  ;;  %5230 = vmatprep.subr.bf16.mxu0 %v6537_v1  ;;  %v1872_v16 = vld [vmem:[%s9095_s1 + $0x60] sm:$0xff]  ;;  %v1873_v17 = vld [vmem:[%s9095_s1 + $0x68] sm:$0xff] }
  0x5e   : > { %423 = vst.msk [vmem:[#allocation2 + $0x91] sm:$0xff] %vm324_vm0, %v390_v18  ;;  %424 = vst.msk [vmem:[#allocation2 + $0x99] sm:$0xff] %vm324_vm0, %v391_v19 }
  0x5f   : > { %425 = vst.msk [vmem:[#allocation2 + $0xa9] sm:$0xff] %vm324_vm0, %v392_v20  ;;  %426 = vst.msk [vmem:[#allocation2 + $0xb1] sm:$0xff] %vm324_vm0, %v393_v21  ;;  %v5234_v21 = vpack.c.bf16 %v1873_v17, %v1872_v16 }
  0x60   : > { %427 = vst.msk [vmem:[#allocation2 + $0xc1] sm:$0xff] %vm324_vm0, %v394_v22  ;;  %428 = vst.msk [vmem:[#allocation2 + $0xc9] sm:$0xff] %vm324_vm0, %v395_v23  ;;  %v6866_v28 = vld [vmem:[#allocation2 + $0x18] sm:$0xff]  ;;  %v6868_v29 = vld [vmem:[#allocation2 + $0x20] sm:$0xff]  ;;  %5232 = vmatpush1.bf16.msra.mxu0 %v5231_v13 }
  0x61   : > { %v605_v30 = vld [vmem:[#allocation2 + $0x1a] sm:$0xff]  ;;  %v5351_v32 = vpack.i.bf16 %v6868_v29, %v6866_v28  ;;  %v606_v33 = vld [vmem:[#allocation2 + $0x22] sm:$0xff]  ;;  %v670_v37 = vld [vmem:[#allocation2 + $0x31] sm:$0xff]  ;;  %429 = vst.msk [vmem:[#allocation2 + $0xd9] sm:$0xff] %vm324_vm0, %v396_v53  ;;  %5233 = vmatprep.subr.bf16.mxu0 %v6537_v1 }
  0x62   : > { %v573_v34 = vld [vmem:[#allocation2 + $0x19] sm:$0xff]  ;;  %v574_v35 = vld [vmem:[#allocation2 + $0x21] sm:$0xff]  ;;  %v5361_v36 = vpack.i.bf16 %v606_v33, %v605_v30  ;;  %v6875_v42 = vld [vmem:[#allocation2 + $0x30] sm:$0xff]  ;;  %430 = vst.msk [vmem:[#allocation2 + $0xe1] sm:$0xff] %vm324_vm0, %v397_v54 }
  0x63   : > { %v671_v38 = vld [vmem:[#allocation2 + $0x39] sm:$0xff]  ;;  %5352 = vrot.lane.b32.xlu1 %v5351_v32, %s9115_s24  ;;  %v5356_v40 = vpack.i.bf16 %v574_v35, %v573_v34  ;;  %v6887_v46 = vld [vmem:[#allocation2 + $0x48] sm:$0xff]  ;;  %v6889_v47 = vld [vmem:[#allocation2 + $0x50] sm:$0xff]  ;;  %431 = vst.msk [vmem:[#allocation2 + $0xf1] sm:$0xff] %vm324_vm0, %v398_v63 }
  0x64   : > { %5362 = vrot.lane.b32.xlu0 %v5361_v36, %s9111_s26  ;;  %v5371_v41 = vpack.i.bf16 %v671_v38, %v670_v37  ;;  %v6877_v43 = vld [vmem:[#allocation2 + $0x38] sm:$0xff]  ;;  %v5401_v51 = vpack.i.bf16 %v6889_v47, %v6887_v46  ;;  %v672_v61 = vld [vmem:[#allocation2 + $0x49] sm:$0xff]  ;;  %432 = vst.msk [vmem:[#allocation2 + $0xf9] sm:$0xff] %vm324_vm0, %v399_v2  ;;  %433 = vst.msk [vmem:[#allocation2 + $0x109] sm:$0xff] %vm324_vm0, %v400_v6  ;;  %5235 = vmatpush1.bf16.msra.mxu0 %v5234_v21 }
  0x65   : > { %v607_v44 = vld [vmem:[#allocation2 + $0x32] sm:$0xff]  ;;  %v5366_v45 = vpack.i.bf16 %v6877_v43, %v6875_v42  ;;  %v6892_v48 = vld [vmem:[#allocation2 + $0x3a] sm:$0xff]  ;;  %434 = vst.msk [vmem:[#allocation2 + $0x111] sm:$0xff] %vm324_vm0, %v401_v8  ;;  %435 = vst.msk [vmem:[#allocation2 + $0x121] sm:$0xff] %vm324_vm0, %v402_v9  ;;  %5236 = vmatprep.subr.bf16.mxu0 %v6537_v1 }
  0x66   : > { %5098 = vmatprep.mubr.msk.f32.mxu0 %vm324_vm0, %v607_v44  ;;  %v5396_v58 = vpack.i.bf16 %v6892_v48, %v607_v44  ;;  %v673_v62 = vld [vmem:[#allocation2 + $0x51] sm:$0xff]  ;;  %436 = vst.msk [vmem:[#allocation2 + $0x129] sm:$0xff] %vm324_vm0, %v403_v10  ;;  %437 = vst.msk [vmem:[#allocation2 + $0x139] sm:$0xff] %vm324_vm0, %v404_v14  ;;  %v674_v19 = vld [vmem:[#allocation2 + $0x61] sm:$0xff] }
  0x67   : > { %5357 = vrot.lane.b32.xlu1 %v5356_v40, %s9117_s10  ;;  %v5406_v7 = vpack.i.bf16 %v673_v62, %v672_v61  ;;  %v6944_v11 = vld [vmem:[#allocation2 + $0x4a] sm:$0xff]  ;;  %v6946_v12 = vld [vmem:[#allocation2 + $0x52] sm:$0xff]  ;;  %438 = vst.msk [vmem:[#allocation2 + $0x141] sm:$0xff] %vm324_vm0, %v405_v15  ;;  %v6972_v25 = vld [vmem:[#allocation2 + $0x60] sm:$0xff] }
  0x68   : > { %5372 = vrot.lane.b32.xlu0 %v5371_v41, %s9107_s12  ;;  %v5431_v18 = vpack.i.bf16 %v6946_v12, %v6944_v11  ;;  %v675_v20 = vld [vmem:[#allocation2 + $0x69] sm:$0xff]  ;;  %s9127_s12 = smov 32   ;;  %v1875_v23 = vld [vmem:[%s9095_s1 + $0x78] sm:$0xff]  ;;  %v406_v33 = vld [vmem:[%s6704_s25 + $0xd0] sm:$0xff]  ;;  %441 = vst.msk [vmem:[#allocation2 + $0x169] sm:$0xff] %vm324_vm0, %v408_v49 }
  0x69   : > { %v1874_v22 = vld [vmem:[%s9095_s1 + $0x70] sm:$0xff]  ;;  %v5441_v24 = vpack.i.bf16 %v675_v20, %v674_v19  ;;  %v6974_v26 = vld [vmem:[#allocation2 + $0x68] sm:$0xff]  ;;  %439 = vst.msk [vmem:[#allocation2 + $0x151] sm:$0xff] %vm324_vm0, %v406_v33  ;;  %v645_v37 = vld [vmem:[#allocation2 + $0x80] sm:$0xff] }
  0x6a   : > { %v5237_v27 = vpack.c.bf16 %v1875_v23, %v1874_v22  ;;  %v5436_v30 = vpack.i.bf16 %v6974_v26, %v6972_v25  ;;  %v1877_v32 = vld [vmem:[%s9095_s1 + $0x88] sm:$0xff]  ;;  %v676_v44 = vld [vmem:[#allocation2 + $0x79] sm:$0xff]  ;;  %442 = vst.msk [vmem:[#allocation2 + $0x171] sm:$0xff] %vm324_vm0, %v409_v50  ;;  %v678_v55 = vld [vmem:[#allocation2 + $0x91] sm:$0xff] }
  0x6b   : > { %5367 = vrot.lane.b32.xlu1 %v5366_v45, %s9113_s20  ;;  %v407_v34 = vld [vmem:[%s6704_s25 + $0xd8] sm:$0xff]  ;;  %v5240_v35 = vpack.c.bf16 %v1877_v32, %v1876_v31  ;;  %v7011_v52 = vld [vmem:[#allocation2 + $0x7a] sm:$0xff]  ;;  %v649_v2 = vld [vmem:[#allocation2 + $0xb0] sm:$0xff] }
  0x6c   : > { %5382 = vrot.lane.b32.xlu0 %v5361_v36, %s9105_s19  ;;  %5238 = vmatpush1.bf16.msra.mxu0 %v5237_v27  ;;  %440 = vst.msk [vmem:[#allocation2 + $0x159] sm:$0xff] %vm324_vm0, %v407_v34  ;;  %v644_v36 = vld [vmem:[#allocation2 + $0x78] sm:$0xff]  ;;  %v6997_v39 = vld [vmem:[#allocation2 + $0x62] sm:$0xff]  ;;  %v617_v10 = vld [vmem:[#allocation2 + $0xaa] sm:$0xff]  ;;  %s9129_s19 = smov 48  }
  0x6d   : > { %5239 = vmatprep.subr.bf16.mxu0 %v6537_v1  ;;  %v5471_v38 = vpack.i.bf16 %v645_v37, %v644_v36  ;;  %v7013_v53 = vld [vmem:[#allocation2 + $0x82] sm:$0xff]  ;;  %v679_v56 = vld [vmem:[#allocation2 + $0x99] sm:$0xff]  ;;  %v681_v8 = vld [vmem:[#allocation2 + $0xb1] sm:$0xff] }
  0x6e   : > { %v5501_v54 = vpack.i.bf16 %v7013_v53, %v7011_v52  ;;  %v5511_v57 = vpack.i.bf16 %v679_v56, %v678_v55  ;;  %v647_v59 = vld [vmem:[#allocation2 + $0x98] sm:$0xff]  ;;  %v410_v61 = vld [vmem:[%s6704_s25 + $0xf0] sm:$0xff]  ;;  %v411_v62 = vld [vmem:[%s6704_s25 + $0xf8] sm:$0xff] }
  0x6f   : > { %5377 = vrot.lane.b32.xlu1 %v5356_v40, %s9109_s16  ;;  %v6999_v40 = vld [vmem:[#allocation2 + $0x6a] sm:$0xff]  ;;  %443 = vst.msk [vmem:[#allocation2 + $0x181] sm:$0xff] %vm324_vm0, %v410_v61  ;;  %444 = vst.msk [vmem:[#allocation2 + $0x189] sm:$0xff] %vm324_vm0, %v411_v62  ;;  %v7031_v4 = vld [vmem:[#allocation2 + $0x92] sm:$0xff] }
  0x70   : > { %5392 = vrot.lane.b32.xlu0 %v5371_v41, %s9117_s10  ;;  %5241 = vmatpush1.bf16.msra.mxu0 %v5240_v35  ;;  %v648_v63 = vld [vmem:[#allocation2 + $0xa8] sm:$0xff]  ;;  %v616_v5 = vld [vmem:[#allocation2 + $0x9a] sm:$0xff]  ;;  %v618_v13 = vld [vmem:[#allocation2 + $0xb2] sm:$0xff] }
  0x71   : > { %5275 = vmatprep.subr.bf16.mxu0 %v6537_v1  ;;  %v5541_v3 = vpack.i.bf16 %v649_v2, %v648_v63  ;;  %v5536_v6 = vpack.i.bf16 %v616_v5, %v7031_v4  ;;  %v5571_v14 = vpack.i.bf16 %v618_v13, %v617_v10  ;;  %v682_v15 = vld [vmem:[#allocation2 + $0xc1] sm:$0xff]  ;;  %v683_v16 = vld [vmem:[#allocation2 + $0xc9] sm:$0xff]  ;;  %v652_v21 = vld [vmem:[#allocation2 + $0xd8] sm:$0xff] }
  0x72   : > { %v5581_v17 = vpack.i.bf16 %v683_v16, %v682_v15  ;;  %v651_v19 = vld [vmem:[#allocation2 + $0xc8] sm:$0xff]  ;;  %v653_v22 = vld [vmem:[#allocation2 + $0xe0] sm:$0xff]  ;;  %v654_v56 = vld [vmem:[#allocation2 + $0xf0] sm:$0xff] }
  0x73   : > { %5387 = vrot.lane.b32.xlu1 %v5366_v45, %s9115_s24  ;;  %v677_v45 = vld [vmem:[#allocation2 + $0x81] sm:$0xff]  ;;  %v5611_v23 = vpack.i.bf16 %v653_v22, %v652_v21  ;;  %v620_v27 = vld [vmem:[#allocation2 + $0xca] sm:$0xff]  ;;  %v684_v31 = vld [vmem:[#allocation2 + $0xd9] sm:$0xff] }
  0x74   : > { %5402 = vrot.lane.b32.xlu0 %v5401_v51, %s9113_s20  ;;  %v685_v32 = vld [vmem:[#allocation2 + $0xe1] sm:$0xff]  ;;  %v657_v21 = vld [vmem:[#allocation2 + $0x110] sm:$0xff] }
  0x75   : > { %v5616_v33 = vpack.i.bf16 %v685_v32, %v684_v31  ;;  %v621_v34 = vld [vmem:[#allocation2 + $0xda] sm:$0xff]  ;;  %v622_v35 = vld [vmem:[#allocation2 + $0xe2] sm:$0xff] }
  0x76   : > { %v5641_v37 = vpack.i.bf16 %v622_v35, %v621_v34  ;;  %v623_v34 = vld [vmem:[#allocation2 + $0xf2] sm:$0xff]  ;;  %v624_v35 = vld [vmem:[#allocation2 + $0xfa] sm:$0xff] }
  0x77   : > { %5397 = vrot.lane.b32.xlu1 %v5396_v58, %s9111_s26 }
  0x78   : > { %5412 = vrot.lane.b32.xlu0 %v5371_v41, %s9109_s16  ;;  %v5466_v41 = vpack.i.bf16 %v6999_v40, %v6997_v39 }
  0x7b   : > { %5407 = vrot.lane.b32.xlu1 %v5406_v7, %s9126_s13 }
  0x7c   : > { %5422 = vrot.lane.b32.xlu0 %v5401_v51, %s9115_s24  ;;  %v5476_v51 = vpack.i.bf16 %v677_v45, %v676_v44  ;;  %v687_v44 = vld [vmem:[#allocation2 + $0xf9] sm:$0xff] }
  0x7d   : > { %v445_v45 = vld [vmem:[#allocation2] sm:$0xff] }
  0x7f   : > { %5417 = vrot.lane.b32.xlu1 %v5396_v58, %s9127_s12  ;;  %v646_v58 = vld [vmem:[#allocation2 + $0x90] sm:$0xff] }
  0x80   : > { %5432 = vrot.lane.b32.xlu0 %v5431_v18, %s9111_s26  ;;  %v5506_v60 = vpack.i.bf16 %v647_v59, %v646_v58 }
  0x83   : > { %5427 = vrot.lane.b32.xlu1 %v5406_v7, %s9117_s10 }
  0x84   : > { %5442 = vrot.lane.b32.xlu0 %v5441_v24, %s9126_s13 }
  0x87   : > { %5437 = vrot.lane.b32.xlu1 %v5436_v30, %s9113_s20 }
  0x88   : > { %5452 = vrot.lane.b32.xlu0 %v5431_v18, %s9127_s12  ;;  %v650_v18 = vld [vmem:[#allocation2 + $0xc0] sm:$0xff] }
  0x89   : > { %v5576_v20 = vpack.i.bf16 %v651_v19, %v650_v18 }
  0x8b   : > { %5447 = vrot.lane.b32.xlu1 %v5406_v7, %s9109_s16  ;;  %v680_v7 = vld [vmem:[#allocation2 + $0xa9] sm:$0xff] }
  0x8c   : > { %5462 = vrot.lane.b32.xlu0 %v5441_v24, %s9117_s10  ;;  %v5546_v9 = vpack.i.bf16 %v681_v8, %v680_v7 }
  0x8f   : > { %5457 = vrot.lane.b32.xlu1 %v5436_v30, %s9115_s24 }
  0x90   : > { %5472 = vrot.lane.b32.xlu0 %v5471_v38, %s9113_s20 }
  0x93   : > { %5467 = vrot.lane.b32.xlu1 %v5466_v41, %s9111_s26 }
  0x94   : > { %5482 = vrot.lane.b32.xlu0 %v5441_v24, %s9109_s16  ;;  %v619_v24 = vld [vmem:[#allocation2 + $0xc2] sm:$0xff] }
  0x95   : > { %v5606_v30 = vpack.i.bf16 %v620_v27, %v619_v24 }
  0x97   : > { %5477 = vrot.lane.b32.xlu1 %v5476_v51, %s9126_s13 }
  0x98   : > { %5492 = vrot.lane.b32.xlu0 %v5471_v38, %s9115_s24 }
  0x9b   : > { %5487 = vrot.lane.b32.xlu1 %v5466_v41, %s9127_s12  ;;  %v686_v41 = vld [vmem:[#allocation2 + $0xf1] sm:$0xff] }
  0x9c   : > { %5502 = vrot.lane.b32.xlu0 %v5501_v54, %s9111_s26  ;;  %v7056_v55 = vpack.i.bf16 %v687_v44, %v686_v41 }
  0x9f   : > { %5497 = vrot.lane.b32.xlu1 %v5476_v51, %s9117_s10 }
  0xa0   : > { %5512 = vrot.lane.b32.xlu0 %v5511_v57, %s9126_s13 }
  0xa3   : > { %5507 = vrot.lane.b32.xlu1 %v5506_v60, %s9113_s20 }
  0xa4   : > { %5522 = vrot.lane.b32.xlu0 %v5501_v54, %s9127_s12 }
  0xa7   : > { %5517 = vrot.lane.b32.xlu1 %v5476_v51, %s9109_s16  ;;  %v446_v51 = vld [vmem:[#allocation2 + $0x8] sm:$0xff] }
  0xa8   : > { %5532 = vrot.lane.b32.xlu0 %v5511_v57, %s9117_s10 }
  0xab   : > { %5527 = vrot.lane.b32.xlu1 %v5506_v60, %s9115_s24 }
  0xac   : > { %5542 = vrot.lane.b32.xlu0 %v5541_v3, %s9113_s20 }
  0xaf   : > { %5537 = vrot.lane.b32.xlu1 %v5536_v6, %s9111_s26 }
  0xb0   : > { %5552 = vrot.lane.b32.xlu0 %v5511_v57, %s9109_s16  ;;  %v655_v57 = vld [vmem:[#allocation2 + $0xf8] sm:$0xff] }
  0xb1   : > { %v5646_v2 = vpack.i.bf16 %v655_v57, %v654_v56  ;;  %v688_v56 = vld [vmem:[#allocation2 + $0x109] sm:$0xff]  ;;  %v689_v57 = vld [vmem:[#allocation2 + $0x111] sm:$0xff] }
  0xb3   : > { %5547 = vrot.lane.b32.xlu1 %v5546_v9, %s9126_s13 }
  0xb4   : > { %5562 = vrot.lane.b32.xlu0 %v5541_v3, %s9115_s24 }
  0xb7   : > { %5557 = vrot.lane.b32.xlu1 %v5536_v6, %s9127_s12 }
  0xb8   : > { %5572 = vrot.lane.b32.xlu0 %v5571_v14, %s9111_s26 }
  0xbb   : > { %5567 = vrot.lane.b32.xlu1 %v5546_v9, %s9117_s10  ;;  %v5343_v36 = vpop.permute.xlu0 %5342 }
  0xbc   : > { %5582 = vrot.lane.b32.xlu0 %v5581_v17, %s9126_s13  ;;  %v5344_v38 = vunpack.i.l.bf16 %v5343_v36  ;;  %v5345_v50 = vunpack.i.h.bf16 %v5343_v36 }
  0xbe   : > { %v1630_v58 = vsel %vm324_vm0, %v445_v45, %v5344_v38  ;;  %v1631_v62 = vsel %vm324_vm0, %v446_v51, %v5345_v50  ;;  %v5676_v50 = vpack.i.bf16 %v624_v35, %v623_v34 }
  0xbf   : > { %5577 = vrot.lane.b32.xlu1 %v5576_v20, %s9113_s20  ;;  %v5348_v49 = vpop.permute.xlu0 %5347 }
  0xc0   : > { %5592 = vrot.lane.b32.xlu0 %v5571_v14, %s9127_s12  ;;  %v5349_v54 = vunpack.i.l.bf16 %v5348_v49  ;;  %v5350_v60 = vunpack.i.h.bf16 %v5348_v49 }
  0xc2   : > { %v1663_v3 = vsel %vm1662_vm2, %v1630_v58, %v5349_v54  ;;  %v1664_v7 = vsel %vm1662_vm2, %v1631_v62, %v5350_v60 }
  0xc3   : > { %5587 = vrot.lane.b32.xlu1 %v5546_v9, %s9109_s16 }
  0xc4   : > { %5602 = vrot.lane.b32.xlu0 %v5581_v17, %s9117_s10 }
  0xc7   : > { %5597 = vrot.lane.b32.xlu1 %v5576_v20, %s9115_s24  ;;  %v656_v20 = vld [vmem:[#allocation2 + $0x108] sm:$0xff] }
  0xc8   : > { %5612 = vrot.lane.b32.xlu0 %v5611_v23, %s9113_s20  ;;  %v5681_v32 = vpack.i.bf16 %v657_v21, %v656_v20  ;;  %v691_v20 = vld [vmem:[#allocation2 + $0x129] sm:$0xff] }
  0xcb   : > { %5607 = vrot.lane.b32.xlu1 %v5606_v30, %s9111_s26 }
  0xcc   : > { %5622 = vrot.lane.b32.xlu0 %v5581_v17, %s9109_s16 }
  0xcf   : > { %5617 = vrot.lane.b32.xlu1 %v5616_v33, %s9126_s13 }
  0xd0   : > { %5632 = vrot.lane.b32.xlu0 %v5611_v23, %s9115_s24 }
  0xd3   : > { %5627 = vrot.lane.b32.xlu1 %v5606_v30, %s9127_s12 }
  0xd4   : > { %5642 = vrot.lane.b32.xlu0 %v5641_v37, %s9111_s26 }
  0xd5   : > { %v5353_v59 = vpop.permute.xlu1 %5352 }
  0xd6   : > { %v5363_v61 = vpop.permute.xlu0 %5362  ;;  %v5354_v63 = vunpack.i.l.bf16 %v5353_v59  ;;  %v5355_v5 = vunpack.i.h.bf16 %v5353_v59 }
  0xd7   : > { %5637 = vrot.lane.b32.xlu1 %v5616_v33, %s9117_s10  ;;  %v5364_v14 = vunpack.i.l.bf16 %v5363_v61  ;;  %v5365_v17 = vunpack.i.h.bf16 %v5363_v61 }
  0xd8   : > { %5652 = vrot.lane.b32.xlu0 %v7056_v55, %s9126_s13  ;;  %v1696_v13 = vsel %vm1695_vm3, %v1663_v3, %v5354_v63  ;;  %v1697_v16 = vsel %vm1695_vm3, %v1664_v7, %v5355_v5  ;;  %v625_v7 = vld [vmem:[#allocation2 + $0x10a] sm:$0xff] }
  0xd9   : > { %v5358_v6 = vpop.permute.xlu1 %5357 }
  0xda   : > { %v5360_v8 = vunpack.i.h.bf16 %v5358_v6  ;;  %v5359_v9 = vunpack.i.l.bf16 %v5358_v6  ;;  %v5373_v10 = vpop.permute.xlu0 %5372 }
  0xdb   : > { %5647 = vrot.lane.b32.xlu1 %v5646_v2, %s9113_s20  ;;  %v5374_v18 = vunpack.i.l.bf16 %v5373_v10  ;;  %v5375_v36 = vunpack.i.h.bf16 %v5373_v10 }
  0xdc   : > { %v1729_v15 = vsel %vm1728_vm4, %v1696_v13, %v5359_v9  ;;  %5662 = vrot.lane.b32.xlu0 %v5641_v37, %s9127_s12  ;;  %v1730_v22 = vsel %vm1728_vm4, %v1697_v16, %v5360_v8  ;;  %v626_v8 = vld [vmem:[#allocation2 + $0x112] sm:$0xff] }
  0xdd   : > { %v5368_v19 = vpop.permute.xlu1 %5367  ;;  %v1762_v30 = vsel %vm1761_vm5, %v1729_v15, %v5364_v14  ;;  %v1763_v41 = vsel %vm1761_vm5, %v1730_v22, %v5365_v17 }
  0xde   : > { %v5370_v23 = vunpack.i.h.bf16 %v5368_v19  ;;  %v5369_v24 = vunpack.i.l.bf16 %v5368_v19  ;;  %v5383_v27 = vpop.permute.xlu0 %5382  ;;  %v690_v19 = vld [vmem:[#allocation2 + $0x121] sm:$0xff] }
  0xdf   : > { %5657 = vrot.lane.b32.xlu1 %v5616_v33, %s9109_s16  ;;  %v5384_v49 = vunpack.i.l.bf16 %v5383_v27  ;;  %v5385_v62 = vunpack.i.h.bf16 %v5383_v27  ;;  %v7109_v34 = vpack.i.bf16 %v691_v20, %v690_v19 }
  0xe0   : > { %5672 = vrot.lane.b32.xlu0 %v7056_v55, %s9117_s10  ;;  %v1795_v31 = vsel %vm1794_vm6, %v1762_v30, %v5369_v24  ;;  %v1796_v33 = vsel %vm1794_vm6, %v1763_v41, %v5370_v23 }
  0xe1   : > { %v5378_v37 = vpop.permute.xlu1 %5377  ;;  %v1828_v38 = vsel %vm1827_vm7, %v1795_v31, %v5374_v18  ;;  %v1829_v59 = vsel %vm1827_vm7, %v1796_v33, %v5375_v36  ;;  %v658_v36 = vld [vmem:[#allocation2 + $0x120] sm:$0xff] }
  0xe2   : > { %v5379_v44 = vunpack.i.l.bf16 %v5378_v37  ;;  %v5393_v45 = vpop.permute.xlu0 %5392  ;;  %2039 = vmatmul.mubr.f32.vlgmr.msra.gmra.mrb[0].mxu0 %v1828_v38  ;;  %v5380_v51 = vunpack.i.h.bf16 %v5378_v37  ;;  %v659_v37 = vld [vmem:[#allocation2 + $0x128] sm:$0xff] }
  0xe3   : > { %5667 = vrot.lane.b32.xlu1 %v5646_v2, %s9115_s24  ;;  %5099 = vmatprep.mubr.msk.f32.mxu0 %vm324_vm0, %v6892_v48  ;;  %v5394_v63 = vunpack.i.l.bf16 %v5393_v45  ;;  %v7088_v48 = vpack.i.bf16 %v689_v57, %v688_v56  ;;  %v5395_v13 = vunpack.i.h.bf16 %v5393_v45 }
  0xe4   : > { %v1632_v54 = vsel %vm324_vm0, %v6866_v28, %v5379_v44  ;;  %5682 = vrot.lane.b32.xlu0 %v5681_v32, %s9113_s20  ;;  %v1633_v28 = vsel %vm324_vm0, %v6868_v29, %v5380_v51 }
  0xe5   : > { %v5388_v58 = vpop.permute.xlu1 %5387  ;;  %v1665_v2 = vsel %vm1662_vm2, %v1632_v54, %v5384_v49  ;;  %v1666_v14 = vsel %vm1662_vm2, %v1633_v28, %v5385_v62  ;;  %v5716_v54 = vpack.i.bf16 %v659_v37, %v658_v36 }
  0xe6   : > { %v5389_v60 = vunpack.i.l.bf16 %v5388_v58  ;;  %v5403_v61 = vpop.permute.xlu0 %5402  ;;  %2044 = vmatmul.mubr.f32.gmra.mrb[2].mxu0 %v1829_v59  ;;  %v5390_v3 = vunpack.i.h.bf16 %v5388_v58 }
  0xe7   : > { %5677 = vrot.lane.b32.xlu1 %v5676_v50, %s9111_s26  ;;  %5100 = vmatprep.mubr.msk.f32.mxu0 %vm324_vm0, %v6944_v11  ;;  %v5404_v15 = vunpack.i.l.bf16 %v5403_v61  ;;  %v5405_v23 = vunpack.i.h.bf16 %v5403_v61 }
  0xe8   : > { %v1698_v5 = vsel %vm1695_vm3, %v1665_v2, %v5389_v60  ;;  %5692 = vrot.lane.b32.xlu0 %v7056_v55, %s9109_s16  ;;  %v1699_v11 = vsel %vm1695_vm3, %v1666_v14, %v5390_v3  ;;  %v5711_v55 = vpack.i.bf16 %v626_v8, %v625_v7  ;;  %v660_v7 = vld [vmem:[#allocation2 + $0x138] sm:$0xff]  ;;  %v661_v8 = vld [vmem:[#allocation2 + $0x140] sm:$0xff] }
  0xe9   : > { %v5398_v6 = vpop.permute.xlu1 %5397  ;;  %v1731_v29 = vsel %vm1728_vm4, %v1698_v5, %v5394_v63  ;;  %v1732_v30 = vsel %vm1728_vm4, %v1699_v11, %v5395_v13  ;;  %v7140_v11 = vld [vmem:[#allocation2 + $0x122] sm:$0xff] }
  0xea   : > { %v5399_v9 = vunpack.i.l.bf16 %v5398_v6  ;;  %v5413_v10 = vpop.permute.xlu0 %5412  ;;  %v5400_v16 = vunpack.i.h.bf16 %v5398_v6 }
  0xeb   : > { %5687 = vrot.lane.b32.xlu1 %v7088_v48, %s9126_s13  ;;  %v5414_v24 = vunpack.i.l.bf16 %v5413_v10  ;;  %v5415_v38 = vunpack.i.h.bf16 %v5413_v10 }
  0xec   : > { %5702 = vrot.lane.b32.xlu0 %v5681_v32, %s9115_s24  ;;  %v1764_v17 = vsel %vm1761_vm5, %v1731_v29, %v5399_v9  ;;  %v1765_v35 = vsel %vm1761_vm5, %v1732_v30, %v5400_v16  ;;  %v5751_v29 = vpack.i.bf16 %v661_v8, %v660_v7  ;;  %v7142_v16 = vld [vmem:[#allocation2 + $0x12a] sm:$0xff]  ;;  %v692_v30 = vld [vmem:[#allocation2 + $0x139] sm:$0xff] }
  0xed   : > { %v5408_v18 = vpop.permute.xlu1 %5407  ;;  %v1797_v27 = vsel %vm1794_vm6, %v1764_v17, %v5404_v15  ;;  %v1634_v49 = vsel %vm324_vm0, %v6875_v42, %v5414_v24  ;;  %v1798_v51 = vsel %vm1794_vm6, %v1765_v35, %v5405_v23  ;;  %v5746_v23 = vpack.i.bf16 %v7142_v16, %v7140_v11 }
  0xee   : > { %v5409_v21 = vunpack.i.l.bf16 %v5408_v18  ;;  %v5423_v22 = vpop.permute.xlu0 %5422  ;;  %v5410_v31 = vunpack.i.h.bf16 %v5408_v18 }
  0xef   : > { %5697 = vrot.lane.b32.xlu1 %v5676_v50, %s9127_s12  ;;  %v5424_v50 = vunpack.i.l.bf16 %v5423_v22  ;;  %v5425_v58 = vunpack.i.h.bf16 %v5423_v22 }
  0xf0   : > { %5712 = vrot.lane.b32.xlu0 %v5711_v55, %s9111_s26  ;;  %v1830_v32 = vsel %vm1827_vm7, %v1797_v27, %v5409_v21  ;;  %v1831_v57 = vsel %vm1827_vm7, %v1798_v51, %v5410_v31  ;;  %v693_v31 = vld [vmem:[#allocation2 + $0x141] sm:$0xff] }
  0xf1   : > { %v5418_v41 = vpop.permute.xlu1 %5417  ;;  %2049 = vmatmul.mubr.f32.gmra.mrb[4].mxu0 %v1830_v32  ;;  %v7169_v51 = vld [vmem:[#allocation2 + $0x142] sm:$0xff] }
  0xf2   : > { %v5420_v44 = vunpack.i.h.bf16 %v5418_v41  ;;  %v5419_v45 = vunpack.i.l.bf16 %v5418_v41  ;;  %v5433_v33 = vpop.permute.xlu0 %5432  ;;  %5101 = vmatprep.mubr.msk.f32.mxu0 %vm324_vm0, %v6946_v12  ;;  %v1635_v12 = vsel %vm324_vm0, %v6877_v43, %v5415_v38 }
  0xf3   : > { %5707 = vrot.lane.b32.xlu1 %v7088_v48, %s9117_s10  ;;  %v5434_v63 = vunpack.i.l.bf16 %v5433_v33  ;;  %v5435_v43 = vunpack.i.h.bf16 %v5433_v33 }
  0xf4   : > { %v1667_v56 = vsel %vm1662_vm2, %v1634_v49, %v5419_v45  ;;  %5722 = vrot.lane.b32.xlu0 %v7109_v34, %s9126_s13  ;;  %v1668_v42 = vsel %vm1662_vm2, %v1635_v12, %v5420_v44  ;;  %v7158_v44 = vpack.i.bf16 %v693_v31, %v692_v30 }
  0xf5   : > { %v5428_v59 = vpop.permute.xlu1 %5427  ;;  %2054 = vmatmul.mubr.f32.gmra.mrb[6].mxu0 %v1831_v57  ;;  %v1700_v2 = vsel %vm1695_vm3, %v1667_v56, %v5424_v50  ;;  %v1701_v3 = vsel %vm1695_vm3, %v1668_v42, %v5425_v58  ;;  %v7167_v50 = vld [vmem:[#allocation2 + $0x13a] sm:$0xff] }
  0xf6   : > { %v5430_v60 = vunpack.i.h.bf16 %v5428_v59  ;;  %v5429_v61 = vunpack.i.l.bf16 %v5428_v59  ;;  %v5443_v62 = vpop.permute.xlu0 %5442  ;;  %5102 = vmatprep.mubr.msk.f32.mxu0 %vm324_vm0, %v6997_v39 }
  0xf7   : > { %5717 = vrot.lane.b32.xlu1 %v5716_v54, %s9113_s20  ;;  %v5444_v5 = vunpack.i.l.bf16 %v5443_v62 }
  0xf8   : > { %v1733_v28 = vsel %vm1728_vm4, %v1700_v2, %v5429_v61  ;;  %5732 = vrot.lane.b32.xlu0 %v5711_v55, %s9127_s12  ;;  %v1734_v9 = vsel %vm1728_vm4, %v1701_v3, %v5430_v60  ;;  %v5445_v55 = vunpack.i.h.bf16 %v5443_v62  ;;  %v694_v61 = vld [vmem:[#allocation2 + $0x151] sm:$0xff]  ;;  %v695_v62 = vld [vmem:[#allocation2 + $0x159] sm:$0xff] }
  0xf9   : > { %v5438_v6 = vpop.permute.xlu1 %5437  ;;  %v1766_v14 = vsel %vm1761_vm5, %v1733_v28, %v5434_v63  ;;  %v1767_v19 = vsel %vm1761_vm5, %v1734_v9, %v5435_v43  ;;  %v7185_v8 = vpack.i.bf16 %v695_v62, %v694_v61 }
  0xfa   : > { %v5440_v10 = vunpack.i.h.bf16 %v5438_v6  ;;  %v5439_v39 = vunpack.i.l.bf16 %v5438_v6  ;;  %v5453_v13 = vpop.permute.xlu0 %5452 }
  0xfb   : > { %5727 = vrot.lane.b32.xlu1 %v7088_v48, %s9109_s16  ;;  %v5454_v22 = vunpack.i.l.bf16 %v5453_v13  ;;  %v5455_v38 = vunpack.i.h.bf16 %v5453_v13 }
  0xfc   : > { %5742 = vrot.lane.b32.xlu0 %v7109_v34, %s9117_s10  ;;  %v1799_v15 = vsel %vm1794_vm6, %v1766_v14, %v5439_v39  ;;  %v1800_v21 = vsel %vm1794_vm6, %v1767_v19, %v5440_v10  ;;  %v7188_v10 = vld [vmem:[#allocation2 + $0x150] sm:$0xff]  ;;  %v7190_v39 = vld [vmem:[#allocation2 + $0x158] sm:$0xff] }
  0xfd   : > { %v5448_v17 = vpop.permute.xlu1 %5447  ;;  %v1832_v18 = vsel %vm1827_vm7, %v1799_v15, %v5444_v5  ;;  %v1833_v35 = vsel %vm1827_vm7, %v1800_v21, %v5445_v55 }
  0xfe   : > { %v5449_v20 = vunpack.i.l.bf16 %v5448_v17  ;;  %v5463_v48 = vpop.permute.xlu0 %5462  ;;  %2059 = vmatmul.mubr.f32.gmra.mrb[8].mxu0 %v1832_v18  ;;  %v5450_v24 = vunpack.i.h.bf16 %v5448_v17 }
  0xff   : > { %5737 = vrot.lane.b32.xlu1 %v5716_v54, %s9115_s24  ;;  %5103 = vmatprep.mubr.msk.f32.mxu0 %vm324_vm0, %v6999_v40  ;;  %v5464_v41 = vunpack.i.l.bf16 %v5463_v48  ;;  %v5465_v57 = vunpack.i.h.bf16 %v5463_v48 }
 0x100   : > { %v1636_v27 = vsel %vm324_vm0, %v6887_v46, %v5449_v20  ;;  %5752 = vrot.lane.b32.xlu0 %v5751_v29, %s9113_s20  ;;  %v1637_v46 = vsel %vm324_vm0, %v6889_v47, %v5450_v24  ;;  %v5786_v20 = vpack.i.bf16 %v7190_v39, %v7188_v10 }
 0x101   : > { %v5458_v32 = vpop.permute.xlu1 %5457  ;;  %v1669_v40 = vsel %vm1662_vm2, %v1636_v27, %v5454_v22  ;;  %v1670_v12 = vsel %vm1662_vm2, %v1637_v46, %v5455_v38 }
 0x102   : > { %v5459_v36 = vunpack.i.l.bf16 %v5458_v32  ;;  %v5473_v37 = vpop.permute.xlu0 %5472  ;;  %2064 = vmatmul.mubr.f32.gmra.mrb[10].mxu0 %v1833_v35  ;;  %v5460_v45 = vunpack.i.h.bf16 %v5458_v32 }
 0x103   : > { %5747 = vrot.lane.b32.xlu1 %v5746_v23, %s9111_s26  ;;  %5104 = vmatprep.mubr.msk.f32.mxu0 %vm324_vm0, %v7011_v52  ;;  %v5474_v52 = vunpack.i.l.bf16 %v5473_v37  ;;  %v5475_v28 = vunpack.i.h.bf16 %v5473_v37 }
 0x104   : > { %v1702_v33 = vsel %vm1695_vm3, %v1669_v40, %v5459_v36  ;;  %5762 = vrot.lane.b32.xlu0 %v7109_v34, %s9109_s16  ;;  %v1703_v58 = vsel %vm1695_vm3, %v1670_v12, %v5460_v45  ;;  %v5781_v34 = vpack.i.bf16 %v7169_v51, %v7167_v50  ;;  %v7217_v40 = vld [vmem:[#allocation2 + $0x170] sm:$0xff] }
 0x105   : > { %v5468_v49 = vpop.permute.xlu1 %5467  ;;  %v1735_v47 = vsel %vm1728_vm4, %v1702_v33, %v5464_v41  ;;  %v1736_v5 = vsel %vm1728_vm4, %v1703_v58, %v5465_v57  ;;  %v7215_v41 = vld [vmem:[#allocation2 + $0x168] sm:$0xff]  ;;  %v711_v57 = vld [vmem:[#allocation2 + $0x9a] sm:$0xff]  ;;  %v7228_v12 = vld [vmem:[#allocation2 + $0x152] sm:$0xff] }
 0x106   : > { %v5469_v54 = vunpack.i.l.bf16 %v5468_v49  ;;  %v5483_v56 = vpop.permute.xlu0 %5482  ;;  %v5470_v59 = vunpack.i.h.bf16 %v5468_v49  ;;  %v455_v58 = vld [vmem:[#allocation2 + $0x78] sm:$0xff] }
 0x107   : > { %5757 = vrot.lane.b32.xlu1 %v7158_v44, %s9126_s13  ;;  %v5484_v43 = vunpack.i.l.bf16 %v5483_v56  ;;  %v5485_v13 = vunpack.i.h.bf16 %v5483_v56  ;;  %v5821_v56 = vpack.i.bf16 %v7217_v40, %v7215_v41 }
 0x108   : > { %5772 = vrot.lane.b32.xlu0 %v5751_v29, %s9115_s24  ;;  %v1768_v42 = vsel %vm1761_vm5, %v1735_v47, %v5469_v54  ;;  %v1769_v9 = vsel %vm1761_vm5, %v1736_v5, %v5470_v59  ;;  %v712_v5 = vld [vmem:[#allocation2 + $0xaa] sm:$0xff] }
 0x109   : > { %v5478_v60 = vpop.permute.xlu1 %5477  ;;  %v1801_v3 = vsel %vm1794_vm6, %v1768_v42, %v5474_v52  ;;  %v1638_v17 = vsel %vm324_vm0, %v6972_v25, %v5484_v43  ;;  %v1802_v19 = vsel %vm1794_vm6, %v1769_v9, %v5475_v28  ;;  %v7230_v52 = vld [vmem:[#allocation2 + $0x15a] sm:$0xff]  ;;  %v696_v43 = vld [vmem:[#allocation2 + $0x169] sm:$0xff] }
 0x10a   : > { %v5479_v63 = vunpack.i.l.bf16 %v5478_v60  ;;  %v5493_v2 = vpop.permute.xlu0 %5492  ;;  %v5480_v6 = vunpack.i.h.bf16 %v5478_v60 }
 0x10b   : > { %5767 = vrot.lane.b32.xlu1 %v5746_v23, %s9127_s12  ;;  %v5494_v18 = vunpack.i.l.bf16 %v5493_v2  ;;  %v5495_v25 = vunpack.i.h.bf16 %v5493_v2 }
 0x10c   : > { %5782 = vrot.lane.b32.xlu0 %v5781_v34, %s9111_s26  ;;  %v1834_v7 = vsel %vm1827_vm7, %v1801_v3, %v5479_v63  ;;  %v1835_v21 = vsel %vm1827_vm7, %v1802_v19, %v5480_v6  ;;  %v5816_v63 = vpack.i.bf16 %v7230_v52, %v7228_v12  ;;  %v697_v3 = vld [vmem:[#allocation2 + $0x171] sm:$0xff]  ;;  %v456_v6 = vld [vmem:[#allocation2 + $0x80] sm:$0xff] }
 0x10d   : > { %v5488_v14 = vpop.permute.xlu1 %5487  ;;  %2069 = vmatmul.mubr.f32.gmra.mrb[12].mxu0 %v1834_v7 }
 0x10e   : > { %v5490_v15 = vunpack.i.h.bf16 %v5488_v14  ;;  %v5489_v29 = vunpack.i.l.bf16 %v5488_v14  ;;  %v5503_v55 = vpop.permute.xlu0 %5502  ;;  %5105 = vmatprep.mubr.msk.f32.mxu0 %vm324_vm0, %v7013_v53  ;;  %v1639_v53 = vsel %vm324_vm0, %v6974_v26, %v5485_v13 }
 0x10f   : > { %5777 = vrot.lane.b32.xlu1 %v7158_v44, %s9117_s10  ;;  %v5504_v31 = vunpack.i.l.bf16 %v5503_v55  ;;  %v5505_v26 = vunpack.i.h.bf16 %v5503_v55 }
 0x110   : > { %v1671_v48 = vsel %vm1662_vm2, %v1638_v17, %v5489_v29  ;;  %5792 = vrot.lane.b32.xlu0 %v7185_v8, %s9126_s13  ;;  %v1672_v23 = vsel %vm1662_vm2, %v1639_v53, %v5490_v15  ;;  %v7244_v17 = vpack.i.bf16 %v697_v3, %v696_v43  ;;  %v7253_v53 = vld [vmem:[#allocation2 + $0x172] sm:$0xff] }
 0x111   : > { %v5498_v22 = vpop.permute.xlu1 %5497  ;;  %2074 = vmatmul.mubr.f32.gmra.mrb[14].mxu0 %v1835_v21  ;;  %v1704_v32 = vsel %vm1695_vm3, %v1671_v48, %v5494_v18  ;;  %v1705_v36 = vsel %vm1695_vm3, %v1672_v23, %v5495_v25  ;;  %v7251_v21 = vld [vmem:[#allocation2 + $0x16a] sm:$0xff] }
 0x112   : > { %v5500_v24 = vunpack.i.h.bf16 %v5498_v22  ;;  %v5499_v27 = vunpack.i.l.bf16 %v5498_v22  ;;  %v5513_v30 = vpop.permute.xlu0 %5512  ;;  %5106 = vmatprep.mubr.msk.f32.mxu0 %vm324_vm0, %v7031_v4 }
 0x113   : > { %5787 = vrot.lane.b32.xlu1 %v5786_v20, %s9113_s20  ;;  %v5514_v37 = vunpack.i.l.bf16 %v5513_v30  ;;  %v5515_v47 = vunpack.i.h.bf16 %v5513_v30 }
 0x114   : > { %v1737_v35 = vsel %vm1728_vm4, %v1704_v32, %v5499_v27  ;;  %5802 = vrot.lane.b32.xlu0 %v5781_v34, %s9127_s12  ;;  %v1738_v4 = vsel %vm1728_vm4, %v1705_v36, %v5500_v24  ;;  %v698_v36 = vld [vmem:[#allocation2 + $0x181] sm:$0xff] }
 0x115   : > { %v5508_v38 = vpop.permute.xlu1 %5507  ;;  %v1770_v49 = vsel %vm1761_vm5, %v1737_v35, %v5504_v31  ;;  %v1771_v34 = vsel %vm1761_vm5, %v1738_v4, %v5505_v26 }
 0x116   : > { %v5510_v46 = vunpack.i.h.bf16 %v5508_v38  ;;  %v5509_v45 = vunpack.i.l.bf16 %v5508_v38  ;;  %v5523_v33 = vpop.permute.xlu0 %5522 }
 0x117   : > { %5797 = vrot.lane.b32.xlu1 %v7158_v44, %s9109_s16  ;;  %v5524_v62 = vunpack.i.l.bf16 %v5523_v33  ;;  %v5525_v15 = vunpack.i.h.bf16 %v5523_v33 }
 0x118   : > { %5812 = vrot.lane.b32.xlu0 %v7185_v8, %s9117_s10  ;;  %v1803_v54 = vsel %vm1794_vm6, %v1770_v49, %v5509_v45  ;;  %v1804_v61 = vsel %vm1794_vm6, %v1771_v34, %v5510_v46  ;;  %v713_v49 = vld [vmem:[#allocation2 + $0xb2] sm:$0xff]  ;;  %v667_v34 = vld [vmem:[#allocation2 + $0x188] sm:$0xff] }
 0x119   : > { %v5518_v59 = vpop.permute.xlu1 %5517  ;;  %v1836_v44 = vsel %vm1827_vm7, %v1803_v54, %v5514_v37  ;;  %v1837_v9 = vsel %vm1827_vm7, %v1804_v61, %v5515_v47  ;;  %v699_v37 = vld [vmem:[#allocation2 + $0x189] sm:$0xff]  ;;  %v458_v61 = vld [vmem:[#allocation2 + $0x98] sm:$0xff] }
 0x11a   : > { %v5519_v42 = vunpack.i.l.bf16 %v5518_v59  ;;  %v5533_v60 = vpop.permute.xlu0 %5532  ;;  %2079 = vmatmul.mubr.f32.gmra.mrb[16].mxu0 %v1836_v44  ;;  %v5520_v2 = vunpack.i.h.bf16 %v5518_v59  ;;  %v666_v44 = vld [vmem:[#allocation2 + $0x180] sm:$0xff] }
 0x11b   : > { %5807 = vrot.lane.b32.xlu1 %v5786_v20, %s9115_s24  ;;  %5107 = vmatprep.mubr.msk.f32.mxu0 %vm324_vm0, %v711_v57  ;;  %v5534_v29 = vunpack.i.l.bf16 %v5533_v60  ;;  %v5535_v23 = vunpack.i.h.bf16 %v5533_v60 }
 0x11c   : > { %v1640_v28 = vsel %vm324_vm0, %v455_v58, %v5519_v42  ;;  %5822 = vrot.lane.b32.xlu0 %v5821_v56, %s9113_s20  ;;  %v1641_v18 = vsel %vm324_vm0, %v456_v6, %v5520_v2  ;;  %v5861_v58 = vpack.i.bf16 %v699_v37, %v698_v36  ;;  %v714_v6 = vld [vmem:[#allocation2 + $0xc2] sm:$0xff] }
 0x11d   : > { %v5528_v7 = vpop.permute.xlu1 %5527  ;;  %v1673_v55 = vsel %vm1662_vm2, %v1640_v28, %v5524_v62  ;;  %v1674_v24 = vsel %vm1662_vm2, %v1641_v18, %v5525_v15 }
 0x11e   : > { %v5529_v13 = vunpack.i.l.bf16 %v5528_v7  ;;  %v5543_v14 = vpop.permute.xlu0 %5542  ;;  %2084 = vmatmul.mubr.f32.gmra.mrb[18].mxu0 %v1837_v9  ;;  %v5530_v19 = vunpack.i.h.bf16 %v5528_v7 }
 0x11f   : > { %5817 = vrot.lane.b32.xlu1 %v5816_v63, %s9111_s26  ;;  %5108 = vmatprep.mubr.msk.f32.mxu0 %vm324_vm0, %v712_v5  ;;  %v5544_v27 = vunpack.i.l.bf16 %v5543_v14  ;;  %v5545_v46 = vunpack.i.h.bf16 %v5543_v14  ;;  %v5856_v5 = vpack.i.bf16 %v667_v34, %v666_v44  ;;  %v460_v44 = vld [vmem:[#allocation2 + $0xb0] sm:$0xff] }
 0x120   : > { %v1706_v20 = vsel %vm1695_vm3, %v1673_v55, %v5529_v13  ;;  %5832 = vrot.lane.b32.xlu0 %v7185_v8, %s9109_s16  ;;  %v1707_v31 = vsel %vm1695_vm3, %v1674_v24, %v5530_v19  ;;  %v5851_v8 = vpack.i.bf16 %v7253_v53, %v7251_v21 }
 0x121   : > { %v5538_v48 = vpop.permute.xlu1 %5537  ;;  %v1739_v30 = vsel %vm1728_vm4, %v1706_v20, %v5534_v29  ;;  %v1740_v54 = vsel %vm1728_vm4, %v1707_v31, %v5535_v23 }
 0x122   : > { %v5539_v25 = vunpack.i.l.bf16 %v5538_v48  ;;  %v5553_v22 = vpop.permute.xlu0 %5552  ;;  %v5540_v32 = vunpack.i.h.bf16 %v5538_v48 }
 0x123   : > { %5827 = vrot.lane.b32.xlu1 %v7244_v17, %s9126_s13  ;;  %v5554_v45 = vunpack.i.l.bf16 %v5553_v22  ;;  %v5555_v42 = vunpack.i.h.bf16 %v5553_v22 }
 0x124   : > { %5842 = vrot.lane.b32.xlu0 %v5821_v56, %s9115_s24  ;;  %v1772_v35 = vsel %vm1761_vm5, %v1739_v30, %v5539_v25  ;;  %v457_v56 = vld [vmem:[#allocation2 + $0x90] sm:$0xff]  ;;  %v1773_v59 = vsel %vm1761_vm5, %v1740_v54, %v5540_v32 }
 0x125   : > { %v5548_v26 = vpop.permute.xlu1 %5547  ;;  %v1805_v33 = vsel %vm1794_vm6, %v1772_v35, %v5544_v27  ;;  %v1642_v28 = vsel %vm324_vm0, %v457_v56, %v5554_v45  ;;  %v1806_v3 = vsel %vm1794_vm6, %v1773_v59, %v5545_v46  ;;  %v1643_v13 = vsel %vm324_vm0, %v458_v61, %v5555_v42  ;;  %v668_v45 = vld [vmem:[#allocation2 + $0x198] sm:$0xff] }
 0x126   : > { %v5549_v38 = vunpack.i.l.bf16 %v5548_v26  ;;  %v5563_v4 = vpop.permute.xlu0 %5562  ;;  %v5550_v57 = vunpack.i.h.bf16 %v5548_v26  ;;  %v716_v59 = vld [vmem:[#allocation2 + $0xda] sm:$0xff] }
 0x127   : > { %5837 = vrot.lane.b32.xlu1 %v5816_v63, %s9127_s12  ;;  %v5564_v43 = vunpack.i.l.bf16 %v5563_v4  ;;  %v5565_v14 = vunpack.i.h.bf16 %v5563_v4 }
 0x128   : > { %5852 = vrot.lane.b32.xlu0 %v5851_v8, %s9111_s26  ;;  %v1838_v47 = vsel %vm1827_vm7, %v1805_v33, %v5549_v38  ;;  %v1839_v9 = vsel %vm1827_vm7, %v1806_v3, %v5550_v57  ;;  %v459_v38 = vld [vmem:[#allocation2 + $0xa8] sm:$0xff] }
 0x129   : > { %v5558_v60 = vpop.permute.xlu1 %5557  ;;  %2089 = vmatmul.mubr.f32.gmra.mrb[20].mxu0 %v1838_v47 }
 0x12a   : > { %v5560_v62 = vunpack.i.h.bf16 %v5558_v60  ;;  %v5559_v63 = vunpack.i.l.bf16 %v5558_v60  ;;  %v5573_v2 = vpop.permute.xlu0 %5572  ;;  %5109 = vmatprep.mubr.msk.f32.mxu0 %vm324_vm0, %v713_v49  ;;  %v7302_v60 = vld [vmem:[#allocation2 + $0x18a] sm:$0xff] }
 0x12b   : > { %5847 = vrot.lane.b32.xlu1 %v7244_v17, %s9117_s10  ;;  %v5574_v20 = vunpack.i.l.bf16 %v5573_v2  ;;  %v5575_v22 = vunpack.i.h.bf16 %v5573_v2 }
 0x12c   : > { %v1675_v7 = vsel %vm1662_vm2, %v1642_v28, %v5559_v63  ;;  %5862 = vrot.lane.b32.xlu0 %v5861_v58, %s9126_s13  ;;  %v1676_v29 = vsel %vm1662_vm2, %v1643_v13, %v5560_v62 }
 0x12d   : > { %v5568_v15 = vpop.permute.xlu1 %5567  ;;  %2094 = vmatmul.mubr.f32.gmra.mrb[22].mxu0 %v1839_v9  ;;  %v1708_v48 = vsel %vm1695_vm3, %v1675_v7, %v5564_v43  ;;  %v1709_v23 = vsel %vm1695_vm3, %v1676_v29, %v5565_v14  ;;  %v701_v9 = vld [vmem:[#allocation2 + $0x1a1] sm:$0xff] }
 0x12e   : > { %v5570_v55 = vunpack.i.h.bf16 %v5568_v15  ;;  %v5569_v18 = vunpack.i.l.bf16 %v5568_v15  ;;  %v5583_v19 = vpop.permute.xlu0 %5582  ;;  %5110 = vmatprep.mubr.msk.f32.mxu0 %vm324_vm0, %v714_v6  ;;  %v700_v6 = vld [vmem:[#allocation2 + $0x199] sm:$0xff] }
 0x12f   : > { %5857 = vrot.lane.b32.xlu1 %v5856_v5, %s9113_s20  ;;  %v5584_v24 = vunpack.i.l.bf16 %v5583_v19  ;;  %v5585_v37 = vunpack.i.h.bf16 %v5583_v19 }
 0x130   : > { %v1741_v25 = vsel %vm1728_vm4, %v1708_v48, %v5569_v18  ;;  %5872 = vrot.lane.b32.xlu0 %v5851_v8, %s9127_s12  ;;  %v1742_v30 = vsel %vm1728_vm4, %v1709_v23, %v5570_v55  ;;  %v715_v8 = vld [vmem:[#allocation2 + $0xca] sm:$0xff]  ;;  %v669_v48 = vld [vmem:[#allocation2 + $0x1a0] sm:$0xff] }
 0x131   : > { %v5578_v27 = vpop.permute.xlu1 %5577  ;;  %v1774_v26 = vsel %vm1761_vm5, %v1741_v25, %v5574_v20  ;;  %v1775_v33 = vsel %vm1761_vm5, %v1742_v30, %v5575_v22 }
 0x132   : > { %v5580_v31 = vunpack.i.h.bf16 %v5578_v27  ;;  %v5579_v32 = vunpack.i.l.bf16 %v5578_v27  ;;  %v5593_v35 = vpop.permute.xlu0 %5592 }
 0x133   : > { %5867 = vrot.lane.b32.xlu1 %v7244_v17, %s9109_s16  ;;  %v5594_v56 = vunpack.i.l.bf16 %v5593_v35  ;;  %v5595_v63 = vunpack.i.h.bf16 %v5593_v35 }
 0x134   : > { %5882 = vrot.lane.b32.xlu0 %v5861_v58, %s9117_s10  ;;  %v1807_v36 = vsel %vm1794_vm6, %v1774_v26, %v5579_v32  ;;  %v1808_v17 = vsel %vm1794_vm6, %v1775_v33, %v5580_v31  ;;  %v7299_v58 = vld [vmem:[#allocation2 + $0x182] sm:$0xff]  ;;  %s5174_s10 = sshll.u32 %s6615_s9, 12 }
 0x135   : > { %v5588_v4 = vpop.permute.xlu1 %5587  ;;  %v1840_v46 = vsel %vm1827_vm7, %v1807_v36, %v5584_v24  ;;  %v1841_v42 = vsel %vm1827_vm7, %v1808_v17, %v5585_v37  ;;  %v717_v32 = vld [vmem:[#allocation2 + $0xe2] sm:$0xff] }
 0x136   : > { %v5589_v49 = vunpack.i.l.bf16 %v5588_v4  ;;  %v5603_v54 = vpop.permute.xlu0 %5602  ;;  %2099 = vmatmul.mubr.f32.gmra.mrb[24].mxu0 %v1840_v46  ;;  %v5590_v57 = vunpack.i.h.bf16 %v5588_v4  ;;  %v461_v26 = vld [vmem:[#allocation2 + $0xc0] sm:$0xff]  ;;  %v462_v46 = vld [vmem:[#allocation2 + $0xc8] sm:$0xff] }
 0x137   : > { %5877 = vrot.lane.b32.xlu1 %v5856_v5, %s9115_s24  ;;  %5111 = vmatprep.mubr.msk.f32.mxu0 %vm324_vm0, %v715_v8  ;;  %v5604_v2 = vunpack.i.l.bf16 %v5603_v54  ;;  %v5605_v15 = vunpack.i.h.bf16 %v5603_v54  ;;  %s9131_s24 = smov 80  }
 0x138   : > { %v1644_v47 = vsel %vm324_vm0, %v459_v38, %v5589_v49  ;;  %1466 = vrot.lane.b32.xlu0 %v668_v45, %s9113_s20  ;;  %v1645_v43 = vsel %vm324_vm0, %v460_v44, %v5590_v57  ;;  %v718_v57 = vld [vmem:[#allocation2 + $0xf2] sm:$0xff] }
 0x139   : > { %v5598_v34 = vpop.permute.xlu1 %5597  ;;  %v1677_v28 = vsel %vm1662_vm2, %v1644_v47, %v5594_v56  ;;  %v1678_v29 = vsel %vm1662_vm2, %v1645_v43, %v5595_v63 }
 0x13a   : > { %v5599_v61 = vunpack.i.l.bf16 %v5598_v34  ;;  %v5613_v62 = vpop.permute.xlu0 %5612  ;;  %2104 = vmatmul.mubr.f32.gmra.mrb[26].mxu0 %v1841_v42  ;;  %v5600_v3 = vunpack.i.h.bf16 %v5598_v34 }
 0x13b   : > { %1338 = vrot.lane.b32.xlu1 %v7299_v58, %s9111_s26  ;;  %5112 = vmatprep.mubr.msk.f32.mxu0 %vm324_vm0, %v716_v59  ;;  %v5614_v55 = vunpack.i.l.bf16 %v5613_v62  ;;  %v5615_v27 = vunpack.i.h.bf16 %v5613_v62 }
 0x13c   : > { %v1710_v5 = vsel %vm1695_vm3, %v1677_v28, %v5599_v61  ;;  %1340 = vrot.lane.b32.xlu0 %v7302_v60, %s9111_s26  ;;  %v1711_v19 = vsel %vm1695_vm3, %v1678_v29, %v5600_v3 }
 0x13d   : > { %v5608_v7 = vpop.permute.xlu1 %5607  ;;  %v1743_v18 = vsel %vm1728_vm4, %v1710_v5, %v5604_v2  ;;  %v1744_v35 = vsel %vm1728_vm4, %v1711_v19, %v5605_v15  ;;  %v719_v19 = vld [vmem:[#allocation2 + $0xfa] sm:$0xff] }
 0x13e   : > { %v5609_v13 = vunpack.i.l.bf16 %v5608_v7  ;;  %v5623_v14 = vpop.permute.xlu0 %5622  ;;  %v5610_v20 = vunpack.i.h.bf16 %v5608_v7 }
 0x13f   : > { %1594 = vrot.lane.b32.xlu1 %v700_v6, %s9126_s13  ;;  %v5624_v30 = vunpack.i.l.bf16 %v5623_v14  ;;  %v5625_v38 = vunpack.i.h.bf16 %v5623_v14 }
 0x140   : > { %1596 = vrot.lane.b32.xlu0 %v701_v9, %s9126_s13  ;;  %v1776_v25 = vsel %vm1761_vm5, %v1743_v18, %v5609_v13  ;;  %v1777_v37 = vsel %vm1761_vm5, %v1744_v35, %v5610_v20 }
 0x141   : > { %v5618_v22 = vpop.permute.xlu1 %5617  ;;  %v1809_v31 = vsel %vm1794_vm6, %v1776_v25, %v5614_v55  ;;  %v1646_v54 = vsel %vm324_vm0, %v461_v26, %v5624_v30  ;;  %v1810_v56 = vsel %vm1794_vm6, %v1777_v37, %v5615_v27  ;;  %v1647_v44 = vsel %vm324_vm0, %v462_v46, %v5625_v38  ;;  %v720_v26 = vld [vmem:[#allocation2 + $0x10a] sm:$0xff] }
 0x142   : > { %v5619_v23 = vunpack.i.l.bf16 %v5618_v22  ;;  %v5633_v24 = vpop.permute.xlu0 %5632  ;;  %v5620_v36 = vunpack.i.h.bf16 %v5618_v22 }
 0x143   : > { %1468 = vrot.lane.b32.xlu1 %v669_v48, %s9113_s20  ;;  %v5634_v17 = vunpack.i.l.bf16 %v5633_v24  ;;  %v5635_v34 = vunpack.i.h.bf16 %v5633_v24  ;;  %v463_v48 = vld [vmem:[#allocation2 + $0xd8] sm:$0xff] }
 0x144   : > { %v1842_v8 = vsel %vm1827_vm7, %v1809_v31, %v5619_v23  ;;  %v1843_v59 = vsel %vm1827_vm7, %v1810_v56, %v5620_v36  ;;  %v464_v36 = vld [vmem:[#allocation2 + $0xe0] sm:$0xff] }
 0x145   : > { %v5628_v4 = vpop.permute.xlu1 %5627  ;;  %2109 = vmatmul.mubr.f32.gmra.mrb[28].mxu0 %v1842_v8 }
 0x146   : > { %v5630_v45 = vunpack.i.h.bf16 %v5628_v4  ;;  %v5629_v33 = vunpack.i.l.bf16 %v5628_v4  ;;  %v5643_v49 = vpop.permute.xlu0 %5642  ;;  %5113 = vmatprep.mubr.msk.f32.mxu0 %vm324_vm0, %v717_v32 }
 0x147   : > { %v5644_v28 = vunpack.i.l.bf16 %v5643_v49  ;;  %v5645_v5 = vunpack.i.h.bf16 %v5643_v49 }
 0x148   : > { %v1679_v47 = vsel %vm1662_vm2, %v1646_v54, %v5629_v33  ;;  %v1680_v61 = vsel %vm1662_vm2, %v1647_v44, %v5630_v45 }
 0x149   : > { %v5638_v42 = vpop.permute.xlu1 %5637  ;;  %2114 = vmatmul.mubr.f32.gmra.mrb[30].mxu0 %v1843_v59  ;;  %v1712_v43 = vsel %vm1695_vm3, %v1679_v47, %v5634_v17  ;;  %v1713_v6 = vsel %vm1695_vm3, %v1680_v61, %v5635_v34 }
 0x14a   : > { %v5640_v62 = vunpack.i.h.bf16 %v5638_v42  ;;  %v5639_v63 = vunpack.i.l.bf16 %v5638_v42  ;;  %v5653_v2 = vpop.permute.xlu0 %5652  ;;  %5114 = vmatprep.mubr.msk.f32.mxu0 %vm324_vm0, %v718_v57 }
 0x14b   : > { %v5654_v7 = vunpack.i.l.bf16 %v5653_v2  ;;  %v5655_v20 = vunpack.i.h.bf16 %v5653_v2 }
 0x14c   : > { %v1745_v3 = vsel %vm1728_vm4, %v1712_v43, %v5639_v63  ;;  %v1746_v13 = vsel %vm1728_vm4, %v1713_v6, %v5640_v62 }
 0x14d   : > { %v5648_v9 = vpop.permute.xlu1 %5647  ;;  %v1778_v55 = vsel %vm1761_vm5, %v1745_v3, %v5644_v28  ;;  %v1779_v23 = vsel %vm1761_vm5, %v1746_v13, %v5645_v5  ;;  %v465_v13 = vld [vmem:[#allocation2 + $0xf0] sm:$0xff] }
 0x14e   : > { %v5650_v14 = vunpack.i.h.bf16 %v5648_v9  ;;  %v5649_v15 = vunpack.i.l.bf16 %v5648_v9  ;;  %v5663_v29 = vpop.permute.xlu0 %5662 }
 0x14f   : > { %v5664_v31 = vunpack.i.l.bf16 %v5663_v29  ;;  %v5665_v46 = vunpack.i.h.bf16 %v5663_v29 }
 0x150   : > { %v1811_v18 = vsel %vm1794_vm6, %v1778_v55, %v5649_v15  ;;  %v1812_v30 = vsel %vm1794_vm6, %v1779_v23, %v5650_v14 }
 0x151   : > { %v5658_v25 = vpop.permute.xlu1 %5657  ;;  %v1844_v22 = vsel %vm1827_vm7, %v1811_v18, %v5654_v7  ;;  %v1845_v37 = vsel %vm1827_vm7, %v1812_v30, %v5655_v20  ;;  %v721_v7 = vld [vmem:[#allocation2 + $0x112] sm:$0xff] }
 0x152   : > { %v5659_v24 = vunpack.i.l.bf16 %v5658_v25  ;;  %v5673_v27 = vpop.permute.xlu0 %5672  ;;  %2119 = vmatmul.mubr.f32.gmra.mrb[32].mxu0 %v1844_v22  ;;  %v5660_v32 = vunpack.i.h.bf16 %v5658_v25 }
 0x153   : > { %5115 = vmatprep.mubr.msk.f32.mxu0 %vm324_vm0, %v719_v19  ;;  %v5674_v45 = vunpack.i.l.bf16 %v5673_v27  ;;  %v5675_v59 = vunpack.i.h.bf16 %v5673_v27  ;;  %v466_v19 = vld [vmem:[#allocation2 + $0xf8] sm:$0xff] }
 0x154   : > { %v1648_v35 = vsel %vm324_vm0, %v463_v48, %v5659_v24  ;;  %v1649_v49 = vsel %vm324_vm0, %v464_v36, %v5660_v32 }
 0x155   : > { %v5668_v8 = vpop.permute.xlu1 %5667  ;;  %v1681_v33 = vsel %vm1662_vm2, %v1648_v35, %v5664_v31  ;;  %v1682_v44 = vsel %vm1662_vm2, %v1649_v49, %v5665_v46 }
 0x156   : > { %v5669_v38 = vunpack.i.l.bf16 %v5668_v8  ;;  %v5683_v4 = vpop.permute.xlu0 %5682  ;;  %2124 = vmatmul.mubr.f32.gmra.mrb[34].mxu0 %v1845_v37  ;;  %v5670_v54 = vunpack.i.h.bf16 %v5668_v8 }
 0x157   : > { %5116 = vmatprep.mubr.msk.f32.mxu0 %vm324_vm0, %v720_v26  ;;  %v5684_v34 = vunpack.i.l.bf16 %v5683_v4  ;;  %v5685_v3 = vunpack.i.h.bf16 %v5683_v4 }
 0x158   : > { %v1714_v17 = vsel %vm1695_vm3, %v1681_v33, %v5669_v38  ;;  %v1715_v61 = vsel %vm1695_vm3, %v1682_v44, %v5670_v54 }
 0x159   : > { %v5678_v56 = vpop.permute.xlu1 %5677  ;;  %v1747_v42 = vsel %vm1728_vm4, %v1714_v17, %v5674_v45  ;;  %v1748_v9 = vsel %vm1728_vm4, %v1715_v61, %v5675_v59 }
 0x15a   : > { %v5679_v57 = vunpack.i.l.bf16 %v5678_v56  ;;  %v5693_v47 = vpop.permute.xlu0 %5692  ;;  %v5680_v62 = vunpack.i.h.bf16 %v5678_v56 }
 0x15b   : > { %v5694_v5 = vunpack.i.l.bf16 %v5693_v47  ;;  %v5695_v55 = vunpack.i.h.bf16 %v5693_v47 }
 0x15c   : > { %v1780_v63 = vsel %vm1761_vm5, %v1747_v42, %v5679_v57  ;;  %v1781_v29 = vsel %vm1761_vm5, %v1748_v9, %v5680_v62 }
 0x15d   : > { %v5688_v2 = vpop.permute.xlu1 %5687  ;;  %v1813_v6 = vsel %vm1794_vm6, %v1780_v63, %v5684_v34  ;;  %v1650_v22 = vsel %vm324_vm0, %v465_v13, %v5694_v5  ;;  %v1814_v24 = vsel %vm1794_vm6, %v1781_v29, %v5685_v3  ;;  %v1651_v31 = vsel %vm324_vm0, %v466_v19, %v5695_v55  ;;  %v467_v34 = vld [vmem:[#allocation2 + $0x108] sm:$0xff] }
 0x15e   : > { %v5689_v28 = vunpack.i.l.bf16 %v5688_v2  ;;  %v5703_v43 = vpop.permute.xlu0 %5702  ;;  %v5690_v14 = vunpack.i.h.bf16 %v5688_v2 }
 0x15f   : > { %v5704_v23 = vunpack.i.l.bf16 %v5703_v43  ;;  %v5705_v32 = vunpack.i.h.bf16 %v5703_v43 }
 0x160   : > { %v1846_v15 = vsel %vm1827_vm7, %v1813_v6, %v5689_v28  ;;  %v1847_v30 = vsel %vm1827_vm7, %v1814_v24, %v5690_v14  ;;  %v468_v6 = vld [vmem:[#allocation2 + $0x110] sm:$0xff] }
 0x161   : > { %v5698_v18 = vpop.permute.xlu1 %5697  ;;  %2129 = vmatmul.mubr.f32.gmra.mrb[36].mxu0 %v1846_v15 }
 0x162   : > { %v5700_v20 = vunpack.i.h.bf16 %v5698_v18  ;;  %v5699_v48 = vunpack.i.l.bf16 %v5698_v18  ;;  %v5713_v25 = vpop.permute.xlu0 %5712  ;;  %5117 = vmatprep.mubr.msk.f32.mxu0 %vm324_vm0, %v721_v7 }
 0x163   : > { %v5714_v38 = vunpack.i.l.bf16 %v5713_v25  ;;  %v5715_v45 = vunpack.i.h.bf16 %v5713_v25 }
 0x164   : > { %v1683_v27 = vsel %vm1662_vm2, %v1650_v22, %v5699_v48  ;;  %v1684_v26 = vsel %vm1662_vm2, %v1651_v31, %v5700_v20 }
 0x165   : > { %v5708_v35 = vpop.permute.xlu1 %5707  ;;  %2134 = vmatmul.mubr.f32.gmra.mrb[38].mxu0 %v1847_v30  ;;  %v1716_v4 = vsel %vm1695_vm3, %v1683_v27, %v5704_v23  ;;  %v1717_v33 = vsel %vm1695_vm3, %v1684_v26, %v5705_v32 }
 0x166   : > { %v5710_v36 = vunpack.i.h.bf16 %v5708_v35  ;;  %v5709_v8 = vunpack.i.l.bf16 %v5708_v35  ;;  %v5723_v37 = vpop.permute.xlu0 %5722  ;;  %5118 = vmatprep.mubr.msk.f32.mxu0 %vm324_vm0, %v7140_v11 }
 0x167   : > { %v5724_v49 = vunpack.i.l.bf16 %v5723_v37  ;;  %v5725_v11 = vunpack.i.h.bf16 %v5723_v37 }
 0x168   : > { %v1749_v46 = vsel %vm1728_vm4, %v1716_v4, %v5709_v8  ;;  %v1750_v17 = vsel %vm1728_vm4, %v1717_v33, %v5710_v36  ;;  %v469_v4 = vld [vmem:[#allocation2 + $0x120] sm:$0xff] }
 0x169   : > { %v5718_v54 = vpop.permute.xlu1 %5717  ;;  %v1782_v59 = vsel %vm1761_vm5, %v1749_v46, %v5714_v38  ;;  %v1783_v62 = vsel %vm1761_vm5, %v1750_v17, %v5715_v45  ;;  %v470_v17 = vld [vmem:[#allocation2 + $0x128] sm:$0xff] }
 0x16a   : > { %v5720_v56 = vunpack.i.h.bf16 %v5718_v54  ;;  %v5719_v57 = vunpack.i.l.bf16 %v5718_v54  ;;  %v5733_v47 = vpop.permute.xlu0 %5732 }
 0x16b   : > { %v5734_v43 = vunpack.i.l.bf16 %v5733_v47  ;;  %v5735_v15 = vunpack.i.h.bf16 %v5733_v47 }
 0x16c   : > { %v1815_v44 = vsel %vm1794_vm6, %v1782_v59, %v5719_v57  ;;  %v1816_v28 = vsel %vm1794_vm6, %v1783_v62, %v5720_v56 }
 0x16d   : > { %v5728_v42 = vpop.permute.xlu1 %5727  ;;  %v1848_v61 = vsel %vm1827_vm7, %v1815_v44, %v5724_v49  ;;  %v1849_v9 = vsel %vm1827_vm7, %v1816_v28, %v5725_v11 }
 0x16e   : > { %v5729_v63 = vunpack.i.l.bf16 %v5728_v42  ;;  %v5743_v2 = vpop.permute.xlu0 %5742  ;;  %2139 = vmatmul.mubr.f32.gmra.mrb[40].mxu0 %v1848_v61  ;;  %v5730_v3 = vunpack.i.h.bf16 %v5728_v42 }
 0x16f   : > { %5119 = vmatprep.mubr.msk.f32.mxu0 %vm324_vm0, %v7142_v16  ;;  %v5744_v29 = vunpack.i.l.bf16 %v5743_v2  ;;  %v5745_v22 = vunpack.i.h.bf16 %v5743_v2 }
 0x170   : > { %v1652_v5 = vsel %vm324_vm0, %v467_v34, %v5729_v63  ;;  %v1653_v18 = vsel %vm324_vm0, %v468_v6, %v5730_v3 }
 0x171   : > { %v5738_v7 = vpop.permute.xlu1 %5737  ;;  %v1685_v55 = vsel %vm1662_vm2, %v1652_v5, %v5734_v43  ;;  %v1686_v23 = vsel %vm1662_vm2, %v1653_v18, %v5735_v15 }
 0x172   : > { %v5739_v13 = vunpack.i.l.bf16 %v5738_v7  ;;  %v5753_v14 = vpop.permute.xlu0 %5752  ;;  %2144 = vmatmul.mubr.f32.gmra.mrb[42].mxu0 %v1849_v9  ;;  %v5740_v16 = vunpack.i.h.bf16 %v5738_v7 }
 0x173   : > { %5120 = vmatprep.mubr.msk.f32.mxu0 %vm324_vm0, %v7167_v50  ;;  %v5754_v24 = vunpack.i.l.bf16 %v5753_v14  ;;  %v5755_v36 = vunpack.i.h.bf16 %v5753_v14 }
 0x174   : > { %v1718_v19 = vsel %vm1695_vm3, %v1685_v55, %v5739_v13  ;;  %v1719_v30 = vsel %vm1695_vm3, %v1686_v23, %v5740_v16 }
 0x175   : > { %v5748_v20 = vpop.permute.xlu1 %5747  ;;  %v1751_v27 = vsel %vm1728_vm4, %v1718_v19, %v5744_v29  ;;  %v1752_v38 = vsel %vm1728_vm4, %v1719_v30, %v5745_v22 }
 0x176   : > { %v5749_v48 = vunpack.i.l.bf16 %v5748_v20  ;;  %v5763_v25 = vpop.permute.xlu0 %5762  ;;  %v5750_v31 = vunpack.i.h.bf16 %v5748_v20  ;;  %v471_v20 = vld [vmem:[#allocation2 + $0x138] sm:$0xff] }
 0x177   : > { %v5764_v8 = vunpack.i.l.bf16 %v5763_v25  ;;  %v5765_v49 = vunpack.i.h.bf16 %v5763_v25 }
 0x178   : > { %v1784_v32 = vsel %vm1761_vm5, %v1751_v27, %v5749_v48  ;;  %v1785_v33 = vsel %vm1761_vm5, %v1752_v38, %v5750_v31 }
 0x179   : > { %v5758_v50 = vpop.permute.xlu1 %5757  ;;  %v1817_v37 = vsel %vm1794_vm6, %v1784_v32, %v5754_v24  ;;  %v1654_v59 = vsel %vm324_vm0, %v469_v4, %v5764_v8  ;;  %v1818_v11 = vsel %vm1794_vm6, %v1785_v33, %v5755_v36  ;;  %v1655_v61 = vsel %vm324_vm0, %v470_v17, %v5765_v49 }
 0x17a   : > { %v5759_v35 = vunpack.i.l.bf16 %v5758_v50  ;;  %v5773_v26 = vpop.permute.xlu0 %5772  ;;  %v5760_v46 = vunpack.i.h.bf16 %v5758_v50  ;;  %v472_v50 = vld [vmem:[#allocation2 + $0x140] sm:$0xff] }
 0x17b   : > { %v5774_v44 = vunpack.i.l.bf16 %v5773_v26  ;;  %v5775_v62 = vunpack.i.h.bf16 %v5773_v26 }
 0x17c   : > { %v1850_v45 = vsel %vm1827_vm7, %v1817_v37, %v5759_v35  ;;  %v1851_v42 = vsel %vm1827_vm7, %v1818_v11, %v5760_v46 }
 0x17d   : > { %v5768_v54 = vpop.permute.xlu1 %5767  ;;  %2149 = vmatmul.mubr.f32.gmra.mrb[44].mxu0 %v1850_v45 }
 0x17e   : > { %v5770_v56 = vunpack.i.h.bf16 %v5768_v54  ;;  %v5769_v57 = vunpack.i.l.bf16 %v5768_v54  ;;  %v5783_v47 = vpop.permute.xlu0 %5782  ;;  %5121 = vmatprep.mubr.msk.f32.mxu0 %vm324_vm0, %v7169_v51 }
 0x17f   : > { %v5784_v51 = vunpack.i.l.bf16 %v5783_v47  ;;  %v5785_v7 = vunpack.i.h.bf16 %v5783_v47 }
 0x180   : > { %v1687_v34 = vsel %vm1662_vm2, %v1654_v59, %v5769_v57  ;;  %v1688_v2 = vsel %vm1662_vm2, %v1655_v61, %v5770_v56 }
 0x181   : > { %v5778_v63 = vpop.permute.xlu1 %5777  ;;  %2154 = vmatmul.mubr.f32.gmra.mrb[46].mxu0 %v1851_v42  ;;  %v1720_v5 = vsel %vm1695_vm3, %v1687_v34, %v5774_v44  ;;  %v1721_v9 = vsel %vm1695_vm3, %v1688_v2, %v5775_v62 }
 0x182   : > { %v5780_v28 = vunpack.i.h.bf16 %v5778_v63  ;;  %v5779_v43 = vunpack.i.l.bf16 %v5778_v63  ;;  %v5793_v3 = vpop.permute.xlu0 %5792  ;;  %5122 = vmatprep.mubr.msk.f32.mxu0 %vm324_vm0, %v7228_v12 }
 0x183   : > { %v5794_v13 = vunpack.i.l.bf16 %v5793_v3  ;;  %v5795_v12 = vunpack.i.h.bf16 %v5793_v3 }
 0x184   : > { %v1753_v6 = vsel %vm1728_vm4, %v1720_v5, %v5779_v43  ;;  %v1754_v15 = vsel %vm1728_vm4, %v1721_v9, %v5780_v28 }
 0x185   : > { %v5788_v14 = vpop.permute.xlu1 %5787  ;;  %v1786_v16 = vsel %vm1761_vm5, %v1753_v6, %v5784_v51  ;;  %v1787_v22 = vsel %vm1761_vm5, %v1754_v15, %v5785_v7 }
 0x186   : > { %v5790_v29 = vunpack.i.h.bf16 %v5788_v14  ;;  %v5789_v55 = vunpack.i.l.bf16 %v5788_v14  ;;  %v5803_v18 = vpop.permute.xlu0 %5802 }
 0x187   : > { %v5804_v30 = vunpack.i.l.bf16 %v5803_v18  ;;  %v5805_v37 = vunpack.i.h.bf16 %v5803_v18 }
 0x188   : > { %v1819_v19 = vsel %vm1794_vm6, %v1786_v16, %v5789_v55  ;;  %v1820_v27 = vsel %vm1794_vm6, %v1787_v22, %v5790_v29 }
 0x189   : > { %v5798_v48 = vpop.permute.xlu1 %5797  ;;  %v1852_v25 = vsel %vm1827_vm7, %v1819_v19, %v5794_v13  ;;  %v1853_v26 = vsel %vm1827_vm7, %v1820_v27, %v5795_v12 }
 0x18a   : > { %v5799_v23 = vunpack.i.l.bf16 %v5798_v48  ;;  %v5813_v24 = vpop.permute.xlu0 %5812  ;;  %2159 = vmatmul.mubr.f32.gmra.mrb[48].mxu0 %v1852_v25  ;;  %v5800_v31 = vunpack.i.h.bf16 %v5798_v48 }
 0x18b   : > { %5123 = vmatprep.mubr.msk.f32.mxu0 %vm324_vm0, %v7230_v52  ;;  %v5814_v38 = vunpack.i.l.bf16 %v5813_v24  ;;  %v5815_v17 = vunpack.i.h.bf16 %v5813_v24 }
 0x18c   : > { %v1656_v32 = vsel %vm324_vm0, %v471_v20, %v5799_v23  ;;  %v1657_v46 = vsel %vm324_vm0, %v472_v50, %v5800_v31 }
 0x18d   : > { %v5808_v35 = vpop.permute.xlu1 %5807  ;;  %v1689_v4 = vsel %vm1662_vm2, %v1656_v32, %v5804_v30  ;;  %v1690_v56 = vsel %vm1662_vm2, %v1657_v46, %v5805_v37 }
 0x18e   : > { %v5809_v36 = vunpack.i.l.bf16 %v5808_v35  ;;  %v5823_v8 = vpop.permute.xlu0 %5822  ;;  %2164 = vmatmul.mubr.f32.gmra.mrb[50].mxu0 %v1853_v26  ;;  %v5810_v52 = vunpack.i.h.bf16 %v5808_v35 }
 0x18f   : > { %5124 = vmatprep.mubr.msk.f32.mxu0 %vm324_vm0, %v7251_v21  ;;  %v5824_v57 = vunpack.i.l.bf16 %v5823_v8  ;;  %v5825_v61 = vunpack.i.h.bf16 %v5823_v8 }
 0x190   : > { %v1722_v45 = vsel %vm1695_vm3, %v1689_v4, %v5809_v36  ;;  %v1723_v59 = vsel %vm1695_vm3, %v1690_v56, %v5810_v52 }
 0x191   : > { %v5818_v33 = vpop.permute.xlu1 %5817  ;;  %v1755_v47 = vsel %vm1728_vm4, %v1722_v45, %v5814_v38  ;;  %v1756_v2 = vsel %vm1728_vm4, %v1723_v59, %v5815_v17 }
 0x192   : > { %v5819_v49 = vunpack.i.l.bf16 %v5818_v33  ;;  %v5833_v54 = vpop.permute.xlu0 %5832  ;;  %v5820_v44 = vunpack.i.h.bf16 %v5818_v33 }
 0x193   : > { %v5834_v62 = vunpack.i.l.bf16 %v5833_v54  ;;  %v5835_v51 = vunpack.i.h.bf16 %v5833_v54 }
 0x194   : > { %v1788_v11 = vsel %vm1761_vm5, %v1755_v47, %v5819_v49  ;;  %v1789_v3 = vsel %vm1761_vm5, %v1756_v2, %v5820_v44  ;;  %v732_v49 = vld [vmem:[#allocation2 + $0x19a] sm:$0xff] }
 0x195   : > { %v5828_v21 = vpop.permute.xlu1 %5827  ;;  %v1821_v63 = vsel %vm1794_vm6, %v1788_v11, %v5824_v57  ;;  %v1658_v13 = vsel %vm324_vm0, %v7188_v10, %v5834_v62  ;;  %v1822_v15 = vsel %vm1794_vm6, %v1789_v3, %v5825_v61  ;;  %v1659_v18 = vsel %vm324_vm0, %v7190_v39, %v5835_v51 }
 0x196   : > { %v5829_v34 = vunpack.i.l.bf16 %v5828_v21  ;;  %v5843_v42 = vpop.permute.xlu0 %5842  ;;  %v5830_v28 = vunpack.i.h.bf16 %v5828_v21 }
 0x197   : > { %v5844_v14 = vunpack.i.l.bf16 %v5843_v42  ;;  %v5845_v16 = vunpack.i.h.bf16 %v5843_v42 }
 0x198   : > { %v1854_v43 = vsel %vm1827_vm7, %v1821_v63, %v5829_v34  ;;  %v1855_v55 = vsel %vm1827_vm7, %v1822_v15, %v5830_v28 }
 0x199   : > { %v5838_v5 = vpop.permute.xlu1 %5837  ;;  %2169 = vmatmul.mubr.f32.gmra.mrb[52].mxu0 %v1854_v43  ;;  %v733_v43 = vld [vmem:[#allocation2 + $0x1a2] sm:$0xff] }
 0x19a   : > { %v5840_v6 = vunpack.i.h.bf16 %v5838_v5  ;;  %v5839_v7 = vunpack.i.l.bf16 %v5838_v5  ;;  %v5853_v9 = vpop.permute.xlu0 %5852  ;;  %5125 = vmatprep.mubr.msk.f32.mxu0 %vm324_vm0, %v7253_v53 }
 0x19b   : > { %v5854_v10 = vunpack.i.l.bf16 %v5853_v9  ;;  %v5855_v23 = vunpack.i.h.bf16 %v5853_v9 }
 0x19c   : > { %v1691_v29 = vsel %vm1662_vm2, %v1658_v13, %v5839_v7  ;;  %v1692_v12 = vsel %vm1662_vm2, %v1659_v18, %v5840_v6 }
 0x19d   : > { %v5848_v19 = vpop.permute.xlu1 %5847  ;;  %2174 = vmatmul.mubr.f32.gmra.mrb[54].mxu0 %v1855_v55  ;;  %v1724_v25 = vsel %vm1695_vm3, %v1691_v29, %v5844_v14  ;;  %v1725_v24 = vsel %vm1695_vm3, %v1692_v12, %v5845_v16 }
 0x19e   : > { %v5850_v20 = vunpack.i.h.bf16 %v5848_v19  ;;  %v5849_v53 = vunpack.i.l.bf16 %v5848_v19  ;;  %v5863_v48 = vpop.permute.xlu0 %5862  ;;  %5126 = vmatprep.mubr.msk.f32.mxu0 %vm324_vm0, %v7299_v58 }
 0x19f   : > { %v5864_v39 = vunpack.i.l.bf16 %v5863_v48  ;;  %v5865_v58 = vunpack.i.h.bf16 %v5863_v48 }
 0x1a0   : > { %v1757_v22 = vsel %vm1728_vm4, %v1724_v25, %v5849_v53  ;;  %v1758_v30 = vsel %vm1728_vm4, %v1725_v24, %v5850_v20 }
 0x1a1   : > { %v5858_v27 = vpop.permute.xlu1 %5857  ;;  %v1790_v35 = vsel %vm1761_vm5, %v1757_v22, %v5854_v10  ;;  %v1791_v37 = vsel %vm1761_vm5, %v1758_v30, %v5855_v23 }
 0x1a2   : > { %v5860_v31 = vunpack.i.h.bf16 %v5858_v27  ;;  %v5859_v32 = vunpack.i.l.bf16 %v5858_v27  ;;  %v5873_v50 = vpop.permute.xlu0 %5872 }
 0x1a3   : > { %v5874_v52 = vunpack.i.l.bf16 %v5873_v50  ;;  %v5875_v57 = vunpack.i.h.bf16 %v5873_v50 }
 0x1a4   : > { %v1823_v26 = vsel %vm1794_vm6, %v1790_v35, %v5859_v32  ;;  %v1824_v46 = vsel %vm1794_vm6, %v1791_v37, %v5860_v31 }
 0x1a5   : > { %v5868_v36 = vpop.permute.xlu1 %5867  ;;  %v1856_v8 = vsel %vm1827_vm7, %v1823_v26, %v5864_v39  ;;  %v1857_v56 = vsel %vm1827_vm7, %v1824_v46, %v5865_v58 }
 0x1a6   : > { %v5869_v38 = vunpack.i.l.bf16 %v5868_v36  ;;  %v5883_v4 = vpop.permute.xlu0 %5882  ;;  %2179 = vmatmul.mubr.f32.gmra.mrb[56].mxu0 %v1856_v8  ;;  %v5870_v45 = vunpack.i.h.bf16 %v5868_v36 }
 0x1a7   : > { %5127 = vmatprep.mubr.msk.f32.mxu0 %vm324_vm0, %v7302_v60  ;;  %v5884_v54 = vunpack.i.l.bf16 %v5883_v4  ;;  %v5885_v42 = vunpack.i.h.bf16 %v5883_v4 }
 0x1a8   : > { %v1660_v33 = vsel %vm324_vm0, %v7215_v41, %v5869_v38  ;;  %v1661_v44 = vsel %vm324_vm0, %v7217_v40, %v5870_v45 }
 0x1a9   : > { %v5878_v17 = vpop.permute.xlu1 %5877  ;;  %v1693_v21 = vsel %vm1662_vm2, %v1660_v33, %v5874_v52  ;;  %v1694_v62 = vsel %vm1662_vm2, %v1661_v44, %v5875_v57 }
 0x1aa   : > { %v5879_v47 = vunpack.i.l.bf16 %v5878_v17  ;;  %v1467_v59 = vpop.permute.xlu0 %1466  ;;  %2184 = vmatmul.mubr.f32.gmra.mrb[58].mxu0 %v1857_v56  ;;  %v5880_v11 = vunpack.i.h.bf16 %v5878_v17 }
 0x1ab   : > { %5128 = vmatprep.mubr.msk.f32.mxu0 %vm324_vm0, %v732_v49 }
 0x1ac   : > { %v1726_v60 = vsel %vm1695_vm3, %v1693_v21, %v5879_v47  ;;  %v1727_v63 = vsel %vm1695_vm3, %v1694_v62, %v5880_v11 }
 0x1ad   : > { %v1339_v41 = vpop.permute.xlu1 %1338  ;;  %v1759_v34 = vsel %vm1728_vm4, %v1726_v60, %v5884_v54  ;;  %v1760_v3 = vsel %vm1728_vm4, %v1727_v63, %v5885_v42 }
 0x1ae   : > { %v1792_v61 = vsel %vm1761_vm5, %v1759_v34, %v1339_v41  ;;  %v1341_v2 = vpop.permute.xlu0 %1340 }
 0x1af   : > { %v1825_v40 = vsel %vm1794_vm6, %v1792_v61, %v1467_v59  ;;  %v1793_v6 = vsel %vm1761_vm5, %v1760_v3, %v1341_v2  ;;  %v2199_v3 = vld [vmem:[%s9101_s7] sm:$0xff] }
 0x1b1   : > { %v1595_v28 = vpop.permute.xlu1 %1594 }
 0x1b2   : > { %v1858_v51 = vsel %vm1827_vm7, %v1825_v40, %v1595_v28  ;;  %v1597_v5 = vpop.permute.xlu0 %1596 }
 0x1b3   : > { %2189 = vmatmul.mubr.f32.gmra.mrb[60].mxu0 %v1858_v51  ;;  %v2200_v51 = vld [vmem:[%s9101_s7 + $0x8] sm:$0xff] }
 0x1b4   : > { %5129 = vmatprep.mubr.msk.f32.mxu0 %vm324_vm0, %v733_v43 }
 0x1b5   : > { %v1469_v7 = vpop.permute.xlu1 %1468  ;;  %v7466_v9 = vpop.f32.mrb[0].mxu0 }
 0x1b6   : > { %v1826_v13 = vsel %vm1794_vm6, %v1793_v6, %v1469_v7  ;;  %v2042_v14 = vpop.f32.mrb[1].mxu0  ;;  %v2201_v55 = vsel %vm324_vm0, %v7466_v9, 0.0 }
 0x1b7   : > { %v1859_v15 = vsel %vm1827_vm7, %v1826_v13, %v1597_v5  ;;  %v7530_v5 = vpack.c.bf16 %v2200_v51, %v2199_v3 }
 0x1b8   : > { %2194 = vmatmul.mubr.f32.gmra.mrb[62].mxu0 %v1859_v15 }
 0x1b9   : > { %v7470_v29 = vpop.f32.mrb[2].mxu0  ;;  %5244 = vmatpush3.bf16.msra.mxu1 %v7530_v5  ;;  %5205 = vmatprep.mubr.msk.f32.mxu0 %vm6545_vm8, %v6536_v0 }
 0x1ba   : > { %v2202_v18 = vsel %vm324_vm0, %v7470_v29, 0.0  ;;  %v2047_v16 = vpop.f32.mrb[3].mxu0  ;;  %5245 = vmatprep.subr.bf16.mxu1 %v6537_v1 }
 0x1bb   : > { %v2203_v19 = vadd.f32 %v2202_v18, %v2201_v55 }
 0x1c4   : > { %v7476_v12 = vpop.f32.mrb[4].mxu0 }
 0x1c5   : > { %v2204_v20 = vsel %vm324_vm0, %v7476_v12, 0.0  ;;  %v2052_v53 = vpop.f32.mrb[5].mxu0 }
 0x1c6   : > { %v2205_v48 = vadd.f32 %v2204_v20, %v2203_v19 }
 0x1c8   : > { %v7480_v10 = vpop.f32.mrb[6].mxu0 }
 0x1c9   : > { %v2206_v25 = vsel %vm324_vm0, %v7480_v10, 0.0  ;;  %v2057_v22 = vpop.f32.mrb[7].mxu0 }
 0x1ca   : > { %v2207_v23 = vadd.f32 %v2206_v25, %v2205_v48 }
 0x1d1   : > { %v7484_v24 = vpop.f32.mrb[8].mxu0 }
 0x1d2   : > { %v2208_v39 = vsel %vm324_vm0, %v7484_v24, 0.0  ;;  %v2062_v27 = vpop.f32.mrb[9].mxu0 }
 0x1d3   : > { %v2209_v30 = vadd.f32 %v2208_v39, %v2207_v23 }
 0x1d5   : > { %v7488_v31 = vpop.f32.mrb[10].mxu0 }
 0x1d6   : > { %v2210_v32 = vsel %vm324_vm0, %v7488_v31, 0.0  ;;  %v2067_v50 = vpop.f32.mrb[11].mxu0 }
 0x1d7   : > { %v2211_v35 = vadd.f32 %v2210_v32, %v2209_v30 }
 0x1e0   : > { %v7492_v26 = vpop.f32.mrb[12].mxu0 }
 0x1e1   : > { %v2212_v58 = vsel %vm324_vm0, %v7492_v26, 0.0  ;;  %v2072_v36 = vpop.f32.mrb[13].mxu0 }
 0x1e2   : > { %v2213_v8 = vadd.f32 %v2212_v58, %v2211_v35 }
 0x1e4   : > { %v7496_v37 = vpop.f32.mrb[14].mxu0 }
 0x1e5   : > { %v2214_v38 = vsel %vm324_vm0, %v7496_v37, 0.0  ;;  %v2077_v4 = vpop.f32.mrb[15].mxu0 }
 0x1e6   : > { %v2215_v46 = vadd.f32 %v2214_v38, %v2213_v8 }
 0x1ed   : > { %v7500_v52 = vpop.f32.mrb[16].mxu0 }
 0x1ee   : > { %v2216_v45 = vsel %vm324_vm0, %v7500_v52, 0.0  ;;  %v2082_v33 = vpop.f32.mrb[17].mxu0 }
 0x1ef   : > { %v2217_v49 = vadd.f32 %v2216_v45, %v2215_v46 }
 0x1f1   : > { %v7504_v54 = vpop.f32.mrb[18].mxu0 }
 0x1f2   : > { %v2218_v17 = vsel %vm324_vm0, %v7504_v54, 0.0  ;;  %v2087_v56 = vpop.f32.mrb[19].mxu0 }
 0x1f3   : > { %v2219_v57 = vadd.f32 %v2218_v17, %v2217_v49 }
 0x1fc   : > { %v7508_v47 = vpop.f32.mrb[20].mxu0 }
 0x1fd   : > { %v2220_v59 = vsel %vm324_vm0, %v7508_v47, 0.0  ;;  %v2092_v44 = vpop.f32.mrb[21].mxu0 }
 0x1fe   : > { %v2221_v11 = vadd.f32 %v2220_v59, %v2219_v57 }
 0x200   : > { %v7512_v21 = vpop.f32.mrb[22].mxu0 }
 0x201   : > { %v2222_v60 = vsel %vm324_vm0, %v7512_v21, 0.0  ;;  %v2097_v41 = vpop.f32.mrb[23].mxu0 }
 0x202   : > { %v2223_v34 = vadd.f32 %v2222_v60, %v2221_v11 }
 0x209   : > { %v7516_v42 = vpop.f32.mrb[24].mxu0 }
 0x20a   : > { %v2224_v61 = vsel %vm324_vm0, %v7516_v42, 0.0  ;;  %v2102_v62 = vpop.f32.mrb[25].mxu0 }
 0x20b   : > { %v2225_v63 = vadd.f32 %v2224_v61, %v2223_v34 }
 0x20d   : > { %v7520_v2 = vpop.f32.mrb[26].mxu0 }
 0x20e   : > { %v2226_v28 = vsel %vm324_vm0, %v7520_v2, 0.0  ;;  %v2107_v40 = vpop.f32.mrb[27].mxu0 }
 0x20f   : > { %v2227_v43 = vadd.f32 %v2226_v28, %v2225_v63 }
 0x218   : > { %v7532_v6 = vpop.f32.mrb[28].mxu0 }
 0x219   : > { %v2228_v7 = vsel %vm324_vm0, %v7532_v6, 0.0  ;;  %v2112_v13 = vpop.f32.mrb[29].mxu0 }
 0x21a   : > { %v2229_v14 = vadd.f32 %v2228_v7, %v2227_v43 }
 0x21c   : > { %v7542_v15 = vpop.f32.mrb[30].mxu0 }
 0x21d   : > { %v2230_v55 = vsel %vm324_vm0, %v7542_v15, 0.0  ;;  %v2117_v18 = vpop.f32.mrb[31].mxu0 }
 0x21e   : > { %v2231_v16 = vadd.f32 %v2230_v55, %v2229_v14 }
 0x225   : > { %v7546_v19 = vpop.f32.mrb[32].mxu0 }
 0x226   : > { %v2232_v20 = vsel %vm324_vm0, %v7546_v19, 0.0  ;;  %v2122_v53 = vpop.f32.mrb[33].mxu0 }
 0x227   : > { %v2233_v48 = vadd.f32 %v2232_v20, %v2231_v16 }
 0x229   : > { %v7550_v25 = vpop.f32.mrb[34].mxu0 }
 0x22a   : > { %v2234_v22 = vsel %vm324_vm0, %v7550_v25, 0.0  ;;  %v2127_v23 = vpop.f32.mrb[35].mxu0 }
 0x22b   : > { %v2235_v39 = vadd.f32 %v2234_v22, %v2233_v48 }
 0x234   : > { %v7554_v27 = vpop.f32.mrb[36].mxu0 }
 0x235   : > { %v2236_v30 = vsel %vm324_vm0, %v7554_v27, 0.0  ;;  %v2132_v32 = vpop.f32.mrb[37].mxu0 }
 0x236   : > { %v2237_v50 = vadd.f32 %v2236_v30, %v2235_v39 }
 0x238   : > { %v7558_v35 = vpop.f32.mrb[38].mxu0 }
 0x239   : > { %v2238_v58 = vsel %vm324_vm0, %v7558_v35, 0.0  ;;  %v2137_v36 = vpop.f32.mrb[39].mxu0 }
 0x23a   : > { %v2239_v8 = vadd.f32 %v2238_v58, %v2237_v50 }
 0x241   : > { %v7562_v38 = vpop.f32.mrb[40].mxu0 }
 0x242   : > { %v2240_v4 = vsel %vm324_vm0, %v7562_v38, 0.0  ;;  %v2142_v46 = vpop.f32.mrb[41].mxu0 }
 0x243   : > { %v2241_v45 = vadd.f32 %v2240_v4, %v2239_v8 }
 0x245   : > { %v7566_v33 = vpop.f32.mrb[42].mxu0 }
 0x246   : > { %v2242_v49 = vsel %vm324_vm0, %v7566_v33, 0.0  ;;  %v2147_v17 = vpop.f32.mrb[43].mxu0 }
 0x247   : > { %v2243_v56 = vadd.f32 %v2242_v49, %v2241_v45 }
 0x250   : > { %v7570_v57 = vpop.f32.mrb[44].mxu0 }
 0x251   : > { %v2244_v59 = vsel %vm324_vm0, %v7570_v57, 0.0  ;;  %v2152_v44 = vpop.f32.mrb[45].mxu0 }
 0x252   : > { %v2245_v11 = vadd.f32 %v2244_v59, %v2243_v56 }
 0x254   : > { %v7574_v60 = vpop.f32.mrb[46].mxu0 }
 0x255   : > { %v2246_v41 = vsel %vm324_vm0, %v7574_v60, 0.0  ;;  %v2157_v34 = vpop.f32.mrb[47].mxu0 }
 0x256   : > { %v2247_v61 = vadd.f32 %v2246_v41, %v2245_v11 }
 0x25d   : > { %v7578_v62 = vpop.f32.mrb[48].mxu0 }
 0x25e   : > { %v2248_v63 = vsel %vm324_vm0, %v7578_v62, 0.0  ;;  %v2162_v28 = vpop.f32.mrb[49].mxu0 }
 0x25f   : > { %v2249_v40 = vadd.f32 %v2248_v63, %v2247_v61  ;;  %v2343_v28 = vlaneseq }
 0x261   : > { %v7582_v43 = vpop.f32.mrb[50].mxu0 }
 0x262   : > { %v2250_v3 = vsel %vm324_vm0, %v7582_v43, 0.0  ;;  %v2167_v51 = vpop.f32.mrb[51].mxu0 }
 0x263   : > { %v2251_v7 = vadd.f32 %v2250_v3, %v2249_v40  ;;  %v2344_v40 = vshrl.u32 %v2343_v28, 7 }
 0x265   : > { %v7603_v3 = vsub.s32 0, %v2344_v40 }
 0x26c   : > { %v7586_v13 = vpop.f32.mrb[52].mxu0 }
 0x26d   : > { %v2252_v14 = vsel %vm324_vm0, %v7586_v13, 0.0  ;;  %v2172_v55 = vpop.f32.mrb[53].mxu0 }
 0x26e   : > { %v2253_v18 = vadd.f32 %v2252_v14, %v2251_v7 }
 0x270   : > { %v7590_v16 = vpop.f32.mrb[54].mxu0 }
 0x271   : > { %v2254_v20 = vsel %vm324_vm0, %v7590_v16, 0.0  ;;  %v2177_v53 = vpop.f32.mrb[55].mxu0 }
 0x272   : > { %v2255_v48 = vadd.f32 %v2254_v20, %v2253_v18 }
 0x279   : > { %v2180_v22 = vpop.f32.mrb[56].mxu0 }
 0x27a   : > { %v2256_v23 = vsel %vm324_vm0, %v2180_v22, 0.0  ;;  %v2182_v39 = vpop.f32.mrb[57].mxu0 }
 0x27b   : > { %v2257_v30 = vadd.f32 %v2256_v23, %v2255_v48 }
 0x27d   : > { %v2185_v32 = vpop.f32.mrb[58].mxu0 }
 0x27e   : > { %v2258_v50 = vsel %vm324_vm0, %v2185_v32, 0.0  ;;  %v2187_v58 = vpop.f32.mrb[59].mxu0 }
 0x27f   : > { %v2259_v36 = vadd.f32 %v2258_v50, %v2257_v30 }
 0x286   : > { %v2190_v8 = vpop.f32.mrb[60].mxu0 }
 0x287   : > { %v2260_v4 = vsel %vm324_vm0, %v2190_v8, 0.0  ;;  %v2192_v46 = vpop.f32.mrb[61].mxu0 }
 0x288   : > { %v2261_v45 = vadd.f32 %v2260_v4, %v2259_v36 }
 0x28b   : > { %v2195_v49 = vpop.f32.mrb[62].mxu0 }
 0x28c   : > { %v2262_v17 = vsel %vm324_vm0, %v2195_v49, 0.0  ;;  %v2197_v56 = vpop.f32.mrb[63].mxu0 }
 0x28d   : > { %v2263_v59 = vadd.f32 %v2262_v17, %v2261_v45 }
 0x28f   : > { %v2264_v44 = vrot.slane %v2263_v59, 4 }
 0x291   : > { %v2265_v11 = vadd.f32 %v2264_v44, %v2263_v59 }
 0x293   : > { %v2266_v41 = vrot.slane %v2265_v11, 2 }
 0x295   : > { %v2267_v34 = vadd.f32 %v2266_v41, %v2265_v11 }
 0x297   : > { %v2268_v61 = vrot.slane %v2267_v34, 1 }
 0x299   : > { %v2269_v63 = vadd.f32 %v2268_v61, %v2267_v34 }
 0x29b   : > { %5192 = vmatmul.mubr.msk.f32.vlgmr.msra.gmra.mrb[0].mxu1 %vm324_vm0, %v2269_v63 }
 0x29c   : > { %5247 = vmatpush3.bf16.msra.mxu1 %v7530_v5  ;;  %5198 = vmatprep.mubr.msk.f32.mxu1 %vm6545_vm8, %v6536_v0 }
 0x29d   : > { %5248 = vmatprep.subr.bf16.mxu1 %v6537_v1 }
 0x36e   : > { %v2339_v51 = vpop.f32.mrb[0].mxu1 }
 0x36f   : > { %v2346_v7 = vrot.slane %v2339_v51, %v7603_v3  ;;  %v5193_v14 = vpop.f32.mrb[1].mxu1 }
 0x371   : > { %v7607_v55 = vsub.f32 %v7466_v9, %v2346_v7  ;;  %v7610_v18 = vsub.f32 %v7470_v29, %v2346_v7  ;;  %v7613_v5 = vsub.f32 %v7476_v12, %v2346_v7  ;;  %v7616_v20 = vsub.f32 %v7480_v10, %v2346_v7 }
 0x372   : > { %v7619_v53 = vsub.f32 %v7484_v24, %v2346_v7  ;;  %v7622_v48 = vsub.f32 %v7488_v31, %v2346_v7  ;;  %v7625_v23 = vsub.f32 %v7492_v26, %v2346_v7  ;;  %v7628_v9 = vsub.f32 %v7496_v37, %v2346_v7 }
 0x373   : > { %v7631_v29 = vsub.f32 %v7500_v52, %v2346_v7  ;;  %v7634_v12 = vsub.f32 %v7504_v54, %v2346_v7  ;;  %v7637_v10 = vsub.f32 %v7508_v47, %v2346_v7  ;;  %v7640_v24 = vsub.f32 %v7512_v21, %v2346_v7 }
 0x374   : > { %v7643_v31 = vsub.f32 %v7516_v42, %v2346_v7  ;;  %v7646_v26 = vsub.f32 %v7520_v2, %v2346_v7  ;;  %v7649_v37 = vsub.f32 %v7532_v6, %v2346_v7  ;;  %v7652_v52 = vsub.f32 %v7542_v15, %v2346_v7 }
 0x375   : > { %v7655_v54 = vsub.f32 %v7546_v19, %v2346_v7  ;;  %v7658_v47 = vsub.f32 %v7550_v25, %v2346_v7  ;;  %v7661_v21 = vsub.f32 %v7554_v27, %v2346_v7  ;;  %v7664_v42 = vsub.f32 %v7558_v35, %v2346_v7 }
 0x376   : > { %v7667_v2 = vsub.f32 %v7562_v38, %v2346_v7  ;;  %v7670_v6 = vsub.f32 %v7566_v33, %v2346_v7  ;;  %v7673_v15 = vsub.f32 %v7570_v57, %v2346_v7  ;;  %v7676_v19 = vsub.f32 %v7574_v60, %v2346_v7 }
 0x377   : > { %v7679_v25 = vsub.f32 %v7578_v62, %v2346_v7  ;;  %v7682_v27 = vsub.f32 %v7582_v43, %v2346_v7  ;;  %v7685_v35 = vsub.f32 %v7586_v13, %v2346_v7  ;;  %v7688_v38 = vsub.f32 %v7590_v16, %v2346_v7 }
 0x378   : > { %v7690_v33 = vsub.f32 %v2180_v22, %v2346_v7  ;;  %v7692_v39 = vsub.f32 %v2185_v32, %v2346_v7  ;;  %v7694_v57 = vsub.f32 %v2190_v8, %v2346_v7  ;;  %v7696_v60 = vsub.f32 %v2195_v49, %v2346_v7 }
 0x379   : > { %v2379_v62 = vmul.f32 %v7607_v55, %v7607_v55  ;;  %v2380_v43 = vmul.f32 %v7610_v18, %v7610_v18  ;;  %v2381_v13 = vmul.f32 %v7613_v5, %v7613_v5  ;;  %v2382_v16 = vmul.f32 %v7616_v20, %v7616_v20 }
 0x37a   : > { %v2383_v50 = vmul.f32 %v7619_v53, %v7619_v53  ;;  %v2384_v8 = vmul.f32 %v7622_v48, %v7622_v48  ;;  %v2385_v45 = vmul.f32 %v7625_v23, %v7625_v23  ;;  %v2386_v56 = vmul.f32 %v7628_v9, %v7628_v9 }
 0x37b   : > { %v2411_v22 = vsel %vm324_vm0, %v2379_v62, 0.0  ;;  %v2412_v30 = vsel %vm324_vm0, %v2380_v43, 0.0  ;;  %v2414_v58 = vsel %vm324_vm0, %v2381_v13, 0.0  ;;  %v2416_v4 = vsel %vm324_vm0, %v2382_v16, 0.0 }
 0x37c   : > { %v2413_v32 = vadd.f32 %v2412_v30, %v2411_v22  ;;  %v2418_v49 = vsel %vm324_vm0, %v2383_v50, 0.0  ;;  %v2420_v59 = vsel %vm324_vm0, %v2384_v8, 0.0  ;;  %v2387_v11 = vmul.f32 %v7631_v29, %v7631_v29 }
 0x37d   : > { %v2422_v41 = vsel %vm324_vm0, %v2385_v45, 0.0  ;;  %v2388_v61 = vmul.f32 %v7634_v12, %v7634_v12  ;;  %v2424_v63 = vsel %vm324_vm0, %v2386_v56, 0.0  ;;  %v2389_v40 = vmul.f32 %v7637_v10, %v7637_v10 }
 0x37e   : > { %v2415_v36 = vadd.f32 %v2414_v58, %v2413_v32  ;;  %v2426_v51 = vsel %vm324_vm0, %v2387_v11, 0.0  ;;  %v2390_v14 = vmul.f32 %v7640_v24, %v7640_v24  ;;  %v2391_v13 = vmul.f32 %v7643_v31, %v7643_v31 }
 0x37f   : > { %v2428_v62 = vsel %vm324_vm0, %v2388_v61, 0.0  ;;  %v2430_v16 = vsel %vm324_vm0, %v2389_v40, 0.0  ;;  %v2392_v30 = vmul.f32 %v7646_v26, %v7646_v26  ;;  %v2393_v58 = vmul.f32 %v7649_v37, %v7649_v37 }
 0x380   : > { %v2417_v46 = vadd.f32 %v2416_v4, %v2415_v36  ;;  %v2432_v32 = vsel %vm324_vm0, %v2390_v14, 0.0  ;;  %v2434_v36 = vsel %vm324_vm0, %v2391_v13, 0.0  ;;  %v2394_v4 = vmul.f32 %v7652_v52, %v7652_v52 }
 0x382   : > { %v2419_v17 = vadd.f32 %v2418_v49, %v2417_v46  ;;  %v2436_v46 = vsel %vm324_vm0, %v2392_v30, 0.0  ;;  %v2395_v49 = vmul.f32 %v7655_v54, %v7655_v54 }
 0x384   : > { %v2421_v44 = vadd.f32 %v2420_v59, %v2419_v17  ;;  %v2438_v17 = vsel %vm324_vm0, %v2393_v58, 0.0  ;;  %v2396_v59 = vmul.f32 %v7658_v47, %v7658_v47 }
 0x386   : > { %v2423_v34 = vadd.f32 %v2422_v41, %v2421_v44  ;;  %v2440_v44 = vsel %vm324_vm0, %v2394_v4, 0.0  ;;  %v2397_v41 = vmul.f32 %v7661_v21, %v7661_v21 }
 0x388   : > { %v2425_v28 = vadd.f32 %v2424_v63, %v2423_v34  ;;  %v2442_v34 = vsel %vm324_vm0, %v2395_v49, 0.0  ;;  %v2398_v63 = vmul.f32 %v7664_v42, %v7664_v42 }
 0x38a   : > { %v2427_v7 = vadd.f32 %v2426_v51, %v2425_v28  ;;  %v2444_v28 = vsel %vm324_vm0, %v2396_v59, 0.0  ;;  %v2399_v51 = vmul.f32 %v7667_v2, %v7667_v2 }
 0x38c   : > { %v2429_v43 = vadd.f32 %v2428_v62, %v2427_v7  ;;  %v2446_v7 = vsel %vm324_vm0, %v2397_v41, 0.0  ;;  %v2400_v62 = vmul.f32 %v7670_v6, %v7670_v6 }
 0x38e   : > { %v2431_v22 = vadd.f32 %v2430_v16, %v2429_v43  ;;  %v2448_v43 = vsel %vm324_vm0, %v2398_v63, 0.0  ;;  %v2401_v16 = vmul.f32 %v7673_v15, %v7673_v15 }
 0x390   : > { %v2433_v50 = vadd.f32 %v2432_v32, %v2431_v22  ;;  %v2450_v22 = vsel %vm324_vm0, %v2399_v51, 0.0  ;;  %v2402_v32 = vmul.f32 %v7676_v19, %v7676_v19 }
 0x392   : > { %v2435_v8 = vadd.f32 %v2434_v36, %v2433_v50  ;;  %v2452_v50 = vsel %vm324_vm0, %v2400_v62, 0.0  ;;  %v2403_v36 = vmul.f32 %v7679_v25, %v7679_v25 }
 0x394   : > { %v2437_v45 = vadd.f32 %v2436_v46, %v2435_v8  ;;  %v2454_v8 = vsel %vm324_vm0, %v2401_v16, 0.0  ;;  %v2404_v46 = vmul.f32 %v7682_v27, %v7682_v27 }
 0x396   : > { %v2439_v56 = vadd.f32 %v2438_v17, %v2437_v45  ;;  %v2456_v45 = vsel %vm324_vm0, %v2402_v32, 0.0  ;;  %v2405_v17 = vmul.f32 %v7685_v35, %v7685_v35 }
 0x398   : > { %v2441_v11 = vadd.f32 %v2440_v44, %v2439_v56  ;;  %v2458_v56 = vsel %vm324_vm0, %v2403_v36, 0.0  ;;  %v2406_v44 = vmul.f32 %v7688_v38, %v7688_v38 }
 0x39a   : > { %v2443_v61 = vadd.f32 %v2442_v34, %v2441_v11  ;;  %v2460_v11 = vsel %vm324_vm0, %v2404_v46, 0.0  ;;  %v2407_v34 = vmul.f32 %v7690_v33, %v7690_v33 }
 0x39c   : > { %v2445_v40 = vadd.f32 %v2444_v28, %v2443_v61  ;;  %v2462_v61 = vsel %vm324_vm0, %v2405_v17, 0.0  ;;  %v2408_v28 = vmul.f32 %v7692_v39, %v7692_v39  ;;  %v2728_v17 = vld [vmem:[#allocation2 + $0x9] sm:$0xff] }
 0x39e   : > { %v2447_v14 = vadd.f32 %v2446_v7, %v2445_v40  ;;  %v2464_v40 = vsel %vm324_vm0, %v2406_v44, 0.0  ;;  %v2409_v7 = vmul.f32 %v7694_v57, %v7694_v57  ;;  %v2760_v44 = vld [vmem:[#allocation2 + $0xa] sm:$0xff] }
 0x3a0   : > { %v2449_v13 = vadd.f32 %v2448_v43, %v2447_v14  ;;  %v2466_v14 = vsel %vm324_vm0, %v2407_v34, 0.0  ;;  %v2410_v43 = vmul.f32 %v7696_v60, %v7696_v60 }
 0x3a2   : > { %v2451_v30 = vadd.f32 %v2450_v22, %v2449_v13  ;;  %v2468_v13 = vsel %vm324_vm0, %v2408_v28, 0.0  ;;  %v2470_v22 = vsel %vm324_vm0, %v2409_v7, 0.0  ;;  %v2472_v32 = vsel %vm324_vm0, %v2410_v43, 0.0  ;;  %v4103_v28 = vld [vmem:[%s9096_s2] sm:$0xff] }
 0x3a3   : > { %v2554_v7 = vld [vmem:[%s9097_s3] sm:$0x1] }
 0x3a4   : > { %v2453_v58 = vadd.f32 %v2452_v50, %v2451_v30 }
 0x3a6   : > { %v2455_v4 = vadd.f32 %v2454_v8, %v2453_v58 }
 0x3a8   : > { %v2457_v49 = vadd.f32 %v2456_v45, %v2455_v4 }
 0x3aa   : > { %v2459_v59 = vadd.f32 %v2458_v56, %v2457_v49  ;;  %v2727_v49 = vld [vmem:[#allocation2 + $0x1] sm:$0xff] }
 0x3ab   : > { %v5886_v56 = vpack.i.bf16 %v2728_v17, %v2727_v49 }
 0x3ac   : > { %v2461_v41 = vadd.f32 %v2460_v11, %v2459_v59  ;;  %v2759_v59 = vld [vmem:[#allocation2 + $0x2] sm:$0xff] }
 0x3ad   : > { %5887 = vrot.lane.b32.xlu1 %v5886_v56, %s9109_s16  ;;  %v5891_v11 = vpack.i.bf16 %v2760_v44, %v2759_v59  ;;  %s9132_s16 = smov 16  }
 0x3ae   : > { %v2463_v63 = vadd.f32 %v2462_v61, %v2461_v41  ;;  %v2917_v41 = vld [vmem:[#allocation2 + $0x198] sm:$0xff] }
 0x3af   : > { %5892 = vrot.lane.b32.xlu0 %v5891_v11, %s9127_s12 }
 0x3b0   : > { %v2465_v51 = vadd.f32 %v2464_v40, %v2463_v63  ;;  %v4104_v40 = vld [vmem:[%s9096_s2 + $0x8] sm:$0xff] }
 0x3b1   : > { %3715 = vrot.lane.b32.xlu1 %v2917_v41, %s9113_s20 }
 0x3b2   : > { %v2467_v62 = vadd.f32 %v2466_v14, %v2465_v51  ;;  %v5249_v51 = vpack.c.bf16 %v4104_v40, %v4103_v28  ;;  %v4105_v14 = vld [vmem:[%s9096_s2 + $0x10] sm:$0xff] }
 0x3b4   : > { %v2469_v16 = vadd.f32 %v2468_v13, %v2467_v62  ;;  %v4106_v62 = vld [vmem:[%s9096_s2 + $0x18] sm:$0xff] }
 0x3b5   : > { %v5252_v43 = vpack.c.bf16 %v4106_v62, %v4105_v14 }
 0x3b6   : > { %v2471_v30 = vadd.f32 %v2470_v22, %v2469_v16  ;;  %v4107_v22 = vld [vmem:[%s9096_s2 + $0x20] sm:$0xff] }
 0x3b8   : > { %v2473_v50 = vadd.f32 %v2472_v32, %v2471_v30  ;;  %v4108_v30 = vld [vmem:[%s9096_s2 + $0x28] sm:$0xff] }
 0x3ba   : > { %v2474_v58 = vrot.slane %v2473_v50, 4 }
 0x3bc   : > { %v2475_v36 = vadd.f32 %v2474_v58, %v2473_v50  ;;  %v5255_v50 = vpack.c.bf16 %v4108_v30, %v4107_v22 }
 0x3be   : > { %v2476_v8 = vrot.slane %v2475_v36, 2 }
 0x3c0   : > { %v2477_v4 = vadd.f32 %v2476_v8, %v2475_v36 }
 0x3c2   : > { %v2478_v46 = vrot.slane %v2477_v4, 1 }
 0x3c4   : > { %v2479_v45 = vadd.f32 %v2478_v46, %v2477_v4 }
 0x3c6   : > { %5199 = vmatmul.mubr.msk.f32.vlgmr.msra.gmra.mrb[2].mxu1 %vm324_vm0, %v2479_v45 }
 0x3c7   : > { %5250 = vmatpush1.bf16.msra.mxu1 %v5249_v51 }
 0x3c8   : > { %5251 = vmatprep.subr.bf16.mxu1 %v6537_v1 }
 0x3cb   : > { %5253 = vmatpush1.bf16.msra.mxu1 %v5252_v43 }
 0x3cc   : > { %5254 = vmatprep.subr.bf16.mxu1 %v6537_v1 }
 0x3cf   : > { %5256 = vmatpush1.bf16.msra.mxu1 %v5255_v50 }
 0x3d0   : > { %5257 = vmatprep.subr.bf16.mxu1 %v6537_v1 }
 0x499   : > { %v2549_v34 = vpop.f32.mrb[2].mxu1 }
 0x49a   : > { %v2550_v61 = vadd.f32 1e-05, %v2549_v34  ;;  %v5200_v63 = vpop.f32.mrb[3].mxu1 }
 0x49c   : > { %6431 = vrsqrt.f32 %v2550_v61 }
 0x4a6   : > { %v6432_v13 = vpop.eup %6431 }
 0x4a7   : > { %v2555_v16 = vmul.f32 %v6432_v13, %v2554_v7 }
 0x4a9   : > { %v2559_v32 = vrot.slane %v2555_v16, %v7603_v3 }
 0x4ab   : > { %v2560_v58 = vmul.f32 %v2559_v32, %v7607_v55  ;;  %v2561_v36 = vmul.f32 %v2559_v32, %v7610_v18  ;;  %v2562_v8 = vmul.f32 %v2559_v32, %v7613_v5  ;;  %v2563_v4 = vmul.f32 %v2559_v32, %v7616_v20 }
 0x4ac   : > { %v2564_v46 = vmul.f32 %v2559_v32, %v7619_v53  ;;  %v2565_v45 = vmul.f32 %v2559_v32, %v7622_v48  ;;  %v2566_v49 = vmul.f32 %v2559_v32, %v7625_v23  ;;  %v2567_v17 = vmul.f32 %v2559_v32, %v7628_v9 }
 0x4ad   : > { %v2568_v56 = vmul.f32 %v2559_v32, %v7631_v29  ;;  %v2569_v55 = vmul.f32 %v2559_v32, %v7634_v12  ;;  %v2570_v18 = vmul.f32 %v2559_v32, %v7637_v10  ;;  %v2571_v5 = vmul.f32 %v2559_v32, %v7640_v24  ;;  %v5132_v10 = vld [vmem:[%s9098_s4] ss:$0 sm:$0xff] }
 0x4ae   : > { %v2572_v20 = vmul.f32 %v2559_v32, %v7643_v31  ;;  %v2573_v53 = vmul.f32 %v2559_v32, %v7646_v26  ;;  %v2574_v48 = vmul.f32 %v2559_v32, %v7649_v37  ;;  %v2575_v23 = vmul.f32 %v2559_v32, %v7652_v52 }
 0x4af   : > { %v2576_v9 = vmul.f32 %v2559_v32, %v7655_v54  ;;  %v2577_v59 = vmul.f32 %v2559_v32, %v7658_v47  ;;  %v2578_v29 = vmul.f32 %v2559_v32, %v7661_v21  ;;  %v2579_v12 = vmul.f32 %v2559_v32, %v7664_v42 }
 0x4b0   : > { %v2580_v24 = vmul.f32 %v2559_v32, %v7667_v2  ;;  %v2581_v31 = vmul.f32 %v2559_v32, %v7670_v6  ;;  %v2582_v26 = vmul.f32 %v2559_v32, %v7673_v15  ;;  %v2583_v37 = vmul.f32 %v2559_v32, %v7676_v19 }
 0x4b1   : > { %v2584_v52 = vmul.f32 %v2559_v32, %v7679_v25  ;;  %v2585_v54 = vmul.f32 %v2559_v32, %v7682_v27  ;;  %v2586_v47 = vmul.f32 %v2559_v32, %v7685_v35  ;;  %v2587_v21 = vmul.f32 %v2559_v32, %v7688_v38 }
 0x4b2   : > { %v2588_v42 = vmul.f32 %v2559_v32, %v7690_v33  ;;  %v2589_v44 = vmul.f32 %v2559_v32, %v7692_v39  ;;  %v2590_v2 = vmul.f32 %v2559_v32, %v7694_v57  ;;  %v2591_v6 = vmul.f32 %v2559_v32, %v7696_v60 }
 0x4b3   : > { %v2599_v11 = vadd.f32 %v5132_v10, %v2560_v58  ;;  %v2600_v15 = vadd.f32 %v5132_v10, %v2561_v36  ;;  %v2601_v41 = vadd.f32 %v5132_v10, %v2562_v8  ;;  %v2602_v19 = vadd.f32 %v5132_v10, %v2563_v4 }
 0x4b4   : > { %v2603_v34 = vadd.f32 %v5132_v10, %v2564_v46  ;;  %v2604_v25 = vadd.f32 %v5132_v10, %v2565_v45  ;;  %v2605_v61 = vadd.f32 %v5132_v10, %v2566_v49  ;;  %v2606_v27 = vadd.f32 %v5132_v10, %v2567_v17 }
 0x4b5   : > { %v2607_v63 = vadd.f32 %v5132_v10, %v2568_v56  ;;  %v2608_v35 = vadd.f32 %v5132_v10, %v2569_v55  ;;  %v2609_v28 = vadd.f32 %v5132_v10, %v2570_v18  ;;  %v2610_v38 = vadd.f32 %v5132_v10, %v2571_v5 }
 0x4b6   : > { %v2611_v40 = vadd.f32 %v5132_v10, %v2572_v20  ;;  %v2612_v33 = vadd.f32 %v5132_v10, %v2573_v53  ;;  %v2613_v51 = vadd.f32 %v5132_v10, %v2574_v48  ;;  %v2614_v39 = vadd.f32 %v5132_v10, %v2575_v23 }
 0x4b7   : > { %v7858_v7 = vadd.f32 %v5132_v10, %v2576_v9  ;;  %v7860_v57 = vadd.f32 %v5132_v10, %v2577_v59  ;;  %v7862_v60 = vadd.f32 %v5132_v10, %v2578_v29  ;;  %v7864_v14 = vadd.f32 %v5132_v10, %v2579_v12 }
 0x4b8   : > { %v7866_v62 = vadd.f32 %v5132_v10, %v2580_v24  ;;  %v7868_v43 = vadd.f32 %v5132_v10, %v2581_v31  ;;  %v7870_v13 = vadd.f32 %v5132_v10, %v2582_v26  ;;  %v7872_v16 = vadd.f32 %v5132_v10, %v2583_v37 }
 0x4b9   : > { %v7874_v22 = vadd.f32 %v5132_v10, %v2584_v52  ;;  %v7876_v30 = vadd.f32 %v5132_v10, %v2585_v54  ;;  %v7878_v32 = vadd.f32 %v5132_v10, %v2586_v47  ;;  %v7880_v50 = vadd.f32 %v5132_v10, %v2587_v21  ;;  %v4109_v21 = vld [vmem:[%s9096_s2 + $0x30] sm:$0xff] }
 0x4ba   : > { %v7882_v58 = vadd.f32 %v5132_v10, %v2588_v42  ;;  %v7884_v36 = vadd.f32 %v5132_v10, %v2589_v44  ;;  %v7886_v8 = vadd.f32 %v5132_v10, %v2590_v2  ;;  %v7888_v4 = vadd.f32 %v5132_v10, %v2591_v6  ;;  %v4110_v42 = vld [vmem:[%s9096_s2 + $0x38] sm:$0xff] }
 0x4bb   : > { %v2631_v46 = vmax.f32 %v2599_v11, 0.0  ;;  %v2632_v45 = vmax.f32 %v2600_v15, 0.0  ;;  %v2633_v49 = vmax.f32 %v2601_v41, 0.0  ;;  %v2634_v17 = vmax.f32 %v2602_v19, 0.0 }
 0x4bc   : > { %v2635_v56 = vmax.f32 %v2603_v34, 0.0  ;;  %v2636_v55 = vmax.f32 %v2604_v25, 0.0  ;;  %v2637_v18 = vmax.f32 %v2605_v61, 0.0  ;;  %v2638_v5 = vmax.f32 %v2606_v27, 0.0  ;;  %v4111_v25 = vld [vmem:[%s9096_s2 + $0x40] sm:$0xff]  ;;  %v4112_v61 = vld [vmem:[%s9096_s2 + $0x48] sm:$0xff] }
 0x4bd   : > { %v2639_v20 = vmax.f32 %v2607_v63, 0.0  ;;  %v2640_v53 = vmax.f32 %v2608_v35, 0.0  ;;  %v2641_v48 = vmax.f32 %v2609_v28, 0.0  ;;  %v2642_v23 = vmax.f32 %v2610_v38, 0.0  ;;  %2663 = vst.msk [vmem:[#allocation2 + $0x19] sm:$0xff] %vm324_vm0, %v2631_v46  ;;  %2664 = vst.msk [vmem:[#allocation2 + $0x21] sm:$0xff] %vm324_vm0, %v2632_v45 }
 0x4be   : > { %2665 = vst.msk [vmem:[#allocation2 + $0x31] sm:$0xff] %vm324_vm0, %v2633_v49  ;;  %2666 = vst.msk [vmem:[#allocation2 + $0x39] sm:$0xff] %vm324_vm0, %v2634_v17  ;;  %v2643_v9 = vmax.f32 %v2611_v40, 0.0  ;;  %v2644_v59 = vmax.f32 %v2612_v33, 0.0  ;;  %v2645_v29 = vmax.f32 %v2613_v51, 0.0  ;;  %v2646_v12 = vmax.f32 %v2614_v39, 0.0 }
 0x4bf   : > { %2667 = vst.msk [vmem:[#allocation2 + $0x49] sm:$0xff] %vm324_vm0, %v2635_v56  ;;  %2668 = vst.msk [vmem:[#allocation2 + $0x51] sm:$0xff] %vm324_vm0, %v2636_v55  ;;  %v2647_v10 = vmax.f32 %v7858_v7, 0.0  ;;  %v2648_v24 = vmax.f32 %v7860_v57, 0.0  ;;  %v2649_v31 = vmax.f32 %v7862_v60, 0.0  ;;  %v2650_v26 = vmax.f32 %v7864_v14, 0.0 }
 0x4c0   : > { %2669 = vst.msk [vmem:[#allocation2 + $0x61] sm:$0xff] %vm324_vm0, %v2637_v18  ;;  %2670 = vst.msk [vmem:[#allocation2 + $0x69] sm:$0xff] %vm324_vm0, %v2638_v5  ;;  %v2651_v37 = vmax.f32 %v7866_v62, 0.0  ;;  %v2652_v52 = vmax.f32 %v7868_v43, 0.0  ;;  %v2653_v54 = vmax.f32 %v7870_v13, 0.0  ;;  %v2654_v47 = vmax.f32 %v7872_v16, 0.0 }
 0x4c1   : > { %2671 = vst.msk [vmem:[#allocation2 + $0x79] sm:$0xff] %vm324_vm0, %v2639_v20  ;;  %2672 = vst.msk [vmem:[#allocation2 + $0x81] sm:$0xff] %vm324_vm0, %v2640_v53  ;;  %v2655_v44 = vmax.f32 %v7874_v22, 0.0  ;;  %v2656_v2 = vmax.f32 %v7876_v30, 0.0  ;;  %v2657_v6 = vmax.f32 %v7878_v32, 0.0  ;;  %v2658_v11 = vmax.f32 %v7880_v50, 0.0 }
 0x4c2   : > { %2673 = vst.msk [vmem:[#allocation2 + $0x91] sm:$0xff] %vm324_vm0, %v2641_v48  ;;  %2674 = vst.msk [vmem:[#allocation2 + $0x99] sm:$0xff] %vm324_vm0, %v2642_v23  ;;  %v2659_v15 = vmax.f32 %v7882_v58, 0.0  ;;  %v2660_v41 = vmax.f32 %v7884_v36, 0.0  ;;  %v2661_v19 = vmax.f32 %v7886_v8, 0.0  ;;  %v2662_v34 = vmax.f32 %v7888_v4, 0.0 }
 0x4c3   : > { %2675 = vst.msk [vmem:[#allocation2 + $0xa9] sm:$0xff] %vm324_vm0, %v2643_v9  ;;  %2676 = vst.msk [vmem:[#allocation2 + $0xb1] sm:$0xff] %vm324_vm0, %v2644_v59  ;;  %v5258_v27 = vpack.c.bf16 %v4110_v42, %v4109_v21  ;;  %v5261_v51 = vpack.c.bf16 %v4112_v61, %v4111_v25  ;;  %v4113_v39 = vld [vmem:[%s9096_s2 + $0x50] sm:$0xff]  ;;  %v4114_v14 = vld [vmem:[%s9096_s2 + $0x58] sm:$0xff] }
 0x4c4   : > { %2677 = vst.msk [vmem:[#allocation2 + $0xc1] sm:$0xff] %vm324_vm0, %v2645_v29  ;;  %2678 = vst.msk [vmem:[#allocation2 + $0xc9] sm:$0xff] %vm324_vm0, %v2646_v12  ;;  %v2823_v35 = vld [vmem:[#allocation2 + $0x19] sm:$0xff]  ;;  %v2824_v28 = vld [vmem:[#allocation2 + $0x21] sm:$0xff]  ;;  %v5264_v16 = vpack.c.bf16 %v4114_v14, %v4113_v39 }
 0x4c5   : > { %2679 = vst.msk [vmem:[#allocation2 + $0xd9] sm:$0xff] %vm324_vm0, %v2647_v10  ;;  %2680 = vst.msk [vmem:[#allocation2 + $0xe1] sm:$0xff] %vm324_vm0, %v2648_v24  ;;  %v2951_v63 = vld [vmem:[#allocation2 + $0x32] sm:$0xff]  ;;  %v5901_v38 = vpack.i.bf16 %v2824_v28, %v2823_v35  ;;  %v7953_v33 = vld [vmem:[#allocation2 + $0x20] sm:$0xff]  ;;  %5259 = vmatpush1.bf16.msra.mxu1 %v5258_v27 }
 0x4c6   : > { %2681 = vst.msk [vmem:[#allocation2 + $0xf1] sm:$0xff] %vm324_vm0, %v2649_v31  ;;  %2682 = vst.msk [vmem:[#allocation2 + $0xf9] sm:$0xff] %vm324_vm0, %v2650_v26  ;;  %5133 = vmatprep.mubr.msk.f32.mxu1 %vm324_vm0, %v2951_v63  ;;  %v7951_v40 = vld [vmem:[#allocation2 + $0x18] sm:$0xff]  ;;  %v7960_v57 = vld [vmem:[#allocation2 + $0x30] sm:$0xff]  ;;  %5260 = vmatprep.subr.bf16.mxu1 %v6537_v1 }
 0x4c7   : > { %2683 = vst.msk [vmem:[#allocation2 + $0x109] sm:$0xff] %vm324_vm0, %v2651_v37  ;;  %2684 = vst.msk [vmem:[#allocation2 + $0x111] sm:$0xff] %vm324_vm0, %v2652_v52  ;;  %v5896_v7 = vpack.i.bf16 %v7953_v33, %v7951_v40  ;;  %v7962_v60 = vld [vmem:[#allocation2 + $0x38] sm:$0xff]  ;;  %5902 = vrot.lane.b32.xlu0 %v5901_v38, %s9128_s15  ;;  %v2856_v43 = vld [vmem:[#allocation2 + $0x22] sm:$0xff] }
 0x4c8   : > { %2685 = vst.msk [vmem:[#allocation2 + $0x121] sm:$0xff] %vm324_vm0, %v2653_v54  ;;  %2686 = vst.msk [vmem:[#allocation2 + $0x129] sm:$0xff] %vm324_vm0, %v2654_v47  ;;  %v2855_v62 = vld [vmem:[#allocation2 + $0x1a] sm:$0xff]  ;;  %v5911_v13 = vpack.i.bf16 %v7962_v60, %v7960_v57  ;;  %v4116_v32 = vld [vmem:[%s9096_s2 + $0x68] sm:$0xff] }
 0x4c9   : > { %2687 = vst.msk [vmem:[#allocation2 + $0x139] sm:$0xff] %vm324_vm0, %v2655_v44  ;;  %2688 = vst.msk [vmem:[#allocation2 + $0x141] sm:$0xff] %vm324_vm0, %v2656_v2  ;;  %5897 = vrot.lane.b32.xlu1 %v5896_v7, %s9129_s19  ;;  %5262 = vmatpush1.bf16.msra.mxu1 %v5261_v51  ;;  %v5906_v22 = vpack.i.bf16 %v2856_v43, %v2855_v62  ;;  %v4115_v30 = vld [vmem:[%s9096_s2 + $0x60] sm:$0xff]  ;;  %v2919_v50 = vld [vmem:[#allocation2 + $0x31] sm:$0xff] }
 0x4ca   : > { %2689 = vst.msk [vmem:[#allocation2 + $0x151] sm:$0xff] %vm324_vm0, %v2657_v6  ;;  %2690 = vst.msk [vmem:[#allocation2 + $0x159] sm:$0xff] %vm324_vm0, %v2658_v11  ;;  %5263 = vmatprep.subr.bf16.mxu1 %v6537_v1  ;;  %v2920_v58 = vld [vmem:[#allocation2 + $0x39] sm:$0xff]  ;;  %v5267_v36 = vpack.c.bf16 %v4116_v32, %v4115_v30  ;;  %v4117_v4 = vld [vmem:[%s9096_s2 + $0x70] sm:$0xff] }
 0x4cb   : > { %2691 = vst.msk [vmem:[#allocation2 + $0x169] sm:$0xff] %vm324_vm0, %v2659_v15  ;;  %2692 = vst.msk [vmem:[#allocation2 + $0x171] sm:$0xff] %vm324_vm0, %v2660_v41  ;;  %5912 = vrot.lane.b32.xlu0 %v5911_v13, %s9130_s0  ;;  %v5916_v8 = vpack.i.bf16 %v2920_v58, %v2919_v50  ;;  %v4118_v46 = vld [vmem:[%s9096_s2 + $0x78] sm:$0xff]  ;;  %v7996_v56 = vld [vmem:[#allocation2 + $0x48] sm:$0xff] }
 0x4cc   : > { %2693 = vst.msk [vmem:[#allocation2 + $0x181] sm:$0xff] %vm324_vm0, %v2661_v19  ;;  %2694 = vst.msk [vmem:[#allocation2 + $0x189] sm:$0xff] %vm324_vm0, %v2662_v34  ;;  %v5270_v45 = vpack.c.bf16 %v4118_v46, %v4117_v4  ;;  %v7990_v49 = vld [vmem:[#allocation2 + $0x3a] sm:$0xff]  ;;  %v2921_v55 = vld [vmem:[#allocation2 + $0x49] sm:$0xff] }
 0x4cd   : > { %5907 = vrot.lane.b32.xlu1 %v5906_v22, %s9131_s24  ;;  %5265 = vmatpush1.bf16.msra.mxu1 %v5264_v16  ;;  %v5941_v17 = vpack.i.bf16 %v7990_v49, %v2951_v63  ;;  %v2922_v18 = vld [vmem:[#allocation2 + $0x51] sm:$0xff]  ;;  %v4119_v20 = vld [vmem:[%s9096_s2 + $0x80] sm:$0xff]  ;;  %v4120_v53 = vld [vmem:[%s9096_s2 + $0x88] sm:$0xff] }
 0x4ce   : > { %5266 = vmatprep.subr.bf16.mxu1 %v6537_v1  ;;  %v8000_v5 = vld [vmem:[#allocation2 + $0x50] sm:$0xff]  ;;  %v5273_v48 = vpack.c.bf16 %v4120_v53, %v4119_v20  ;;  %v5951_v23 = vpack.i.bf16 %v2922_v18, %v2921_v55  ;;  %v8015_v59 = vld [vmem:[#allocation2 + $0x60] sm:$0xff]  ;;  %v8017_v29 = vld [vmem:[#allocation2 + $0x68] sm:$0xff] }
 0x4cf   : > { %5922 = vrot.lane.b32.xlu0 %v5901_v38, %s9132_s16  ;;  %v5946_v9 = vpack.i.bf16 %v8000_v5, %v7996_v56  ;;  %v8020_v12 = vld [vmem:[#allocation2 + $0x4a] sm:$0xff]  ;;  %v8022_v10 = vld [vmem:[#allocation2 + $0x52] sm:$0xff]  ;;  %v5981_v24 = vpack.i.bf16 %v8017_v29, %v8015_v59  ;;  %v2923_v26 = vld [vmem:[#allocation2 + $0x61] sm:$0xff] }
 0x4d0   : > { %v5976_v31 = vpack.i.bf16 %v8022_v10, %v8020_v12  ;;  %v2924_v37 = vld [vmem:[#allocation2 + $0x69] sm:$0xff]  ;;  %v2925_v42 = vld [vmem:[#allocation2 + $0x79] sm:$0xff]  ;;  %v2926_v44 = vld [vmem:[#allocation2 + $0x81] sm:$0xff] }
 0x4d1   : > { %5917 = vrot.lane.b32.xlu1 %v5916_v8, %s9126_s13  ;;  %5268 = vmatpush1.bf16.msra.mxu1 %v5267_v36  ;;  %v5986_v52 = vpack.i.bf16 %v2924_v37, %v2923_v26  ;;  %v8033_v54 = vld [vmem:[#allocation2 + $0x62] sm:$0xff]  ;;  %v8035_v47 = vld [vmem:[#allocation2 + $0x6a] sm:$0xff]  ;;  %v2893_v2 = vld [vmem:[#allocation2 + $0x78] sm:$0xff]  ;;  %v6021_v11 = vpack.i.bf16 %v2926_v44, %v2925_v42  ;;  %v5893_v37 = vpop.permute.xlu0 %5892 }
 0x4d2   : > { %5269 = vmatprep.subr.bf16.mxu1 %v6537_v1  ;;  %v6011_v21 = vpack.i.bf16 %v8035_v47, %v8033_v54  ;;  %v2894_v6 = vld [vmem:[#allocation2 + $0x80] sm:$0xff]  ;;  %v2895_v41 = vld [vmem:[#allocation2 + $0x90] sm:$0xff]  ;;  %v2896_v19 = vld [vmem:[#allocation2 + $0x98] sm:$0xff] }
 0x4d3   : > { %5932 = vrot.lane.b32.xlu0 %v5911_v13, %s9129_s19  ;;  %v6016_v15 = vpack.i.bf16 %v2894_v6, %v2893_v2  ;;  %v8048_v34 = vld [vmem:[#allocation2 + $0x7a] sm:$0xff]  ;;  %v8050_v25 = vld [vmem:[#allocation2 + $0x82] sm:$0xff]  ;;  %v6051_v61 = vpack.i.bf16 %v2896_v19, %v2895_v41  ;;  %v2927_v63 = vld [vmem:[#allocation2 + $0x91] sm:$0xff]  ;;  %v5894_v6 = vunpack.i.l.bf16 %v5893_v37 }
 0x4d4   : > { %v6046_v27 = vpack.i.bf16 %v8050_v25, %v8048_v34  ;;  %v2928_v35 = vld [vmem:[#allocation2 + $0x99] sm:$0xff]  ;;  %v2929_v7 = vld [vmem:[#allocation2 + $0xa9] sm:$0xff]  ;;  %v2930_v14 = vld [vmem:[#allocation2 + $0xb1] sm:$0xff] }
 0x4d5   : > { %5927 = vrot.lane.b32.xlu1 %v5906_v22, %s9127_s12  ;;  %5271 = vmatpush1.bf16.msra.mxu1 %v5270_v45  ;;  %v6056_v28 = vpack.i.bf16 %v2928_v35, %v2927_v63  ;;  %v8059_v38 = vld [vmem:[#allocation2 + $0x92] sm:$0xff]  ;;  %v8061_v51 = vld [vmem:[#allocation2 + $0x9a] sm:$0xff]  ;;  %v2897_v62 = vld [vmem:[#allocation2 + $0xa8] sm:$0xff]  ;;  %v6091_v13 = vpack.i.bf16 %v2930_v14, %v2929_v7  ;;  %v5895_v7 = vunpack.i.h.bf16 %v5893_v37 }
 0x4d6   : > { %5272 = vmatprep.subr.bf16.mxu1 %v6537_v1  ;;  %v6081_v39 = vpack.i.bf16 %v8061_v51, %v8059_v38  ;;  %v2898_v43 = vld [vmem:[#allocation2 + $0xb0] sm:$0xff]  ;;  %v2899_v22 = vld [vmem:[#allocation2 + $0xc0] sm:$0xff]  ;;  %v2900_v30 = vld [vmem:[#allocation2 + $0xc8] sm:$0xff] }
 0x4d7   : > { %5942 = vrot.lane.b32.xlu0 %v5941_v17, %s9131_s24  ;;  %v6086_v16 = vpack.i.bf16 %v2898_v43, %v2897_v62  ;;  %v8074_v32 = vld [vmem:[#allocation2 + $0xaa] sm:$0xff]  ;;  %v2868_v50 = vld [vmem:[#allocation2 + $0xb2] sm:$0xff]  ;;  %v6121_v58 = vpack.i.bf16 %v2900_v30, %v2899_v22  ;;  %v2869_v45 = vld [vmem:[#allocation2 + $0xc2] sm:$0xff] }
 0x4d8   : > { %v6116_v36 = vpack.i.bf16 %v2868_v50, %v8074_v32  ;;  %v2932_v4 = vld [vmem:[#allocation2 + $0xc9] sm:$0xff]  ;;  %v2933_v18 = vld [vmem:[#allocation2 + $0xd9] sm:$0xff]  ;;  %v2934_v20 = vld [vmem:[#allocation2 + $0xe1] sm:$0xff] }
 0x4d9   : > { %5937 = vrot.lane.b32.xlu1 %v5916_v8, %s9128_s15  ;;  %5274 = vmatpush1.bf16.msra.mxu1 %v5273_v48  ;;  %v2901_v53 = vld [vmem:[#allocation2 + $0xd8] sm:$0xff]  ;;  %v2902_v48 = vld [vmem:[#allocation2 + $0xe0] sm:$0xff] }
 0x4da   : > { %v2904_v42 = vld [vmem:[#allocation2 + $0xf8] sm:$0xff]  ;;  %v2872_v2 = vld [vmem:[#allocation2 + $0xe2] sm:$0xff] }
 0x4db   : > { %5952 = vrot.lane.b32.xlu0 %v5951_v23, %s9126_s13  ;;  %v8093_v44 = vld [vmem:[#allocation2 + $0xda] sm:$0xff] }
 0x4dc   : > { %v6186_v63 = vpack.i.bf16 %v2872_v2, %v8093_v44 }
 0x4dd   : > { %5947 = vrot.lane.b32.xlu1 %v5946_v9, %s9130_s0 }
 0x4df   : > { %5962 = vrot.lane.b32.xlu0 %v5941_v17, %s9127_s12  ;;  %v2870_v17 = vld [vmem:[#allocation2 + $0xca] sm:$0xff] }
 0x4e0   : > { %v6151_v55 = vpack.i.bf16 %v2870_v17, %v2869_v45 }
 0x4e1   : > { %5957 = vrot.lane.b32.xlu1 %v5916_v8, %s9132_s16  ;;  %v2931_v8 = vld [vmem:[#allocation2 + $0xc1] sm:$0xff] }
 0x4e2   : > { %v6126_v46 = vpack.i.bf16 %v2932_v4, %v2931_v8 }
 0x4e3   : > { %5972 = vrot.lane.b32.xlu0 %v5951_v23, %s9128_s15 }
 0x4e5   : > { %5967 = vrot.lane.b32.xlu1 %v5946_v9, %s9129_s19  ;;  %v6156_v9 = vpack.i.bf16 %v2902_v48, %v2901_v53  ;;  %v8112_v53 = vld [vmem:[#allocation2 + $0xf2] sm:$0xff]  ;;  %v2874_v48 = vld [vmem:[#allocation2 + $0xfa] sm:$0xff] }
 0x4e6   : > { %v6221_v2 = vpack.i.bf16 %v2874_v48, %v8112_v53 }
 0x4e7   : > { %5982 = vrot.lane.b32.xlu0 %v5981_v24, %s9130_s0 }
 0x4e9   : > { %5977 = vrot.lane.b32.xlu1 %v5976_v31, %s9131_s24 }
 0x4eb   : > { %5992 = vrot.lane.b32.xlu0 %v5951_v23, %s9132_s16  ;;  %v6161_v23 = vpack.i.bf16 %v2934_v20, %v2933_v18 }
 0x4ed   : > { %5987 = vrot.lane.b32.xlu1 %v5986_v52, %s9126_s13 }
 0x4ef   : > { %6002 = vrot.lane.b32.xlu0 %v5981_v24, %s9129_s19  ;;  %v5888_v24 = vpop.permute.xlu1 %5887 }
 0x4f0   : > { %v5889_v26 = vunpack.i.l.bf16 %v5888_v24 }
 0x4f1   : > { %5997 = vrot.lane.b32.xlu1 %v5976_v31, %s9127_s12 }
 0x4f3   : > { %6012 = vrot.lane.b32.xlu0 %v6011_v21, %s9131_s24  ;;  %v8090_v31 = vpop.permute.xlu1 %3715 }
 0x4f5   : > { %6007 = vrot.lane.b32.xlu1 %v5986_v52, %s9128_s15 }
 0x4f7   : > { %6022 = vrot.lane.b32.xlu0 %v6021_v11, %s9126_s13 }
 0x4f9   : > { %6017 = vrot.lane.b32.xlu1 %v6016_v15, %s9130_s0 }
 0x4fb   : > { %6032 = vrot.lane.b32.xlu0 %v6011_v21, %s9127_s12  ;;  %v2903_v21 = vld [vmem:[#allocation2 + $0xf0] sm:$0xff] }
 0x4fc   : > { %v6191_v19 = vpack.i.bf16 %v2904_v42, %v2903_v21 }
 0x4fd   : > { %6027 = vrot.lane.b32.xlu1 %v5986_v52, %s9132_s16  ;;  %v2695_v52 = vld [vmem:[#allocation2] sm:$0xff] }
 0x4ff   : > { %6042 = vrot.lane.b32.xlu0 %v6021_v11, %s9128_s15 }
 0x501   : > { %6037 = vrot.lane.b32.xlu1 %v6016_v15, %s9129_s19  ;;  %v3879_v15 = vsel %vm324_vm0, %v2695_v52, %v5889_v26 }
 0x502   : > { %v3911_v14 = vsel %vm1662_vm2, %v3879_v15, %v5894_v6 }
 0x503   : > { %6052 = vrot.lane.b32.xlu0 %v6051_v61, %s9130_s0 }
 0x505   : > { %6047 = vrot.lane.b32.xlu1 %v6046_v27, %s9131_s24 }
 0x507   : > { %6062 = vrot.lane.b32.xlu0 %v6021_v11, %s9132_s16  ;;  %v5890_v11 = vunpack.i.h.bf16 %v5888_v24 }
 0x509   : > { %6057 = vrot.lane.b32.xlu1 %v6056_v28, %s9126_s13 }
 0x50b   : > { %6072 = vrot.lane.b32.xlu0 %v6051_v61, %s9129_s19  ;;  %v2696_v61 = vld [vmem:[#allocation2 + $0x8] sm:$0xff] }
 0x50c   : > { %v3880_v43 = vsel %vm324_vm0, %v2696_v61, %v5890_v11 }
 0x50d   : > { %6067 = vrot.lane.b32.xlu1 %v6046_v27, %s9127_s12 }
 0x50f   : > { %6082 = vrot.lane.b32.xlu0 %v6081_v39, %s9131_s24 }
 0x511   : > { %6077 = vrot.lane.b32.xlu1 %v6056_v28, %s9128_s15 }
 0x513   : > { %6092 = vrot.lane.b32.xlu0 %v6091_v13, %s9126_s13 }
 0x515   : > { %6087 = vrot.lane.b32.xlu1 %v6086_v16, %s9130_s0 }
 0x517   : > { %6102 = vrot.lane.b32.xlu0 %v6081_v39, %s9127_s12  ;;  %v2936_v39 = vld [vmem:[#allocation2 + $0xf9] sm:$0xff] }
 0x519   : > { %6097 = vrot.lane.b32.xlu1 %v6056_v28, %s9132_s16  ;;  %v2935_v28 = vld [vmem:[#allocation2 + $0xf1] sm:$0xff] }
 0x51a   : > { %v8103_v50 = vpack.i.bf16 %v2936_v39, %v2935_v28 }
 0x51b   : > { %6112 = vrot.lane.b32.xlu0 %v6091_v13, %s9128_s15 }
 0x51d   : > { %6107 = vrot.lane.b32.xlu1 %v6086_v16, %s9129_s19 }
 0x51f   : > { %6122 = vrot.lane.b32.xlu0 %v6121_v58, %s9130_s0 }
 0x521   : > { %6117 = vrot.lane.b32.xlu1 %v6116_v36, %s9131_s24 }
 0x523   : > { %6132 = vrot.lane.b32.xlu0 %v6091_v13, %s9132_s16 }
 0x525   : > { %6127 = vrot.lane.b32.xlu1 %v6126_v46, %s9126_s13 }
 0x527   : > { %6142 = vrot.lane.b32.xlu0 %v6121_v58, %s9129_s19 }
 0x529   : > { %6137 = vrot.lane.b32.xlu1 %v6116_v36, %s9127_s12  ;;  %v3912_v36 = vsel %vm1662_vm2, %v3880_v43, %v5895_v7 }
 0x52b   : > { %6152 = vrot.lane.b32.xlu0 %v6151_v55, %s9131_s24 }
 0x52d   : > { %6147 = vrot.lane.b32.xlu1 %v6126_v46, %s9128_s15 }
 0x52f   : > { %6162 = vrot.lane.b32.xlu0 %v6161_v23, %s9126_s13 }
 0x531   : > { %6157 = vrot.lane.b32.xlu1 %v6156_v9, %s9130_s0 }
 0x533   : > { %6172 = vrot.lane.b32.xlu0 %v6151_v55, %s9127_s12 }
 0x535   : > { %6167 = vrot.lane.b32.xlu1 %v6126_v46, %s9132_s16 }
 0x537   : > { %6182 = vrot.lane.b32.xlu0 %v6161_v23, %s9128_s15 }
 0x539   : > { %6177 = vrot.lane.b32.xlu1 %v6156_v9, %s9129_s19  ;;  %v5903_v41 = vpop.permute.xlu0 %5902 }
 0x53a   : > { %v5904_v62 = vunpack.i.l.bf16 %v5903_v41  ;;  %v5905_v8 = vunpack.i.h.bf16 %v5903_v41  ;;  %v2937_v41 = vld [vmem:[#allocation2 + $0x109] sm:$0xff] }
 0x53b   : > { %v5898_v27 = vpop.permute.xlu1 %5897  ;;  %6192 = vrot.lane.b32.xlu0 %v6191_v19, %s9130_s0 }
 0x53c   : > { %v5899_v35 = vunpack.i.l.bf16 %v5898_v27  ;;  %v5900_v13 = vunpack.i.h.bf16 %v5898_v27 }
 0x53d   : > { %6187 = vrot.lane.b32.xlu1 %v6186_v63, %s9131_s24  ;;  %v5913_v22 = vpop.permute.xlu0 %5912 }
 0x53e   : > { %v3943_v16 = vsel %vm1695_vm3, %v3911_v14, %v5899_v35  ;;  %v5914_v4 = vunpack.i.l.bf16 %v5913_v22  ;;  %v3944_v45 = vsel %vm1695_vm3, %v3912_v36, %v5900_v13  ;;  %v5915_v9 = vunpack.i.h.bf16 %v5913_v22  ;;  %v2906_v35 = vld [vmem:[#allocation2 + $0x110] sm:$0xff] }
 0x53f   : > { %v5908_v30 = vpop.permute.xlu1 %5907  ;;  %6202 = vrot.lane.b32.xlu0 %v6161_v23, %s9132_s16  ;;  %v3975_v46 = vsel %vm1728_vm4, %v3943_v16, %v5904_v62  ;;  %v3976_v37 = vsel %vm1728_vm4, %v3944_v45, %v5905_v8 }
 0x540   : > { %v5909_v58 = vunpack.i.l.bf16 %v5908_v30  ;;  %v5910_v17 = vunpack.i.h.bf16 %v5908_v30 }
 0x541   : > { %6197 = vrot.lane.b32.xlu1 %v8103_v50, %s9126_s13  ;;  %v5923_v55 = vpop.permute.xlu0 %5922 }
 0x542   : > { %v4007_v18 = vsel %vm1761_vm5, %v3975_v46, %v5909_v58  ;;  %v5924_v24 = vunpack.i.l.bf16 %v5923_v55  ;;  %v4008_v6 = vsel %vm1761_vm5, %v3976_v37, %v5910_v17  ;;  %v5925_v11 = vunpack.i.h.bf16 %v5923_v55 }
 0x543   : > { %v5918_v20 = vpop.permute.xlu1 %5917  ;;  %6212 = vrot.lane.b32.xlu0 %v6191_v19, %s9129_s19  ;;  %v4039_v26 = vsel %vm1794_vm6, %v4007_v18, %v5914_v4  ;;  %v2938_v19 = vld [vmem:[#allocation2 + $0x111] sm:$0xff]  ;;  %v4040_v7 = vsel %vm1794_vm6, %v4008_v6, %v5915_v9  ;;  %v2908_v6 = vld [vmem:[#allocation2 + $0x128] sm:$0xff] }
 0x544   : > { %v5919_v23 = vunpack.i.l.bf16 %v5918_v20  ;;  %v5920_v52 = vunpack.i.h.bf16 %v5918_v20  ;;  %v3881_v28 = vsel %vm324_vm0, %v7951_v40, %v5924_v24  ;;  %v8131_v13 = vpack.i.bf16 %v2938_v19, %v2937_v41 }
 0x545   : > { %6207 = vrot.lane.b32.xlu1 %v6186_v63, %s9127_s12  ;;  %v5933_v42 = vpop.permute.xlu0 %5932  ;;  %v2905_v63 = vld [vmem:[#allocation2 + $0x108] sm:$0xff] }
 0x546   : > { %v4071_v21 = vsel %vm1827_vm7, %v4039_v26, %v5919_v23  ;;  %v5934_v39 = vunpack.i.l.bf16 %v5933_v42  ;;  %v4072_v62 = vsel %vm1827_vm7, %v4040_v7, %v5920_v52  ;;  %v5935_v16 = vunpack.i.h.bf16 %v5933_v42  ;;  %v2907_v42 = vld [vmem:[#allocation2 + $0x120] sm:$0xff] }
 0x547   : > { %4282 = vmatmul.mubr.f32.vlgmr.msra.gmra.mrb[4].mxu1 %v4071_v21  ;;  %v5928_v15 = vpop.permute.xlu1 %5927  ;;  %6222 = vrot.lane.b32.xlu0 %v6221_v2, %s9131_s24  ;;  %v6226_v40 = vpack.i.bf16 %v2906_v35, %v2905_v63  ;;  %v6261_v63 = vpack.i.bf16 %v2908_v6, %v2907_v42 }
 0x548   : > { %v5930_v61 = vunpack.i.h.bf16 %v5928_v15  ;;  %v5929_v27 = vunpack.i.l.bf16 %v5928_v15  ;;  %5134 = vmatprep.mubr.msk.f32.mxu1 %vm324_vm0, %v7990_v49  ;;  %v3882_v49 = vsel %vm324_vm0, %v7953_v33, %v5925_v11  ;;  %v8157_v15 = vld [vmem:[#allocation2 + $0x112] sm:$0xff] }
 0x549   : > { %6217 = vrot.lane.b32.xlu1 %v8103_v50, %s9128_s15  ;;  %v5943_v43 = vpop.permute.xlu0 %5942 }
 0x54a   : > { %v3913_v14 = vsel %vm1662_vm2, %v3881_v28, %v5929_v27  ;;  %v3914_v30 = vsel %vm1662_vm2, %v3882_v49, %v5930_v61  ;;  %v5944_v4 = vunpack.i.l.bf16 %v5943_v43  ;;  %v5945_v17 = vunpack.i.h.bf16 %v5943_v43 }
 0x54b   : > { %4287 = vmatmul.mubr.f32.gmra.mrb[6].mxu1 %v4072_v62  ;;  %v5938_v22 = vpop.permute.xlu1 %5937  ;;  %6232 = vrot.lane.b32.xlu0 %v8131_v13, %s9126_s13  ;;  %v3945_v8 = vsel %vm1695_vm3, %v3913_v14, %v5934_v39  ;;  %v3946_v45 = vsel %vm1695_vm3, %v3914_v30, %v5935_v16  ;;  %v2939_v14 = vld [vmem:[#allocation2 + $0x121] sm:$0xff]  ;;  %v2940_v62 = vld [vmem:[#allocation2 + $0x129] sm:$0xff] }
 0x54c   : > { %v5940_v58 = vunpack.i.h.bf16 %v5938_v22  ;;  %v5939_v36 = vunpack.i.l.bf16 %v5938_v22  ;;  %5135 = vmatprep.mubr.msk.f32.mxu1 %vm324_vm0, %v8020_v12 }
 0x54d   : > { %6227 = vrot.lane.b32.xlu1 %v6226_v40, %s9130_s0  ;;  %v5953_v46 = vpop.permute.xlu0 %5952 }
 0x54e   : > { %v3977_v33 = vsel %vm1728_vm4, %v3945_v8, %v5939_v36  ;;  %v5954_v18 = vunpack.i.l.bf16 %v5953_v46  ;;  %v3978_v20 = vsel %vm1728_vm4, %v3946_v45, %v5940_v58  ;;  %v5955_v26 = vunpack.i.h.bf16 %v5953_v46 }
 0x54f   : > { %v5948_v55 = vpop.permute.xlu1 %5947  ;;  %6242 = vrot.lane.b32.xlu0 %v6221_v2, %s9127_s12  ;;  %v4009_v23 = vsel %vm1761_vm5, %v3977_v33, %v5944_v4  ;;  %v4010_v21 = vsel %vm1761_vm5, %v3978_v20, %v5945_v17  ;;  %v8155_v2 = vld [vmem:[#allocation2 + $0x10a] sm:$0xff]  ;;  %v8175_v58 = vpack.i.bf16 %v2940_v62, %v2939_v14 }
 0x550   : > { %v5950_v48 = vunpack.i.h.bf16 %v5948_v55  ;;  %v5949_v12 = vunpack.i.l.bf16 %v5948_v55  ;;  %v6256_v39 = vpack.i.bf16 %v8157_v15, %v8155_v2  ;;  %v8187_v20 = vld [vmem:[#allocation2 + $0x12a] sm:$0xff] }
 0x551   : > { %6237 = vrot.lane.b32.xlu1 %v8103_v50, %s9132_s16  ;;  %v5963_v9 = vpop.permute.xlu0 %5962 }
 0x552   : > { %v4041_v24 = vsel %vm1794_vm6, %v4009_v23, %v5949_v12  ;;  %v4042_v50 = vsel %vm1794_vm6, %v4010_v21, %v5950_v48  ;;  %v5964_v41 = vunpack.i.l.bf16 %v5963_v9  ;;  %v5965_v43 = vunpack.i.h.bf16 %v5963_v9 }
 0x553   : > { %v5958_v37 = vpop.permute.xlu1 %5957  ;;  %v4073_v52 = vsel %vm1827_vm7, %v4041_v24, %v5954_v18  ;;  %6252 = vrot.lane.b32.xlu0 %v8131_v13, %s9128_s15  ;;  %v4074_v28 = vsel %vm1827_vm7, %v4042_v50, %v5955_v26  ;;  %v8185_v18 = vld [vmem:[#allocation2 + $0x122] sm:$0xff] }
 0x554   : > { %v5959_v11 = vunpack.i.l.bf16 %v5958_v37  ;;  %4292 = vmatmul.mubr.f32.gmra.mrb[8].mxu1 %v4073_v52  ;;  %v5960_v19 = vunpack.i.h.bf16 %v5958_v37  ;;  %v6291_v52 = vpack.i.bf16 %v8187_v20, %v8185_v18  ;;  %v2942_v50 = vld [vmem:[#allocation2 + $0x141] sm:$0xff] }
 0x555   : > { %6247 = vrot.lane.b32.xlu1 %v6226_v40, %s9129_s19  ;;  %5136 = vmatprep.mubr.msk.f32.mxu1 %vm324_vm0, %v8022_v10  ;;  %v5973_v27 = vpop.permute.xlu0 %5972 }
 0x556   : > { %v3883_v61 = vsel %vm324_vm0, %v7960_v57, %v5959_v11  ;;  %v5974_v49 = vunpack.i.l.bf16 %v5973_v27  ;;  %v3884_v57 = vsel %vm324_vm0, %v7962_v60, %v5960_v19  ;;  %v5975_v4 = vunpack.i.h.bf16 %v5973_v27  ;;  %v2941_v11 = vld [vmem:[#allocation2 + $0x139] sm:$0xff] }
 0x557   : > { %v5968_v35 = vpop.permute.xlu1 %5967  ;;  %6262 = vrot.lane.b32.xlu0 %v6261_v63, %s9130_s0  ;;  %v3915_v10 = vsel %vm1662_vm2, %v3883_v61, %v5964_v41  ;;  %v3916_v8 = vsel %vm1662_vm2, %v3884_v57, %v5965_v43  ;;  %v8200_v61 = vld [vmem:[#allocation2 + $0x138] sm:$0xff]  ;;  %v8202_v27 = vld [vmem:[#allocation2 + $0x140] sm:$0xff]  ;;  %v8211_v14 = vpack.i.bf16 %v2942_v50, %v2941_v11 }
 0x558   : > { %v5969_v7 = vunpack.i.l.bf16 %v5968_v35  ;;  %4297 = vmatmul.mubr.f32.gmra.mrb[10].mxu1 %v4074_v28  ;;  %v5970_v16 = vunpack.i.h.bf16 %v5968_v35 }
 0x559   : > { %6257 = vrot.lane.b32.xlu1 %v6256_v39, %s9131_s24  ;;  %5137 = vmatprep.mubr.msk.f32.mxu1 %vm324_vm0, %v8033_v54  ;;  %v5983_v40 = vpop.permute.xlu0 %5982 }
 0x55a   : > { %v3947_v22 = vsel %vm1695_vm3, %v3915_v10, %v5969_v7  ;;  %v5984_v54 = vunpack.i.l.bf16 %v5983_v40  ;;  %v3948_v60 = vsel %vm1695_vm3, %v3916_v8, %v5970_v16  ;;  %v5985_v12 = vunpack.i.h.bf16 %v5983_v40 }
 0x55b   : > { %v5978_v30 = vpop.permute.xlu1 %5977  ;;  %6272 = vrot.lane.b32.xlu0 %v8131_v13, %s9132_s16  ;;  %v3979_v33 = vsel %vm1728_vm4, %v3947_v22, %v5974_v49  ;;  %v3980_v48 = vsel %vm1728_vm4, %v3948_v60, %v5975_v4 }
 0x55c   : > { %v5979_v36 = vunpack.i.l.bf16 %v5978_v30  ;;  %v5980_v46 = vunpack.i.h.bf16 %v5978_v30 }
 0x55d   : > { %6267 = vrot.lane.b32.xlu1 %v8175_v58, %s9126_s13  ;;  %v5993_v45 = vpop.permute.xlu0 %5992 }
 0x55e   : > { %v4011_v17 = vsel %vm1761_vm5, %v3979_v33, %v5979_v36  ;;  %v5994_v23 = vunpack.i.l.bf16 %v5993_v45  ;;  %v4012_v21 = vsel %vm1761_vm5, %v3980_v48, %v5980_v46  ;;  %v5995_v42 = vunpack.i.h.bf16 %v5993_v45 }
 0x55f   : > { %v5988_v55 = vpop.permute.xlu1 %5987  ;;  %6282 = vrot.lane.b32.xlu0 %v6261_v63, %s9129_s19  ;;  %v4043_v9 = vsel %vm1794_vm6, %v4011_v17, %v5984_v54  ;;  %v4044_v28 = vsel %vm1794_vm6, %v4012_v21, %v5985_v12 }
 0x560   : > { %v5989_v13 = vunpack.i.l.bf16 %v5988_v55  ;;  %v5990_v24 = vunpack.i.h.bf16 %v5988_v55  ;;  %v3885_v63 = vsel %vm324_vm0, %v7996_v56, %v5994_v23  ;;  %v3886_v62 = vsel %vm324_vm0, %v8000_v5, %v5995_v42  ;;  %v8234_v23 = vld [vmem:[#allocation2 + $0x150] sm:$0xff] }
 0x561   : > { %6277 = vrot.lane.b32.xlu1 %v6256_v39, %s9127_s12  ;;  %v6003_v26 = vpop.permute.xlu0 %6002  ;;  %v6296_v56 = vpack.i.bf16 %v8202_v27, %v8200_v61 }
 0x562   : > { %v4075_v37 = vsel %vm1827_vm7, %v4043_v9, %v5989_v13  ;;  %v6004_v35 = vunpack.i.l.bf16 %v6003_v26  ;;  %v6005_v43 = vunpack.i.h.bf16 %v6003_v26  ;;  %v8236_v9 = vld [vmem:[#allocation2 + $0x158] sm:$0xff] }
 0x563   : > { %v5998_v6 = vpop.permute.xlu1 %5997  ;;  %4302 = vmatmul.mubr.f32.gmra.mrb[12].mxu1 %v4075_v37  ;;  %6292 = vrot.lane.b32.xlu0 %v6291_v52, %s9131_s24  ;;  %v8241_v26 = vld [vmem:[#allocation2 + $0x13a] sm:$0xff]  ;;  %v8243_v37 = vld [vmem:[#allocation2 + $0x142] sm:$0xff]  ;;  %v6331_v11 = vpack.i.bf16 %v8236_v9, %v8234_v23 }
 0x564   : > { %v6000_v41 = vunpack.i.h.bf16 %v5998_v6  ;;  %v5999_v19 = vunpack.i.l.bf16 %v5998_v6  ;;  %5138 = vmatprep.mubr.msk.f32.mxu1 %vm324_vm0, %v8035_v47  ;;  %v4076_v47 = vsel %vm1827_vm7, %v4044_v28, %v5990_v24 }
 0x565   : > { %6287 = vrot.lane.b32.xlu1 %v8175_v58, %s9128_s15  ;;  %v6013_v7 = vpop.permute.xlu0 %6012 }
 0x566   : > { %v3917_v39 = vsel %vm1662_vm2, %v3885_v63, %v5999_v19  ;;  %v3918_v49 = vsel %vm1662_vm2, %v3886_v62, %v6000_v41  ;;  %v6014_v40 = vunpack.i.l.bf16 %v6013_v7  ;;  %v6015_v8 = vunpack.i.h.bf16 %v6013_v7 }
 0x567   : > { %v6008_v10 = vpop.permute.xlu1 %6007  ;;  %4307 = vmatmul.mubr.f32.gmra.mrb[14].mxu1 %v4076_v47  ;;  %6302 = vrot.lane.b32.xlu0 %v8211_v14, %s9126_s13  ;;  %v3949_v22 = vsel %vm1695_vm3, %v3917_v39, %v6004_v35  ;;  %v3950_v36 = vsel %vm1695_vm3, %v3918_v49, %v6005_v43  ;;  %v6326_v19 = vpack.i.bf16 %v8243_v37, %v8241_v26  ;;  %v2943_v35 = vld [vmem:[#allocation2 + $0x151] sm:$0xff] }
 0x568   : > { %v6010_v57 = vunpack.i.h.bf16 %v6008_v10  ;;  %v6009_v16 = vunpack.i.l.bf16 %v6008_v10  ;;  %5139 = vmatprep.mubr.msk.f32.mxu1 %vm324_vm0, %v8048_v34 }
 0x569   : > { %6297 = vrot.lane.b32.xlu1 %v6296_v56, %s9130_s0  ;;  %v6023_v30 = vpop.permute.xlu0 %6022 }
 0x56a   : > { %v3981_v5 = vsel %vm1728_vm4, %v3949_v22, %v6009_v16  ;;  %v6024_v33 = vunpack.i.l.bf16 %v6023_v30  ;;  %v3982_v54 = vsel %vm1728_vm4, %v3950_v36, %v6010_v57  ;;  %v6025_v55 = vunpack.i.h.bf16 %v6023_v30 }
 0x56b   : > { %v6018_v4 = vpop.permute.xlu1 %6017  ;;  %6312 = vrot.lane.b32.xlu0 %v6291_v52, %s9127_s12  ;;  %v4013_v46 = vsel %vm1761_vm5, %v3981_v5, %v6014_v40  ;;  %v4014_v12 = vsel %vm1761_vm5, %v3982_v54, %v6015_v8  ;;  %v8273_v8 = vld [vmem:[#allocation2 + $0x152] sm:$0xff] }
 0x56c   : > { %v6020_v60 = vunpack.i.h.bf16 %v6018_v4  ;;  %v6019_v34 = vunpack.i.l.bf16 %v6018_v4  ;;  %v8275_v4 = vld [vmem:[#allocation2 + $0x15a] sm:$0xff] }
 0x56d   : > { %6307 = vrot.lane.b32.xlu1 %v8175_v58, %s9132_s16  ;;  %v6033_v45 = vpop.permute.xlu0 %6032 }
 0x56e   : > { %v4045_v17 = vsel %vm1794_vm6, %v4013_v46, %v6019_v34  ;;  %v4046_v58 = vsel %vm1794_vm6, %v4014_v12, %v6020_v60  ;;  %v6034_v52 = vunpack.i.l.bf16 %v6033_v45  ;;  %v6035_v28 = vunpack.i.h.bf16 %v6033_v45 }
 0x56f   : > { %v6028_v13 = vpop.permute.xlu1 %6027  ;;  %v4077_v48 = vsel %vm1827_vm7, %v4045_v17, %v6024_v33  ;;  %6322 = vrot.lane.b32.xlu0 %v8211_v14, %s9128_s15  ;;  %v4078_v41 = vsel %vm1827_vm7, %v4046_v58, %v6025_v55  ;;  %v6361_v55 = vpack.i.bf16 %v8275_v4, %v8273_v8  ;;  %v2946_v58 = vld [vmem:[#allocation2 + $0x171] sm:$0xff] }
 0x570   : > { %v6029_v24 = vunpack.i.l.bf16 %v6028_v13  ;;  %4312 = vmatmul.mubr.f32.gmra.mrb[16].mxu1 %v4077_v48  ;;  %v6030_v21 = vunpack.i.h.bf16 %v6028_v13 }
 0x571   : > { %6317 = vrot.lane.b32.xlu1 %v6296_v56, %s9129_s19  ;;  %5140 = vmatprep.mubr.msk.f32.mxu1 %vm324_vm0, %v8050_v25  ;;  %v6043_v6 = vpop.permute.xlu0 %6042  ;;  %v2944_v25 = vld [vmem:[#allocation2 + $0x159] sm:$0xff] }
 0x572   : > { %v3887_v42 = vsel %vm324_vm0, %v8015_v59, %v6029_v24  ;;  %v6044_v59 = vunpack.i.l.bf16 %v6043_v6  ;;  %v3888_v7 = vsel %vm324_vm0, %v8017_v29, %v6030_v21  ;;  %v8263_v56 = vpack.i.bf16 %v2944_v25, %v2943_v35  ;;  %v2945_v24 = vld [vmem:[#allocation2 + $0x169] sm:$0xff] }
 0x573   : > { %v6038_v50 = vpop.permute.xlu1 %6037  ;;  %6332 = vrot.lane.b32.xlu0 %v6331_v11, %s9130_s0  ;;  %v3919_v39 = vsel %vm1662_vm2, %v3887_v42, %v6034_v52  ;;  %v3920_v57 = vsel %vm1662_vm2, %v3888_v7, %v6035_v28  ;;  %v6045_v16 = vunpack.i.h.bf16 %v6043_v6  ;;  %v2705_v52 = vld [vmem:[#allocation2 + $0x78] sm:$0xff]  ;;  %v8288_v6 = vld [vmem:[#allocation2 + $0x168] sm:$0xff]  ;;  %v8298_v28 = vpack.i.bf16 %v2946_v58, %v2945_v24  ;;  %v2707_v58 = vld [vmem:[#allocation2 + $0x90] sm:$0xff] }
 0x574   : > { %v6039_v63 = vunpack.i.l.bf16 %v6038_v50  ;;  %4317 = vmatmul.mubr.f32.gmra.mrb[18].mxu1 %v4078_v41  ;;  %v6040_v47 = vunpack.i.h.bf16 %v6038_v50  ;;  %v8325_v24 = vld [vmem:[#allocation2 + $0x172] sm:$0xff] }
 0x575   : > { %6327 = vrot.lane.b32.xlu1 %v6326_v19, %s9131_s24  ;;  %5141 = vmatprep.mubr.msk.f32.mxu1 %vm324_vm0, %v8059_v38  ;;  %v6053_v43 = vpop.permute.xlu0 %6052 }
 0x576   : > { %v3951_v62 = vsel %vm1695_vm3, %v3919_v39, %v6039_v63  ;;  %v6054_v38 = vunpack.i.l.bf16 %v6053_v43  ;;  %v3952_v29 = vsel %vm1695_vm3, %v3920_v57, %v6040_v47  ;;  %v6055_v54 = vunpack.i.h.bf16 %v6053_v43  ;;  %v2706_v63 = vld [vmem:[#allocation2 + $0x80] sm:$0xff] }
 0x577   : > { %v6048_v10 = vpop.permute.xlu1 %6047  ;;  %6342 = vrot.lane.b32.xlu0 %v8211_v14, %s9132_s16  ;;  %v3983_v22 = vsel %vm1728_vm4, %v3951_v62, %v6044_v59  ;;  %v3984_v33 = vsel %vm1728_vm4, %v3952_v29, %v6045_v16 }
 0x578   : > { %v6049_v49 = vunpack.i.l.bf16 %v6048_v10  ;;  %v6050_v40 = vunpack.i.h.bf16 %v6048_v10 }
 0x579   : > { %6337 = vrot.lane.b32.xlu1 %v8263_v56, %s9126_s13  ;;  %v6063_v5 = vpop.permute.xlu0 %6062 }
 0x57a   : > { %v4015_v30 = vsel %vm1761_vm5, %v3983_v22, %v6049_v49  ;;  %v6064_v60 = vunpack.i.l.bf16 %v6063_v5  ;;  %v4016_v13 = vsel %vm1761_vm5, %v3984_v33, %v6050_v40  ;;  %v6065_v48 = vunpack.i.h.bf16 %v6063_v5 }
 0x57b   : > { %v6058_v36 = vpop.permute.xlu1 %6057  ;;  %6352 = vrot.lane.b32.xlu0 %v6331_v11, %s9129_s19  ;;  %v4047_v34 = vsel %vm1794_vm6, %v4015_v30, %v6054_v38  ;;  %v8290_v11 = vld [vmem:[#allocation2 + $0x170] sm:$0xff] }
 0x57c   : > { %v6059_v14 = vunpack.i.l.bf16 %v6058_v36  ;;  %v6060_v46 = vunpack.i.h.bf16 %v6058_v36  ;;  %v3889_v50 = vsel %vm324_vm0, %v2705_v52, %v6064_v60  ;;  %v3890_v39 = vsel %vm324_vm0, %v2706_v63, %v6065_v48 }
 0x57d   : > { %6347 = vrot.lane.b32.xlu1 %v6326_v19, %s9127_s12  ;;  %v6073_v45 = vpop.permute.xlu0 %6072  ;;  %v4048_v19 = vsel %vm1794_vm6, %v4016_v13, %v6055_v54  ;;  %v6366_v47 = vpack.i.bf16 %v8290_v11, %v8288_v6  ;;  %v2916_v13 = vld [vmem:[#allocation2 + $0x188] sm:$0xff] }
 0x57e   : > { %v4079_v17 = vsel %vm1827_vm7, %v4047_v34, %v6059_v14  ;;  %v6074_v41 = vunpack.i.l.bf16 %v6073_v45  ;;  %v6075_v59 = vunpack.i.h.bf16 %v6073_v45 }
 0x57f   : > { %v6068_v12 = vpop.permute.xlu1 %6067  ;;  %4322 = vmatmul.mubr.f32.gmra.mrb[20].mxu1 %v4079_v17  ;;  %6362 = vrot.lane.b32.xlu0 %v6361_v55, %s9131_s24  ;;  %v2915_v17 = vld [vmem:[#allocation2 + $0x180] sm:$0xff] }
 0x580   : > { %v6070_v21 = vunpack.i.h.bf16 %v6068_v12  ;;  %v6069_v42 = vunpack.i.l.bf16 %v6068_v12  ;;  %5142 = vmatprep.mubr.msk.f32.mxu1 %vm324_vm0, %v8061_v51  ;;  %v4080_v51 = vsel %vm1827_vm7, %v4048_v19, %v6060_v46  ;;  %v8323_v12 = vld [vmem:[#allocation2 + $0x16a] sm:$0xff] }
 0x581   : > { %6357 = vrot.lane.b32.xlu1 %v8263_v56, %s9128_s15  ;;  %v6083_v25 = vpop.permute.xlu0 %6082 }
 0x582   : > { %v3921_v35 = vsel %vm1662_vm2, %v3889_v50, %v6069_v42  ;;  %v3922_v62 = vsel %vm1662_vm2, %v3890_v39, %v6070_v21  ;;  %v6084_v57 = vunpack.i.l.bf16 %v6083_v25  ;;  %v6085_v29 = vunpack.i.h.bf16 %v6083_v25  ;;  %v2947_v39 = vld [vmem:[#allocation2 + $0x181] sm:$0xff] }
 0x583   : > { %v6078_v7 = vpop.permute.xlu1 %6077  ;;  %4327 = vmatmul.mubr.f32.gmra.mrb[22].mxu1 %v4080_v51  ;;  %6372 = vrot.lane.b32.xlu0 %v8298_v28, %s9126_s13  ;;  %v3953_v49 = vsel %vm1695_vm3, %v3921_v35, %v6074_v41  ;;  %v3954_v38 = vsel %vm1695_vm3, %v3922_v62, %v6075_v59  ;;  %v6401_v41 = vpack.i.bf16 %v2916_v13, %v2915_v17  ;;  %v2963_v51 = vld [vmem:[#allocation2 + $0xc2] sm:$0xff] }
 0x584   : > { %v6080_v43 = vunpack.i.h.bf16 %v6078_v7  ;;  %v6079_v10 = vunpack.i.l.bf16 %v6078_v7  ;;  %5143 = vmatprep.mubr.msk.f32.mxu1 %vm324_vm0, %v8074_v32  ;;  %v6396_v35 = vpack.i.bf16 %v8325_v24, %v8323_v12  ;;  %v2948_v59 = vld [vmem:[#allocation2 + $0x189] sm:$0xff]  ;;  %v2708_v7 = vld [vmem:[#allocation2 + $0x98] sm:$0xff] }
 0x585   : > { %6367 = vrot.lane.b32.xlu1 %v6366_v47, %s9130_s0  ;;  %v6093_v22 = vpop.permute.xlu0 %6092 }
 0x586   : > { %v3985_v16 = vsel %vm1728_vm4, %v3953_v49, %v6079_v10  ;;  %v6094_v5 = vunpack.i.l.bf16 %v6093_v22  ;;  %v3986_v30 = vsel %vm1728_vm4, %v3954_v38, %v6080_v43  ;;  %v6095_v60 = vunpack.i.h.bf16 %v6093_v22 }
 0x587   : > { %v6088_v40 = vpop.permute.xlu1 %6087  ;;  %6382 = vrot.lane.b32.xlu0 %v6361_v55, %s9127_s12  ;;  %v4017_v14 = vsel %vm1761_vm5, %v3985_v16, %v6084_v57  ;;  %v4018_v45 = vsel %vm1761_vm5, %v3986_v30, %v6085_v29  ;;  %v2962_v55 = vld [vmem:[#allocation2 + $0xb2] sm:$0xff]  ;;  %v6406_v38 = vpack.i.bf16 %v2948_v59, %v2947_v39 }
 0x588   : > { %v6090_v36 = vunpack.i.h.bf16 %v6088_v40  ;;  %v6089_v32 = vunpack.i.l.bf16 %v6088_v40  ;;  %v2710_v39 = vld [vmem:[#allocation2 + $0xb0] sm:$0xff] }
 0x589   : > { %6377 = vrot.lane.b32.xlu1 %v8263_v56, %s9132_s16  ;;  %v6103_v33 = vpop.permute.xlu0 %6102 }
 0x58a   : > { %v4049_v54 = vsel %vm1794_vm6, %v4017_v14, %v6089_v32  ;;  %v4050_v56 = vsel %vm1794_vm6, %v4018_v45, %v6090_v36  ;;  %v6104_v52 = vunpack.i.l.bf16 %v6103_v33 }
 0x58b   : > { %v6098_v34 = vpop.permute.xlu1 %6097  ;;  %v4081_v46 = vsel %vm1827_vm7, %v4049_v54, %v6094_v5  ;;  %6392 = vrot.lane.b32.xlu0 %v8298_v28, %s9128_s15  ;;  %v4082_v63 = vsel %vm1827_vm7, %v4050_v56, %v6095_v60 }
 0x58c   : > { %v6099_v48 = vunpack.i.l.bf16 %v6098_v34  ;;  %4332 = vmatmul.mubr.f32.gmra.mrb[24].mxu1 %v4081_v46  ;;  %v6100_v21 = vunpack.i.h.bf16 %v6098_v34 }
 0x58d   : > { %6387 = vrot.lane.b32.xlu1 %v6366_v47, %s9129_s19  ;;  %5144 = vmatprep.mubr.msk.f32.mxu1 %vm324_vm0, %v2962_v55  ;;  %v6113_v50 = vpop.permute.xlu0 %6112  ;;  %v6105_v47 = vunpack.i.h.bf16 %v6103_v33 }
 0x58e   : > { %v3891_v42 = vsel %vm324_vm0, %v2707_v58, %v6099_v48  ;;  %v6114_v43 = vunpack.i.l.bf16 %v6113_v50  ;;  %v3892_v10 = vsel %vm324_vm0, %v2708_v7, %v6100_v21  ;;  %v6115_v5 = vunpack.i.h.bf16 %v6113_v50  ;;  %v2964_v21 = vld [vmem:[#allocation2 + $0xca] sm:$0xff] }
 0x58f   : > { %v6108_v19 = vpop.permute.xlu1 %6107  ;;  %6402 = vrot.lane.b32.xlu0 %v6401_v41, %s9130_s0  ;;  %v3923_v62 = vsel %vm1662_vm2, %v3891_v42, %v6104_v52  ;;  %v3924_v40 = vsel %vm1662_vm2, %v3892_v10, %v6105_v47  ;;  %v8352_v42 = vld [vmem:[#allocation2 + $0x182] sm:$0xff] }
 0x590   : > { %v6109_v25 = vunpack.i.l.bf16 %v6108_v19  ;;  %4337 = vmatmul.mubr.f32.gmra.mrb[26].mxu1 %v4082_v63  ;;  %v6110_v49 = vunpack.i.h.bf16 %v6108_v19  ;;  %v2709_v50 = vld [vmem:[#allocation2 + $0xa8] sm:$0xff] }
 0x591   : > { %6397 = vrot.lane.b32.xlu1 %v6396_v35, %s9131_s24  ;;  %5145 = vmatprep.mubr.msk.f32.mxu1 %vm324_vm0, %v2963_v51  ;;  %v6123_v16 = vpop.permute.xlu0 %6122  ;;  %v2949_v51 = vld [vmem:[#allocation2 + $0x199] sm:$0xff] }
 0x592   : > { %v3955_v57 = vsel %vm1695_vm3, %v3923_v62, %v6109_v25  ;;  %v6124_v36 = vunpack.i.l.bf16 %v6123_v16  ;;  %v3956_v32 = vsel %vm1695_vm3, %v3924_v40, %v6110_v49  ;;  %v6125_v46 = vunpack.i.h.bf16 %v6123_v16  ;;  %v2918_v40 = vld [vmem:[#allocation2 + $0x1a0] sm:$0xff] }
 0x593   : > { %v6118_v22 = vpop.permute.xlu1 %6117  ;;  %6412 = vrot.lane.b32.xlu0 %v8298_v28, %s9132_s16  ;;  %v3987_v30 = vsel %vm1728_vm4, %v3955_v57, %v6114_v43  ;;  %v3988_v28 = vsel %vm1728_vm4, %v3956_v32, %v6115_v5 }
 0x594   : > { %v6119_v29 = vunpack.i.l.bf16 %v6118_v22  ;;  %v6120_v14 = vunpack.i.h.bf16 %v6118_v22  ;;  %v8366_v22 = vld [vmem:[#allocation2 + $0x18a] sm:$0xff] }
 0x595   : > { %6407 = vrot.lane.b32.xlu1 %v6406_v38, %s9126_s13  ;;  %v6133_v33 = vpop.permute.xlu0 %6132 }
 0x596   : > { %v4019_v54 = vsel %vm1761_vm5, %v3987_v30, %v6119_v29  ;;  %v6134_v45 = vunpack.i.l.bf16 %v6133_v33  ;;  %v4020_v56 = vsel %vm1761_vm5, %v3988_v28, %v6120_v14  ;;  %v6135_v58 = vunpack.i.h.bf16 %v6133_v33 }
 0x597   : > { %v6128_v60 = vpop.permute.xlu1 %6127  ;;  %6422 = vrot.lane.b32.xlu0 %v6401_v41, %s9129_s19  ;;  %v4051_v17 = vsel %vm1794_vm6, %v4019_v54, %v6124_v36  ;;  %v4052_v25 = vsel %vm1794_vm6, %v4020_v56, %v6125_v46  ;;  %v2950_v36 = vld [vmem:[#allocation2 + $0x1a1] sm:$0xff]  ;;  %s6546_s19 = smov [#allocation6]  }
 0x598   : > { %v6129_v34 = vunpack.i.l.bf16 %v6128_v60  ;;  %v6130_v13 = vunpack.i.h.bf16 %v6128_v60  ;;  %v3893_v63 = vsel %vm324_vm0, %v2709_v50, %v6134_v45  ;;  %v3894_v62 = vsel %vm324_vm0, %v2710_v39, %v6135_v58  ;;  %v2966_v58 = vld [vmem:[#allocation2 + $0xe2] sm:$0xff] }
 0x599   : > { %6417 = vrot.lane.b32.xlu1 %v6396_v35, %s9127_s12  ;;  %v6143_v48 = vpop.permute.xlu0 %6142  ;;  %v2712_v39 = vld [vmem:[#allocation2 + $0xc8] sm:$0xff]  ;;  %s5003_s12 = scalar_lea.sflag [#allocation5], %s6698_s22 }
 0x59a   : > { %v4083_v55 = vsel %vm1827_vm7, %v4051_v17, %v6129_v34  ;;  %v6144_v35 = vunpack.i.l.bf16 %v6143_v48  ;;  %v4084_v47 = vsel %vm1827_vm7, %v4052_v25, %v6130_v13  ;;  %v6145_v43 = vunpack.i.h.bf16 %v6143_v48 }
 0x59b   : > { %v6138_v52 = vpop.permute.xlu1 %6137  ;;  %4342 = vmatmul.mubr.f32.gmra.mrb[28].mxu1 %v4083_v55  ;;  %3587 = vrot.lane.b32.xlu0 %v8352_v42, %s9131_s24 }
 0x59c   : > { %v6140_v41 = vunpack.i.h.bf16 %v6138_v52  ;;  %v6139_v19 = vunpack.i.l.bf16 %v6138_v52  ;;  %5146 = vmatprep.mubr.msk.f32.mxu1 %vm324_vm0, %v2964_v21  ;;  %v2711_v21 = vld [vmem:[#allocation2 + $0xc0] sm:$0xff] }
 0x59d   : > { %6427 = vrot.lane.b32.xlu1 %v6406_v38, %s9128_s15  ;;  %v6153_v7 = vpop.permute.xlu0 %6152 }
 0x59e   : > { %v3925_v59 = vsel %vm1662_vm2, %v3893_v63, %v6139_v19  ;;  %v3926_v49 = vsel %vm1662_vm2, %v3894_v62, %v6140_v41  ;;  %v6154_v29 = vunpack.i.l.bf16 %v6153_v7  ;;  %v6155_v14 = vunpack.i.h.bf16 %v6153_v7 }
 0x59f   : > { %v6148_v10 = vpop.permute.xlu1 %6147  ;;  %4347 = vmatmul.mubr.f32.gmra.mrb[30].mxu1 %v4084_v47  ;;  %3843 = vrot.lane.b32.xlu0 %v2949_v51, %s9126_s13  ;;  %v3957_v38 = vsel %vm1695_vm3, %v3925_v59, %v6144_v35  ;;  %v3958_v32 = vsel %vm1695_vm3, %v3926_v49, %v6145_v43 }
 0x5a0   : > { %v6150_v57 = vunpack.i.h.bf16 %v6148_v10  ;;  %v6149_v16 = vunpack.i.l.bf16 %v6148_v10  ;;  %5147 = vmatprep.mubr.msk.f32.mxu1 %vm324_vm0, %v8093_v44 }
 0x5a1   : > { %3589 = vrot.lane.b32.xlu1 %v8366_v22, %s9131_s24  ;;  %v6163_v30 = vpop.permute.xlu0 %6162 }
 0x5a2   : > { %v3989_v5 = vsel %vm1728_vm4, %v3957_v38, %v6149_v16  ;;  %v6164_v44 = vunpack.i.l.bf16 %v6163_v30  ;;  %v3990_v54 = vsel %vm1728_vm4, %v3958_v32, %v6150_v57  ;;  %v6165_v17 = vunpack.i.h.bf16 %v6163_v30 }
 0x5a3   : > { %v6158_v33 = vpop.permute.xlu1 %6157  ;;  %3717 = vrot.lane.b32.xlu0 %v2918_v40, %s9130_s0  ;;  %v4021_v28 = vsel %vm1761_vm5, %v3989_v5, %v6154_v29  ;;  %v4022_v55 = vsel %vm1761_vm5, %v3990_v54, %v6155_v14  ;;  %s6469_s0 = sshll.u32 %s6546_s19, 4  ;;  %s6470_s0 = int_to_ptr.vmem [resolvable:$false] %s6469_s0 }
 0x5a4   : > { %v6160_v60 = vunpack.i.h.bf16 %v6158_v33  ;;  %v6159_v34 = vunpack.i.l.bf16 %v6158_v33  ;;  %s6471_s24 = scalar_lea.vmem %s6470_s0, 8192 }
 0x5a5   : > { %3845 = vrot.lane.b32.xlu1 %v2950_v36, %s9126_s13  ;;  %v6173_v46 = vpop.permute.xlu0 %6172  ;;  %s9020_s13 = scalar_lea.hbm %s9102_s8, %s5174_s10 }
 0x5a6   : > { %v4053_v45 = vsel %vm1794_vm6, %v4021_v28, %v6159_v34  ;;  %v4054_v52 = vsel %vm1794_vm6, %v4022_v55, %v6160_v60  ;;  %v6174_v50 = vunpack.i.l.bf16 %v6173_v46  ;;  %v6175_v59 = vunpack.i.h.bf16 %v6173_v46  ;;  %v2968_v55 = vld [vmem:[#allocation2 + $0xfa] sm:$0xff] }
 0x5a7   : > { %v6168_v13 = vpop.permute.xlu1 %6167  ;;  %v4085_v48 = vsel %vm1827_vm7, %v4053_v45, %v6164_v44  ;;  %v4086_v25 = vsel %vm1827_vm7, %v4054_v52, %v6165_v17 }
 0x5a8   : > { %v6169_v56 = vunpack.i.l.bf16 %v6168_v13  ;;  %4352 = vmatmul.mubr.f32.gmra.mrb[32].mxu1 %v4085_v48  ;;  %v6170_v41 = vunpack.i.h.bf16 %v6168_v13 }
 0x5a9   : > { %5148 = vmatprep.mubr.msk.f32.mxu1 %vm324_vm0, %v2966_v58  ;;  %v6183_v63 = vpop.permute.xlu0 %6182 }
 0x5aa   : > { %v3895_v19 = vsel %vm324_vm0, %v2711_v21, %v6169_v56  ;;  %v6184_v47 = vunpack.i.l.bf16 %v6183_v63  ;;  %v3896_v62 = vsel %vm324_vm0, %v2712_v39, %v6170_v41  ;;  %v6185_v29 = vunpack.i.h.bf16 %v6183_v63  ;;  %v2713_v56 = vld [vmem:[#allocation2 + $0xd8] sm:$0xff] }
 0x5ab   : > { %v6178_v35 = vpop.permute.xlu1 %6177  ;;  %v3927_v7 = vsel %vm1662_vm2, %v3895_v19, %v6174_v50  ;;  %v3928_v38 = vsel %vm1662_vm2, %v3896_v62, %v6175_v59  ;;  %v2714_v19 = vld [vmem:[#allocation2 + $0xe0] sm:$0xff] }
 0x5ac   : > { %v6179_v51 = vunpack.i.l.bf16 %v6178_v35  ;;  %4357 = vmatmul.mubr.f32.gmra.mrb[34].mxu1 %v4086_v25  ;;  %v6180_v43 = vunpack.i.h.bf16 %v6178_v35 }
 0x5ad   : > { %5149 = vmatprep.mubr.msk.f32.mxu1 %vm324_vm0, %v8112_v53  ;;  %v6193_v49 = vpop.permute.xlu0 %6192 }
 0x5ae   : > { %v3959_v10 = vsel %vm1695_vm3, %v3927_v7, %v6179_v51  ;;  %v6194_v5 = vunpack.i.l.bf16 %v6193_v49  ;;  %v3960_v30 = vsel %vm1695_vm3, %v3928_v38, %v6180_v43  ;;  %v6195_v54 = vunpack.i.h.bf16 %v6193_v49 }
 0x5af   : > { %v6188_v57 = vpop.permute.xlu1 %6187  ;;  %v3991_v40 = vsel %vm1728_vm4, %v3959_v10, %v6184_v47  ;;  %v3992_v44 = vsel %vm1728_vm4, %v3960_v30, %v6185_v29 }
 0x5b0   : > { %v6189_v16 = vunpack.i.l.bf16 %v6188_v57  ;;  %v6190_v36 = vunpack.i.h.bf16 %v6188_v57 }
 0x5b1   : > { %v6203_v32 = vpop.permute.xlu0 %6202 }
 0x5b2   : > { %v4023_v53 = vsel %vm1761_vm5, %v3991_v40, %v6189_v16  ;;  %v6204_v60 = vunpack.i.l.bf16 %v6203_v32  ;;  %v4024_v17 = vsel %vm1761_vm5, %v3992_v44, %v6190_v36  ;;  %v6205_v13 = vunpack.i.h.bf16 %v6203_v32 }
 0x5b3   : > { %v6198_v14 = vpop.permute.xlu1 %6197  ;;  %v4055_v34 = vsel %vm1794_vm6, %v4023_v53, %v6194_v5  ;;  %v4056_v41 = vsel %vm1794_vm6, %v4024_v17, %v6195_v54 }
 0x5b4   : > { %v6199_v33 = vunpack.i.l.bf16 %v6198_v14  ;;  %v6200_v28 = vunpack.i.h.bf16 %v6198_v14  ;;  %v3897_v21 = vsel %vm324_vm0, %v2713_v56, %v6204_v60  ;;  %v3898_v51 = vsel %vm324_vm0, %v2714_v19, %v6205_v13 }
 0x5b5   : > { %v6213_v46 = vpop.permute.xlu0 %6212 }
 0x5b6   : > { %v4087_v45 = vsel %vm1827_vm7, %v4055_v34, %v6199_v33  ;;  %v6214_v50 = vunpack.i.l.bf16 %v6213_v46  ;;  %v4088_v25 = vsel %vm1827_vm7, %v4056_v41, %v6200_v28  ;;  %v6215_v39 = vunpack.i.h.bf16 %v6213_v46  ;;  %v2715_v28 = vld [vmem:[#allocation2 + $0xf0] sm:$0xff] }
 0x5b7   : > { %v6208_v48 = vpop.permute.xlu1 %6207  ;;  %4362 = vmatmul.mubr.f32.gmra.mrb[36].mxu1 %v4087_v45 }
 0x5b8   : > { %v6210_v58 = vunpack.i.h.bf16 %v6208_v48  ;;  %v6209_v52 = vunpack.i.l.bf16 %v6208_v48  ;;  %5150 = vmatprep.mubr.msk.f32.mxu1 %vm324_vm0, %v2968_v55 }
 0x5b9   : > { %v6223_v35 = vpop.permute.xlu0 %6222 }
 0x5ba   : > { %v3929_v63 = vsel %vm1662_vm2, %v3897_v21, %v6209_v52  ;;  %v3930_v7 = vsel %vm1662_vm2, %v3898_v51, %v6210_v58  ;;  %v6224_v10 = vunpack.i.l.bf16 %v6223_v35  ;;  %v6225_v38 = vunpack.i.h.bf16 %v6223_v35  ;;  %v2716_v58 = vld [vmem:[#allocation2 + $0xf8] sm:$0xff] }
 0x5bb   : > { %v6218_v59 = vpop.permute.xlu1 %6217  ;;  %4367 = vmatmul.mubr.f32.gmra.mrb[38].mxu1 %v4088_v25  ;;  %v3961_v43 = vsel %vm1695_vm3, %v3929_v63, %v6214_v50  ;;  %v3962_v16 = vsel %vm1695_vm3, %v3930_v7, %v6215_v39 }
 0x5bc   : > { %v6220_v47 = vunpack.i.h.bf16 %v6218_v59  ;;  %v6219_v62 = vunpack.i.l.bf16 %v6218_v59  ;;  %5151 = vmatprep.mubr.msk.f32.mxu1 %vm324_vm0, %v8155_v2 }
 0x5bd   : > { %v6233_v57 = vpop.permute.xlu0 %6232 }
 0x5be   : > { %v3993_v49 = vsel %vm1728_vm4, %v3961_v43, %v6219_v62  ;;  %v6234_v40 = vunpack.i.l.bf16 %v6233_v57  ;;  %v3994_v5 = vsel %vm1728_vm4, %v3962_v16, %v6220_v47  ;;  %v6235_v14 = vunpack.i.h.bf16 %v6233_v57 }
 0x5bf   : > { %v6228_v29 = vpop.permute.xlu1 %6227  ;;  %v4025_v32 = vsel %vm1761_vm5, %v3993_v49, %v6224_v10  ;;  %v4026_v54 = vsel %vm1761_vm5, %v3994_v5, %v6225_v38 }
 0x5c0   : > { %v6230_v30 = vunpack.i.h.bf16 %v6228_v29  ;;  %v6229_v36 = vunpack.i.l.bf16 %v6228_v29 }
 0x5c1   : > { %v6243_v53 = vpop.permute.xlu0 %6242 }
 0x5c2   : > { %v4057_v2 = vsel %vm1794_vm6, %v4025_v32, %v6229_v36  ;;  %v4058_v34 = vsel %vm1794_vm6, %v4026_v54, %v6230_v30  ;;  %v6244_v46 = vunpack.i.l.bf16 %v6243_v53  ;;  %v6245_v52 = vunpack.i.h.bf16 %v6243_v53 }
 0x5c3   : > { %v6238_v33 = vpop.permute.xlu1 %6237  ;;  %v4089_v44 = vsel %vm1827_vm7, %v4057_v2, %v6234_v40  ;;  %v4090_v55 = vsel %vm1827_vm7, %v4058_v34, %v6235_v14  ;;  %v2717_v2 = vld [vmem:[#allocation2 + $0x108] sm:$0xff]  ;;  %v2718_v34 = vld [vmem:[#allocation2 + $0x110] sm:$0xff] }
 0x5c4   : > { %v6239_v60 = vunpack.i.l.bf16 %v6238_v33  ;;  %4372 = vmatmul.mubr.f32.gmra.mrb[40].mxu1 %v4089_v44  ;;  %v6240_v45 = vunpack.i.h.bf16 %v6238_v33 }
 0x5c5   : > { %5152 = vmatprep.mubr.msk.f32.mxu1 %vm324_vm0, %v8157_v15  ;;  %v6253_v13 = vpop.permute.xlu0 %6252 }
 0x5c6   : > { %v3899_v17 = vsel %vm324_vm0, %v2715_v28, %v6239_v60  ;;  %v6254_v50 = vunpack.i.l.bf16 %v6253_v13  ;;  %v3900_v41 = vsel %vm324_vm0, %v2716_v58, %v6240_v45  ;;  %v6255_v39 = vunpack.i.h.bf16 %v6253_v13 }
 0x5c7   : > { %v6248_v48 = vpop.permute.xlu1 %6247  ;;  %v3931_v21 = vsel %vm1662_vm2, %v3899_v17, %v6244_v46  ;;  %v3932_v51 = vsel %vm1662_vm2, %v3900_v41, %v6245_v52 }
 0x5c8   : > { %v6249_v56 = vunpack.i.l.bf16 %v6248_v48  ;;  %4377 = vmatmul.mubr.f32.gmra.mrb[42].mxu1 %v4090_v55  ;;  %v6250_v15 = vunpack.i.h.bf16 %v6248_v48 }
 0x5c9   : > { %5153 = vmatprep.mubr.msk.f32.mxu1 %vm324_vm0, %v8185_v18  ;;  %v6263_v63 = vpop.permute.xlu0 %6262 }
 0x5ca   : > { %v3963_v19 = vsel %vm1695_vm3, %v3931_v21, %v6249_v56  ;;  %v6264_v7 = vunpack.i.l.bf16 %v6263_v63  ;;  %v3964_v47 = vsel %vm1695_vm3, %v3932_v51, %v6250_v15  ;;  %v6265_v16 = vunpack.i.h.bf16 %v6263_v63 }
 0x5cb   : > { %v6258_v35 = vpop.permute.xlu1 %6257  ;;  %v3995_v59 = vsel %vm1728_vm4, %v3963_v19, %v6254_v50  ;;  %v3996_v57 = vsel %vm1728_vm4, %v3964_v47, %v6255_v39 }
 0x5cc   : > { %v6259_v25 = vunpack.i.l.bf16 %v6258_v35  ;;  %v6260_v62 = vunpack.i.h.bf16 %v6258_v35 }
 0x5cd   : > { %v6273_v43 = vpop.permute.xlu0 %6272 }
 0x5ce   : > { %v4027_v18 = vsel %vm1761_vm5, %v3995_v59, %v6259_v25  ;;  %v6274_v38 = vunpack.i.l.bf16 %v6273_v43  ;;  %v4028_v36 = vsel %vm1761_vm5, %v3996_v57, %v6260_v62  ;;  %v6275_v32 = vunpack.i.h.bf16 %v6273_v43 }
 0x5cf   : > { %v6268_v10 = vpop.permute.xlu1 %6267  ;;  %v4059_v29 = vsel %vm1794_vm6, %v4027_v18, %v6264_v7  ;;  %v4060_v60 = vsel %vm1794_vm6, %v4028_v36, %v6265_v16  ;;  %v2720_v36 = vld [vmem:[#allocation2 + $0x128] sm:$0xff] }
 0x5d0   : > { %v6269_v49 = vunpack.i.l.bf16 %v6268_v10  ;;  %v6270_v40 = vunpack.i.h.bf16 %v6268_v10  ;;  %v3901_v44 = vsel %vm324_vm0, %v2717_v2, %v6274_v38  ;;  %v3902_v17 = vsel %vm324_vm0, %v2718_v34, %v6275_v32 }
 0x5d1   : > { %v6283_v5 = vpop.permute.xlu0 %6282 }
 0x5d2   : > { %v4091_v30 = vsel %vm1827_vm7, %v4059_v29, %v6269_v49  ;;  %v6284_v54 = vunpack.i.l.bf16 %v6283_v5  ;;  %v4092_v45 = vsel %vm1827_vm7, %v4060_v60, %v6270_v40  ;;  %v6285_v13 = vunpack.i.h.bf16 %v6283_v5  ;;  %v2719_v49 = vld [vmem:[#allocation2 + $0x120] sm:$0xff] }
 0x5d3   : > { %v6278_v53 = vpop.permute.xlu1 %6277  ;;  %4382 = vmatmul.mubr.f32.gmra.mrb[44].mxu1 %v4091_v30 }
 0x5d4   : > { %v6280_v14 = vunpack.i.h.bf16 %v6278_v53  ;;  %v6279_v33 = vunpack.i.l.bf16 %v6278_v53  ;;  %5154 = vmatprep.mubr.msk.f32.mxu1 %vm324_vm0, %v8187_v20 }
 0x5d5   : > { %v6293_v46 = vpop.permute.xlu0 %6292 }
 0x5d6   : > { %v3933_v28 = vsel %vm1662_vm2, %v3901_v44, %v6279_v33  ;;  %v3934_v55 = vsel %vm1662_vm2, %v3902_v17, %v6280_v14  ;;  %v6294_v52 = vunpack.i.l.bf16 %v6293_v46  ;;  %v6295_v15 = vunpack.i.h.bf16 %v6293_v46 }
 0x5d7   : > { %v6288_v48 = vpop.permute.xlu1 %6287  ;;  %4387 = vmatmul.mubr.f32.gmra.mrb[46].mxu1 %v4092_v45  ;;  %v3965_v58 = vsel %vm1695_vm3, %v3933_v28, %v6284_v54  ;;  %v3966_v41 = vsel %vm1695_vm3, %v3934_v55, %v6285_v13 }
 0x5d8   : > { %v6290_v56 = vunpack.i.h.bf16 %v6288_v48  ;;  %v6289_v20 = vunpack.i.l.bf16 %v6288_v48  ;;  %5155 = vmatprep.mubr.msk.f32.mxu1 %vm324_vm0, %v8241_v26 }
 0x5d9   : > { %v6303_v50 = vpop.permute.xlu0 %6302 }
 0x5da   : > { %v3997_v21 = vsel %vm1728_vm4, %v3965_v58, %v6289_v20  ;;  %v6304_v63 = vunpack.i.l.bf16 %v6303_v50  ;;  %v3998_v35 = vsel %vm1728_vm4, %v3966_v41, %v6290_v56  ;;  %v6305_v7 = vunpack.i.h.bf16 %v6303_v50 }
 0x5db   : > { %v6298_v19 = vpop.permute.xlu1 %6297  ;;  %v4029_v39 = vsel %vm1761_vm5, %v3997_v21, %v6294_v52  ;;  %v4030_v43 = vsel %vm1761_vm5, %v3998_v35, %v6295_v15 }
 0x5dc   : > { %v6300_v25 = vunpack.i.h.bf16 %v6298_v19  ;;  %v6299_v51 = vunpack.i.l.bf16 %v6298_v19 }
 0x5dd   : > { %v6313_v59 = vpop.permute.xlu0 %6312 }
 0x5de   : > { %v4061_v26 = vsel %vm1794_vm6, %v4029_v39, %v6299_v51  ;;  %v4062_v10 = vsel %vm1794_vm6, %v4030_v43, %v6300_v25  ;;  %v6314_v57 = vunpack.i.l.bf16 %v6313_v59  ;;  %v6315_v32 = vunpack.i.h.bf16 %v6313_v59 }
 0x5df   : > { %v6308_v47 = vpop.permute.xlu1 %6307  ;;  %v4093_v62 = vsel %vm1827_vm7, %v4061_v26, %v6304_v63  ;;  %v4094_v5 = vsel %vm1827_vm7, %v4062_v10, %v6305_v7 }
 0x5e0   : > { %v6309_v18 = vunpack.i.l.bf16 %v6308_v47  ;;  %4392 = vmatmul.mubr.f32.gmra.mrb[48].mxu1 %v4093_v62  ;;  %v6310_v16 = vunpack.i.h.bf16 %v6308_v47 }
 0x5e1   : > { %5156 = vmatprep.mubr.msk.f32.mxu1 %vm324_vm0, %v8243_v37  ;;  %v6323_v29 = vpop.permute.xlu0 %6322 }
 0x5e2   : > { %v3903_v38 = vsel %vm324_vm0, %v2719_v49, %v6309_v18  ;;  %v6324_v2 = vunpack.i.l.bf16 %v6323_v29  ;;  %v3904_v14 = vsel %vm324_vm0, %v2720_v36, %v6310_v16  ;;  %v6325_v28 = vunpack.i.h.bf16 %v6323_v29 }
 0x5e3   : > { %v6318_v40 = vpop.permute.xlu1 %6317  ;;  %v3935_v53 = vsel %vm1662_vm2, %v3903_v38, %v6314_v57  ;;  %v3936_v34 = vsel %vm1662_vm2, %v3904_v14, %v6315_v32 }
 0x5e4   : > { %v6319_v30 = vunpack.i.l.bf16 %v6318_v40  ;;  %4397 = vmatmul.mubr.f32.gmra.mrb[50].mxu1 %v4094_v5  ;;  %v6320_v37 = vunpack.i.h.bf16 %v6318_v40 }
 0x5e5   : > { %5157 = vmatprep.mubr.msk.f32.mxu1 %vm324_vm0, %v8273_v8  ;;  %v6333_v44 = vpop.permute.xlu0 %6332 }
 0x5e6   : > { %v3967_v33 = vsel %vm1695_vm3, %v3935_v53, %v6319_v30  ;;  %v6334_v45 = vunpack.i.l.bf16 %v6333_v44  ;;  %v3968_v17 = vsel %vm1695_vm3, %v3936_v34, %v6320_v37  ;;  %v6335_v58 = vunpack.i.h.bf16 %v6333_v44 }
 0x5e7   : > { %v6328_v54 = vpop.permute.xlu1 %6327  ;;  %v3999_v46 = vsel %vm1728_vm4, %v3967_v33, %v6324_v2  ;;  %v4000_v20 = vsel %vm1728_vm4, %v3968_v17, %v6325_v28 }
 0x5e8   : > { %v6329_v60 = vunpack.i.l.bf16 %v6328_v54  ;;  %v6330_v13 = vunpack.i.h.bf16 %v6328_v54 }
 0x5e9   : > { %v6343_v48 = vpop.permute.xlu0 %6342 }
 0x5ea   : > { %v4031_v8 = vsel %vm1761_vm5, %v3999_v46, %v6329_v60  ;;  %v6344_v52 = vunpack.i.l.bf16 %v6343_v48  ;;  %v4032_v19 = vsel %vm1761_vm5, %v4000_v20, %v6330_v13  ;;  %v6345_v63 = vunpack.i.h.bf16 %v6343_v48  ;;  %v4442_v46 = vld [vmem:[%s9101_s7] sm:$0xff] }
 0x5eb   : > { %v6338_v55 = vpop.permute.xlu1 %6337  ;;  %v4063_v21 = vsel %vm1794_vm6, %v4031_v8, %v6334_v45  ;;  %v4064_v26 = vsel %vm1794_vm6, %v4032_v19, %v6335_v58  ;;  %v4443_v45 = vld [vmem:[%s9101_s7 + $0x8] sm:$0xff] }
 0x5ec   : > { %v6339_v56 = vunpack.i.l.bf16 %v6338_v55  ;;  %v6340_v50 = vunpack.i.h.bf16 %v6338_v55  ;;  %v3905_v39 = vsel %vm324_vm0, %v8200_v61, %v6344_v52  ;;  %v3906_v43 = vsel %vm324_vm0, %v8202_v27, %v6345_v63 }
 0x5ed   : > { %v6353_v41 = vpop.permute.xlu0 %6352  ;;  %v8500_v8 = vpack.c.bf16 %v4443_v45, %v4442_v46  ;;  %v2982_v46 = vld [vmem:[#allocation2 + $0x1a2] sm:$0xff] }
 0x5ee   : > { %v4095_v15 = vsel %vm1827_vm7, %v4063_v21, %v6339_v56  ;;  %v6354_v59 = vunpack.i.l.bf16 %v6353_v41  ;;  %v4096_v62 = vsel %vm1827_vm7, %v4064_v26, %v6340_v50  ;;  %v6355_v18 = vunpack.i.h.bf16 %v6353_v41 }
 0x5ef   : > { %v6348_v35 = vpop.permute.xlu1 %6347  ;;  %4402 = vmatmul.mubr.f32.gmra.mrb[52].mxu1 %v4095_v15  ;;  %5277 = vmatpush3.bf16.msra.mxu0 %v8500_v8 }
 0x5f0   : > { %v6350_v25 = vunpack.i.h.bf16 %v6348_v35  ;;  %v6349_v51 = vunpack.i.l.bf16 %v6348_v35  ;;  %5158 = vmatprep.mubr.msk.f32.mxu1 %vm324_vm0, %v8275_v4  ;;  %5278 = vmatprep.subr.bf16.mxu0 %v6537_v1 }
 0x5f1   : > { %v6363_v47 = vpop.permute.xlu0 %6362 }
 0x5f2   : > { %v3937_v7 = vsel %vm1662_vm2, %v3905_v39, %v6349_v51  ;;  %v3938_v49 = vsel %vm1662_vm2, %v3906_v43, %v6350_v25  ;;  %v6364_v16 = vunpack.i.l.bf16 %v6363_v47  ;;  %v6365_v5 = vunpack.i.h.bf16 %v6363_v47 }
 0x5f3   : > { %v6358_v10 = vpop.permute.xlu1 %6357  ;;  %4407 = vmatmul.mubr.f32.gmra.mrb[54].mxu1 %v4096_v62  ;;  %v3969_v61 = vsel %vm1695_vm3, %v3937_v7, %v6354_v59  ;;  %v3970_v40 = vsel %vm1695_vm3, %v3938_v49, %v6355_v18 }
 0x5f4   : > { %v6360_v4 = vunpack.i.h.bf16 %v6358_v10  ;;  %v6359_v57 = vunpack.i.l.bf16 %v6358_v10  ;;  %5159 = vmatprep.mubr.msk.f32.mxu1 %vm324_vm0, %v8323_v12 }
 0x5f5   : > { %v6373_v29 = vpop.permute.xlu0 %6372 }
 0x5f6   : > { %v4001_v38 = vsel %vm1728_vm4, %v3969_v61, %v6359_v57  ;;  %v6374_v30 = vunpack.i.l.bf16 %v6373_v29  ;;  %v4002_v36 = vsel %vm1728_vm4, %v3970_v40, %v6360_v4  ;;  %v6375_v37 = vunpack.i.h.bf16 %v6373_v29 }
 0x5f7   : > { %v6368_v27 = vpop.permute.xlu1 %6367  ;;  %v4033_v2 = vsel %vm1761_vm5, %v4001_v38, %v6364_v16  ;;  %v4034_v54 = vsel %vm1761_vm5, %v4002_v36, %v6365_v5 }
 0x5f8   : > { %v6370_v32 = vunpack.i.h.bf16 %v6368_v27  ;;  %v6369_v53 = vunpack.i.l.bf16 %v6368_v27  ;;  %v2981_v27 = vld [vmem:[#allocation2 + $0x19a] sm:$0xff] }
 0x5f9   : > { %v6383_v14 = vpop.permute.xlu0 %6382 }
 0x5fa   : > { %v4065_v12 = vsel %vm1794_vm6, %v4033_v2, %v6369_v53  ;;  %v4066_v34 = vsel %vm1794_vm6, %v4034_v54, %v6370_v32  ;;  %v6384_v28 = vunpack.i.l.bf16 %v6383_v14 }
 0x5fb   : > { %v6378_v33 = vpop.permute.xlu1 %6377  ;;  %v4097_v44 = vsel %vm1827_vm7, %v4065_v12, %v6374_v30  ;;  %v4098_v56 = vsel %vm1827_vm7, %v4066_v34, %v6375_v37 }
 0x5fc   : > { %v6379_v60 = vunpack.i.l.bf16 %v6378_v33  ;;  %4412 = vmatmul.mubr.f32.gmra.mrb[56].mxu1 %v4097_v44  ;;  %v6380_v17 = vunpack.i.h.bf16 %v6378_v33 }
 0x5fd   : > { %5160 = vmatprep.mubr.msk.f32.mxu1 %vm324_vm0, %v8325_v24  ;;  %v6393_v48 = vpop.permute.xlu0 %6392  ;;  %v6385_v24 = vunpack.i.h.bf16 %v6383_v14 }
 0x5fe   : > { %v3907_v13 = vsel %vm324_vm0, %v8234_v23, %v6379_v60  ;;  %v6394_v52 = vunpack.i.l.bf16 %v6393_v48  ;;  %v3908_v23 = vsel %vm324_vm0, %v8236_v9, %v6380_v17  ;;  %v6395_v35 = vunpack.i.h.bf16 %v6393_v48 }
 0x5ff   : > { %v6388_v55 = vpop.permute.xlu1 %6387  ;;  %v3939_v58 = vsel %vm1662_vm2, %v3907_v13, %v6384_v28  ;;  %v3940_v63 = vsel %vm1662_vm2, %v3908_v23, %v6385_v24 }
 0x600   : > { %v6389_v20 = vunpack.i.l.bf16 %v6388_v55  ;;  %4417 = vmatmul.mubr.f32.gmra.mrb[58].mxu1 %v4098_v56  ;;  %v6390_v21 = vunpack.i.h.bf16 %v6388_v55 }
 0x601   : > { %5161 = vmatprep.mubr.msk.f32.mxu1 %vm324_vm0, %v8352_v42  ;;  %v6403_v41 = vpop.permute.xlu0 %6402 }
 0x602   : > { %v3971_v50 = vsel %vm1695_vm3, %v3939_v58, %v6389_v20  ;;  %v6404_v51 = vunpack.i.l.bf16 %v6403_v41  ;;  %v3972_v39 = vsel %vm1695_vm3, %v3940_v63, %v6390_v21  ;;  %v6405_v47 = vunpack.i.h.bf16 %v6403_v41 }
 0x603   : > { %v6398_v15 = vpop.permute.xlu1 %6397  ;;  %v4003_v25 = vsel %vm1728_vm4, %v3971_v50, %v6394_v52  ;;  %v4004_v7 = vsel %vm1728_vm4, %v3972_v39, %v6395_v35 }
 0x604   : > { %v6399_v19 = vunpack.i.l.bf16 %v6398_v15  ;;  %v6400_v42 = vunpack.i.h.bf16 %v6398_v15 }
 0x605   : > { %v6413_v59 = vpop.permute.xlu0 %6412 }
 0x606   : > { %v4035_v1 = vsel %vm1761_vm5, %v4003_v25, %v6399_v19  ;;  %v6414_v62 = vunpack.i.l.bf16 %v6413_v59  ;;  %v6415_v10 = vunpack.i.h.bf16 %v6413_v59  ;;  %v4036_v57 = vsel %vm1761_vm5, %v4004_v7, %v6400_v42 }
 0x607   : > { %v6408_v26 = vpop.permute.xlu1 %6407  ;;  %v4067_v43 = vsel %vm1794_vm6, %v4035_v1, %v6404_v51  ;;  %v4068_v5 = vsel %vm1794_vm6, %v4036_v57, %v6405_v47 }
 0x608   : > { %v6409_v9 = vunpack.i.l.bf16 %v6408_v26  ;;  %v6410_v18 = vunpack.i.h.bf16 %v6408_v26  ;;  %v3909_v29 = vsel %vm324_vm0, %v8288_v6, %v6414_v62  ;;  %v3910_v30 = vsel %vm324_vm0, %v8290_v11, %v6415_v10 }
 0x609   : > { %v6423_v49 = vpop.permute.xlu0 %6422 }
 0x60a   : > { %v4099_v4 = vsel %vm1827_vm7, %v4067_v43, %v6409_v9  ;;  %v6424_v40 = vunpack.i.l.bf16 %v6423_v49  ;;  %v6425_v32 = vunpack.i.h.bf16 %v6423_v49  ;;  %v4100_v2 = vsel %vm1827_vm7, %v4068_v5, %v6410_v18 }
 0x60b   : > { %v6418_v61 = vpop.permute.xlu1 %6417  ;;  %4422 = vmatmul.mubr.f32.gmra.mrb[60].mxu1 %v4099_v4 }
 0x60c   : > { %v6420_v16 = vunpack.i.h.bf16 %v6418_v61  ;;  %v6419_v38 = vunpack.i.l.bf16 %v6418_v61  ;;  %5162 = vmatprep.mubr.msk.f32.mxu1 %vm324_vm0, %v8366_v22 }
 0x60d   : > { %v3588_v53 = vpop.permute.xlu0 %3587 }
 0x60e   : > { %v3941_v36 = vsel %vm1662_vm2, %v3909_v29, %v6419_v38  ;;  %v3942_v14 = vsel %vm1662_vm2, %v3910_v30, %v6420_v16 }
 0x60f   : > { %v6428_v12 = vpop.permute.xlu1 %6427  ;;  %4427 = vmatmul.mubr.f32.gmra.mrb[62].mxu1 %v4100_v2  ;;  %v3973_v6 = vsel %vm1695_vm3, %v3941_v36, %v6424_v40  ;;  %v3974_v11 = vsel %vm1695_vm3, %v3942_v14, %v6425_v32 }
 0x610   : > { %v6430_v22 = vunpack.i.h.bf16 %v6428_v12  ;;  %v6429_v37 = vunpack.i.l.bf16 %v6428_v12  ;;  %5163 = vmatprep.mubr.msk.f32.mxu1 %vm324_vm0, %v2981_v27 }
 0x611   : > { %v3844_v44 = vpop.permute.xlu0 %3843 }
 0x612   : > { %v4005_v33 = vsel %vm1728_vm4, %v3973_v6, %v6429_v37  ;;  %v4006_v34 = vsel %vm1728_vm4, %v3974_v11, %v6430_v22 }
 0x613   : > { %v4037_v54 = vsel %vm1761_vm5, %v4005_v33, %v3588_v53  ;;  %v3590_v60 = vpop.permute.xlu1 %3589 }
 0x614   : > { %v4069_v28 = vsel %vm1794_vm6, %v4037_v54, %v8090_v31  ;;  %v4038_v17 = vsel %vm1761_vm5, %v4006_v34, %v3590_v60 }
 0x615   : > { %v4101_v45 = vsel %vm1827_vm7, %v4069_v28, %v3844_v44  ;;  %v3718_v13 = vpop.permute.xlu0 %3717 }
 0x616   : > { %4432 = vmatmul.mubr.f32.gmra.mrb[64].mxu1 %v4101_v45  ;;  %v4070_v48 = vsel %vm1794_vm6, %v4038_v17, %v3718_v13 }
 0x617   : > { %v3846_v55 = vpop.permute.xlu1 %3845  ;;  %5164 = vmatprep.mubr.msk.f32.mxu1 %vm324_vm0, %v2982_v46 }
 0x618   : > { %v4102_v56 = vsel %vm1827_vm7, %v4070_v48, %v3846_v55 }
 0x61a   : > { %v8542_v20 = vpop.f32.mrb[4].mxu1  ;;  %4437 = vmatmul.mubr.f32.gmra.mrb[66].mxu1 %v4102_v56 }
 0x61b   : > { %v4285_v24 = vpop.f32.mrb[5].mxu1  ;;  %v4444_v31 = vsel %vm324_vm0, %v8542_v20, 0.0 }
 0x61e   : > { %v8544_v58 = vpop.f32.mrb[6].mxu1 }
 0x61f   : > { %v4445_v52 = vsel %vm324_vm0, %v8544_v58, 0.0  ;;  %v4290_v23 = vpop.f32.mrb[7].mxu1 }
 0x620   : > { %v4446_v21 = vadd.f32 %v4445_v52, %v4444_v31 }
 0x627   : > { %v8550_v50 = vpop.f32.mrb[8].mxu1 }
 0x628   : > { %v4447_v41 = vsel %vm324_vm0, %v8550_v50, 0.0  ;;  %v4295_v15 = vpop.f32.mrb[9].mxu1 }
 0x629   : > { %v4448_v19 = vadd.f32 %v4447_v41, %v4446_v21 }
 0x62b   : > { %v8554_v63 = vpop.f32.mrb[10].mxu1 }
 0x62c   : > { %v4449_v35 = vsel %vm324_vm0, %v8554_v63, 0.0  ;;  %v4300_v25 = vpop.f32.mrb[11].mxu1 }
 0x62d   : > { %v4450_v51 = vadd.f32 %v4449_v35, %v4448_v19 }
 0x636   : > { %v8558_v39 = vpop.f32.mrb[12].mxu1 }
 0x637   : > { %v4451_v42 = vsel %vm324_vm0, %v8558_v39, 0.0  ;;  %v4305_v59 = vpop.f32.mrb[13].mxu1 }
 0x638   : > { %v4452_v1 = vadd.f32 %v4451_v42, %v4450_v51 }
 0x63a   : > { %v8562_v26 = vpop.f32.mrb[14].mxu1 }
 0x63b   : > { %v4453_v9 = vsel %vm324_vm0, %v8562_v26, 0.0  ;;  %v4310_v7 = vpop.f32.mrb[15].mxu1 }
 0x63c   : > { %v4454_v47 = vadd.f32 %v4453_v9, %v4452_v1 }
 0x643   : > { %v8566_v62 = vpop.f32.mrb[16].mxu1 }
 0x644   : > { %v4455_v43 = vsel %vm324_vm0, %v8566_v62, 0.0  ;;  %v4315_v18 = vpop.f32.mrb[17].mxu1 }
 0x645   : > { %v4456_v10 = vadd.f32 %v4455_v43, %v4454_v47 }
 0x647   : > { %v8570_v49 = vpop.f32.mrb[18].mxu1 }
 0x648   : > { %v4457_v4 = vsel %vm324_vm0, %v8570_v49, 0.0  ;;  %v4320_v57 = vpop.f32.mrb[19].mxu1 }
 0x649   : > { %v4458_v61 = vadd.f32 %v4457_v4, %v4456_v10 }
 0x652   : > { %v8574_v16 = vpop.f32.mrb[20].mxu1 }
 0x653   : > { %v4459_v38 = vsel %vm324_vm0, %v8574_v16, 0.0  ;;  %v4325_v29 = vpop.f32.mrb[21].mxu1 }
 0x654   : > { %v4460_v40 = vadd.f32 %v4459_v38, %v4458_v61 }
 0x656   : > { %v8578_v5 = vpop.f32.mrb[22].mxu1 }
 0x657   : > { %v4461_v27 = vsel %vm324_vm0, %v8578_v5, 0.0  ;;  %v4330_v30 = vpop.f32.mrb[23].mxu1 }
 0x658   : > { %v4462_v36 = vadd.f32 %v4461_v27, %v4460_v40 }
 0x65f   : > { %v8582_v32 = vpop.f32.mrb[24].mxu1 }
 0x660   : > { %v4463_v53 = vsel %vm324_vm0, %v8582_v32, 0.0  ;;  %v4335_v2 = vpop.f32.mrb[25].mxu1 }
 0x661   : > { %v4464_v14 = vadd.f32 %v4463_v53, %v4462_v36 }
 0x663   : > { %v8586_v12 = vpop.f32.mrb[26].mxu1 }
 0x664   : > { %v4465_v22 = vsel %vm324_vm0, %v8586_v12, 0.0  ;;  %v4340_v37 = vpop.f32.mrb[27].mxu1 }
 0x665   : > { %v4466_v6 = vadd.f32 %v4465_v22, %v4464_v14 }
 0x66e   : > { %v8590_v33 = vpop.f32.mrb[28].mxu1 }
 0x66f   : > { %v4467_v11 = vsel %vm324_vm0, %v8590_v33, 0.0  ;;  %v4345_v44 = vpop.f32.mrb[29].mxu1 }
 0x670   : > { %v4468_v54 = vadd.f32 %v4467_v11, %v4466_v6 }
 0x672   : > { %v8594_v60 = vpop.f32.mrb[30].mxu1 }
 0x673   : > { %v4469_v34 = vsel %vm324_vm0, %v8594_v60, 0.0  ;;  %v4350_v28 = vpop.f32.mrb[31].mxu1 }
 0x674   : > { %v4470_v46 = vadd.f32 %v4469_v34, %v4468_v54 }
 0x67b   : > { %v8598_v45 = vpop.f32.mrb[32].mxu1 }
 0x67c   : > { %v4471_v17 = vsel %vm324_vm0, %v8598_v45, 0.0  ;;  %v4355_v13 = vpop.f32.mrb[33].mxu1 }
 0x67d   : > { %v4472_v48 = vadd.f32 %v4471_v17, %v4470_v46 }
 0x67f   : > { %v8602_v55 = vpop.f32.mrb[34].mxu1 }
 0x680   : > { %v4473_v56 = vsel %vm324_vm0, %v8602_v55, 0.0  ;;  %v4360_v24 = vpop.f32.mrb[35].mxu1 }
 0x681   : > { %v4474_v31 = vadd.f32 %v4473_v56, %v4472_v48 }
 0x68a   : > { %v8606_v52 = vpop.f32.mrb[36].mxu1 }
 0x68b   : > { %v4475_v23 = vsel %vm324_vm0, %v8606_v52, 0.0  ;;  %v4365_v21 = vpop.f32.mrb[37].mxu1 }
 0x68c   : > { %v4476_v41 = vadd.f32 %v4475_v23, %v4474_v31 }
 0x68e   : > { %v8610_v15 = vpop.f32.mrb[38].mxu1 }
 0x68f   : > { %v4477_v19 = vsel %vm324_vm0, %v8610_v15, 0.0  ;;  %v4370_v35 = vpop.f32.mrb[39].mxu1 }
 0x690   : > { %v4478_v25 = vadd.f32 %v4477_v19, %v4476_v41 }
 0x697   : > { %v8614_v51 = vpop.f32.mrb[40].mxu1 }
 0x698   : > { %v4479_v42 = vsel %vm324_vm0, %v8614_v51, 0.0  ;;  %v4375_v59 = vpop.f32.mrb[41].mxu1 }
 0x699   : > { %v4480_v1 = vadd.f32 %v4479_v42, %v4478_v25 }
 0x69b   : > { %v8618_v9 = vpop.f32.mrb[42].mxu1 }
 0x69c   : > { %v4481_v7 = vsel %vm324_vm0, %v8618_v9, 0.0  ;;  %v4380_v47 = vpop.f32.mrb[43].mxu1 }
 0x69d   : > { %v4482_v43 = vadd.f32 %v4481_v7, %v4480_v1 }
 0x6a6   : > { %v8622_v18 = vpop.f32.mrb[44].mxu1 }
 0x6a7   : > { %v4483_v10 = vsel %vm324_vm0, %v8622_v18, 0.0  ;;  %v4385_v4 = vpop.f32.mrb[45].mxu1 }
 0x6a8   : > { %v4484_v57 = vadd.f32 %v4483_v10, %v4482_v43 }
 0x6aa   : > { %v8626_v61 = vpop.f32.mrb[46].mxu1 }
 0x6ab   : > { %v4485_v38 = vsel %vm324_vm0, %v8626_v61, 0.0  ;;  %v4390_v29 = vpop.f32.mrb[47].mxu1 }
 0x6ac   : > { %v4486_v40 = vadd.f32 %v4485_v38, %v4484_v57 }
 0x6b3   : > { %v8630_v27 = vpop.f32.mrb[48].mxu1 }
 0x6b4   : > { %v4487_v30 = vsel %vm324_vm0, %v8630_v27, 0.0  ;;  %v4395_v36 = vpop.f32.mrb[49].mxu1 }
 0x6b5   : > { %v4488_v53 = vadd.f32 %v4487_v30, %v4486_v40 }
 0x6b7   : > { %v8634_v2 = vpop.f32.mrb[50].mxu1 }
 0x6b8   : > { %v4489_v14 = vsel %vm324_vm0, %v8634_v2, 0.0  ;;  %v4400_v22 = vpop.f32.mrb[51].mxu1 }
 0x6b9   : > { %v4490_v37 = vadd.f32 %v4489_v14, %v4488_v53 }
 0x6c2   : > { %v8638_v6 = vpop.f32.mrb[52].mxu1 }
 0x6c3   : > { %v4491_v11 = vsel %vm324_vm0, %v8638_v6, 0.0  ;;  %v4405_v44 = vpop.f32.mrb[53].mxu1 }
 0x6c4   : > { %v4492_v54 = vadd.f32 %v4491_v11, %v4490_v37 }
 0x6c6   : > { %v8642_v34 = vpop.f32.mrb[54].mxu1 }
 0x6c7   : > { %v4493_v28 = vsel %vm324_vm0, %v8642_v34, 0.0  ;;  %v4410_v46 = vpop.f32.mrb[55].mxu1 }
 0x6c8   : > { %v4494_v17 = vadd.f32 %v4493_v28, %v4492_v54 }
 0x6cf   : > { %v4413_v13 = vpop.f32.mrb[56].mxu1 }
 0x6d0   : > { %v4495_v48 = vsel %vm324_vm0, %v4413_v13, 0.0  ;;  %v4415_v56 = vpop.f32.mrb[57].mxu1 }
 0x6d1   : > { %v4496_v24 = vadd.f32 %v4495_v48, %v4494_v17 }
 0x6d3   : > { %v4418_v31 = vpop.f32.mrb[58].mxu1 }
 0x6d4   : > { %v4497_v23 = vsel %vm324_vm0, %v4418_v31, 0.0  ;;  %v4420_v21 = vpop.f32.mrb[59].mxu1 }
 0x6d5   : > { %v4498_v41 = vadd.f32 %v4497_v23, %v4496_v24 }
 0x6de   : > { %v4423_v19 = vpop.f32.mrb[60].mxu1 }
 0x6df   : > { %v4499_v35 = vsel %vm324_vm0, %v4423_v19, 0.0  ;;  %v4425_v25 = vpop.f32.mrb[61].mxu1 }
 0x6e0   : > { %v4500_v42 = vadd.f32 %v4499_v35, %v4498_v41 }
 0x6e2   : > { %v4428_v59 = vpop.f32.mrb[62].mxu1 }
 0x6e3   : > { %v4501_v1 = vsel %vm324_vm0, %v4428_v59, 0.0  ;;  %v4430_v7 = vpop.f32.mrb[63].mxu1 }
 0x6e4   : > { %v4502_v47 = vadd.f32 %v4501_v1, %v4500_v42 }
 0x6e9   : > { %v4433_v43 = vpop.f32.mrb[64].mxu1 }
 0x6ea   : > { %v4503_v10 = vsel %vm324_vm0, %v4433_v43, 0.0  ;;  %v4435_v4 = vpop.f32.mrb[65].mxu1 }
 0x6eb   : > { %v4504_v57 = vadd.f32 %v4503_v10, %v4502_v47 }
 0x6ed   : > { %v4438_v38 = vpop.f32.mrb[66].mxu1 }
 0x6ee   : > { %v4505_v29 = vsel %vm324_vm0, %v4438_v38, 0.0  ;;  %v4440_v40 = vpop.f32.mrb[67].mxu1 }
 0x6ef   : > { %v4506_v30 = vadd.f32 %v4505_v29, %v4504_v57 }
 0x6f1   : > { %v4507_v36 = vrot.slane %v4506_v30, 4 }
 0x6f3   : > { %v4508_v53 = vadd.f32 %v4507_v36, %v4506_v30 }
 0x6f5   : > { %v4509_v14 = vrot.slane %v4508_v53, 2 }
 0x6f7   : > { %v4510_v22 = vadd.f32 %v4509_v14, %v4508_v53 }
 0x6f9   : > { %v4511_v37 = vrot.slane %v4510_v22, 1 }
 0x6fb   : > { %v4512_v11 = vadd.f32 %v4511_v37, %v4510_v22 }
 0x6fd   : > { %5206 = vmatmul.mubr.msk.f32.vlgmr.msra.gmra.mrb[64].mxu0 %vm324_vm0, %v4512_v11 }
 0x6fe   : > { %5280 = vmatpush3.bf16.msra.mxu0 %v8500_v8  ;;  %5212 = vmatprep.mubr.msk.f32.mxu0 %vm6545_vm8, %v6536_v0 }
 0x7d0   : > { %v4582_v44 = vpop.f32.mrb[64].mxu0 }
 0x7d1   : > { %v4589_v54 = vrot.slane %v4582_v44, %v7603_v3  ;;  %v5207_v28 = vpop.f32.mrb[65].mxu0 }
 0x7d3   : > { %v8658_v46 = vsub.f32 %v8542_v20, %v4589_v54  ;;  %v8661_v17 = vsub.f32 %v8544_v58, %v4589_v54  ;;  %v8664_v48 = vsub.f32 %v8550_v50, %v4589_v54  ;;  %v8667_v56 = vsub.f32 %v8554_v63, %v4589_v54 }
 0x7d4   : > { %v8670_v8 = vsub.f32 %v8558_v39, %v4589_v54  ;;  %v8673_v0 = vsub.f32 %v8562_v26, %v4589_v54  ;;  %v8676_v24 = vsub.f32 %v8566_v62, %v4589_v54  ;;  %v8679_v20 = vsub.f32 %v8570_v49, %v4589_v54 }
 0x7d5   : > { %v8682_v58 = vsub.f32 %v8574_v16, %v4589_v54  ;;  %v8685_v50 = vsub.f32 %v8578_v5, %v4589_v54  ;;  %v8688_v63 = vsub.f32 %v8582_v32, %v4589_v54  ;;  %v8691_v39 = vsub.f32 %v8586_v12, %v4589_v54 }
 0x7d6   : > { %v8694_v26 = vsub.f32 %v8590_v33, %v4589_v54  ;;  %v8697_v62 = vsub.f32 %v8594_v60, %v4589_v54  ;;  %v8700_v49 = vsub.f32 %v8598_v45, %v4589_v54  ;;  %v8703_v16 = vsub.f32 %v8602_v55, %v4589_v54 }
 0x7d7   : > { %v8706_v5 = vsub.f32 %v8606_v52, %v4589_v54  ;;  %v8709_v32 = vsub.f32 %v8610_v15, %v4589_v54  ;;  %v8712_v12 = vsub.f32 %v8614_v51, %v4589_v54  ;;  %v8715_v33 = vsub.f32 %v8618_v9, %v4589_v54 }
 0x7d8   : > { %v8718_v60 = vsub.f32 %v8622_v18, %v4589_v54  ;;  %v8721_v45 = vsub.f32 %v8626_v61, %v4589_v54  ;;  %v8724_v55 = vsub.f32 %v8630_v27, %v4589_v54  ;;  %v8727_v52 = vsub.f32 %v8634_v2, %v4589_v54 }
 0x7d9   : > { %v8730_v15 = vsub.f32 %v8638_v6, %v4589_v54  ;;  %v8733_v51 = vsub.f32 %v8642_v34, %v4589_v54  ;;  %v8735_v9 = vsub.f32 %v4413_v13, %v4589_v54  ;;  %v8737_v23 = vsub.f32 %v4418_v31, %v4589_v54 }
 0x7da   : > { %v8739_v18 = vsub.f32 %v4423_v19, %v4589_v54  ;;  %v8741_v61 = vsub.f32 %v4428_v59, %v4589_v54  ;;  %v8743_v21 = vsub.f32 %v4433_v43, %v4589_v54  ;;  %v8745_v27 = vsub.f32 %v4438_v38, %v4589_v54 }
 0x7db   : > { %v4622_v2 = vmul.f32 %v8658_v46, %v8658_v46  ;;  %v4623_v6 = vmul.f32 %v8661_v17, %v8661_v17  ;;  %v4624_v34 = vmul.f32 %v8664_v48, %v8664_v48  ;;  %v4625_v13 = vmul.f32 %v8667_v56, %v8667_v56 }
 0x7dc   : > { %v4626_v35 = vmul.f32 %v8670_v8, %v8670_v8  ;;  %v4627_v59 = vmul.f32 %v8673_v0, %v8673_v0  ;;  %v4628_v47 = vmul.f32 %v8676_v24, %v8676_v24  ;;  %v4629_v4 = vmul.f32 %v8679_v20, %v8679_v20 }
 0x7dd   : > { %v4654_v31 = vsel %vm324_vm0, %v4622_v2, 0.0  ;;  %v4655_v41 = vsel %vm324_vm0, %v4623_v6, 0.0  ;;  %v4657_v25 = vsel %vm324_vm0, %v4624_v34, 0.0  ;;  %v4659_v1 = vsel %vm324_vm0, %v4625_v13, 0.0 }
 0x7de   : > { %v4656_v19 = vadd.f32 %v4655_v41, %v4654_v31  ;;  %v4661_v43 = vsel %vm324_vm0, %v4626_v35, 0.0  ;;  %v4663_v57 = vsel %vm324_vm0, %v4627_v59, 0.0  ;;  %v4630_v29 = vmul.f32 %v8682_v58, %v8682_v58 }
 0x7df   : > { %v4665_v40 = vsel %vm324_vm0, %v4628_v47, 0.0  ;;  %v4631_v36 = vmul.f32 %v8685_v50, %v8685_v50  ;;  %v4667_v53 = vsel %vm324_vm0, %v4629_v4, 0.0  ;;  %v4632_v22 = vmul.f32 %v8688_v63, %v8688_v63 }
 0x7e0   : > { %v4658_v42 = vadd.f32 %v4657_v25, %v4656_v19  ;;  %v4669_v37 = vsel %vm324_vm0, %v4630_v29, 0.0  ;;  %v4633_v44 = vmul.f32 %v8691_v39, %v8691_v39  ;;  %v4634_v2 = vmul.f32 %v8694_v26, %v8694_v26 }
 0x7e1   : > { %v4671_v54 = vsel %vm324_vm0, %v4631_v36, 0.0  ;;  %v4673_v6 = vsel %vm324_vm0, %v4632_v22, 0.0  ;;  %v4635_v13 = vmul.f32 %v8697_v62, %v8697_v62  ;;  %v4636_v19 = vmul.f32 %v8700_v49, %v8700_v49 }
 0x7e2   : > { %v4660_v7 = vadd.f32 %v4659_v1, %v4658_v42  ;;  %v4675_v31 = vsel %vm324_vm0, %v4633_v44, 0.0  ;;  %v4677_v35 = vsel %vm324_vm0, %v4634_v2, 0.0  ;;  %v4637_v42 = vmul.f32 %v8703_v16, %v8703_v16 }
 0x7e3   : > { %v4679_v59 = vsel %vm324_vm0, %v4635_v13, 0.0  ;;  %v4681_v47 = vsel %vm324_vm0, %v4636_v19, 0.0 }
 0x7e4   : > { %v4662_v10 = vadd.f32 %v4661_v43, %v4660_v7  ;;  %v4638_v7 = vmul.f32 %v8706_v5, %v8706_v5  ;;  %v4683_v4 = vsel %vm324_vm0, %v4637_v42, 0.0 }
 0x7e6   : > { %v4664_v38 = vadd.f32 %v4663_v57, %v4662_v10  ;;  %v4639_v10 = vmul.f32 %v8709_v32, %v8709_v32  ;;  %v4685_v29 = vsel %vm324_vm0, %v4638_v7, 0.0 }
 0x7e8   : > { %v4666_v30 = vadd.f32 %v4665_v40, %v4664_v38  ;;  %v4640_v38 = vmul.f32 %v8712_v12, %v8712_v12  ;;  %v4687_v36 = vsel %vm324_vm0, %v4639_v10, 0.0 }
 0x7ea   : > { %v4668_v14 = vadd.f32 %v4667_v53, %v4666_v30  ;;  %v4641_v30 = vmul.f32 %v8715_v33, %v8715_v33  ;;  %v4689_v22 = vsel %vm324_vm0, %v4640_v38, 0.0 }
 0x7ec   : > { %v4670_v11 = vadd.f32 %v4669_v37, %v4668_v14  ;;  %v4642_v14 = vmul.f32 %v8718_v60, %v8718_v60  ;;  %v4691_v44 = vsel %vm324_vm0, %v4641_v30, 0.0 }
 0x7ee   : > { %v4672_v28 = vadd.f32 %v4671_v54, %v4670_v11  ;;  %v4643_v11 = vmul.f32 %v8721_v45, %v8721_v45  ;;  %v4693_v2 = vsel %vm324_vm0, %v4642_v14, 0.0 }
 0x7f0   : > { %v4674_v34 = vadd.f32 %v4673_v6, %v4672_v28  ;;  %v4644_v28 = vmul.f32 %v8724_v55, %v8724_v55  ;;  %v4695_v13 = vsel %vm324_vm0, %v4643_v11, 0.0 }
 0x7f2   : > { %v4676_v41 = vadd.f32 %v4675_v31, %v4674_v34  ;;  %v4645_v34 = vmul.f32 %v8727_v52, %v8727_v52  ;;  %v4697_v19 = vsel %vm324_vm0, %v4644_v28, 0.0 }
 0x7f4   : > { %v4678_v25 = vadd.f32 %v4677_v35, %v4676_v41  ;;  %v4646_v41 = vmul.f32 %v8730_v15, %v8730_v15  ;;  %v4699_v42 = vsel %vm324_vm0, %v4645_v34, 0.0 }
 0x7f6   : > { %v4680_v1 = vadd.f32 %v4679_v59, %v4678_v25  ;;  %v4647_v25 = vmul.f32 %v8733_v51, %v8733_v51  ;;  %v4701_v7 = vsel %vm324_vm0, %v4646_v41, 0.0 }
 0x7f8   : > { %v4682_v43 = vadd.f32 %v4681_v47, %v4680_v1  ;;  %v4648_v1 = vmul.f32 %v8735_v9, %v8735_v9  ;;  %v4703_v10 = vsel %vm324_vm0, %v4647_v25, 0.0 }
 0x7fa   : > { %v4684_v57 = vadd.f32 %v4683_v4, %v4682_v43  ;;  %v4649_v43 = vmul.f32 %v8737_v23, %v8737_v23  ;;  %v4705_v38 = vsel %vm324_vm0, %v4648_v1, 0.0  ;;  %v4797_v1 = vld [vmem:[%s9099_s5] sm:$0x1] }
 0x7fc   : > { %v4686_v40 = vadd.f32 %v4685_v29, %v4684_v57  ;;  %v4650_v57 = vmul.f32 %v8739_v18, %v8739_v18  ;;  %v4707_v30 = vsel %vm324_vm0, %v4649_v43, 0.0 }
 0x7fe   : > { %v4688_v53 = vadd.f32 %v4687_v36, %v4686_v40  ;;  %v4651_v40 = vmul.f32 %v8741_v61, %v8741_v61  ;;  %v4709_v14 = vsel %vm324_vm0, %v4650_v57, 0.0 }
 0x800   : > { %v4690_v37 = vadd.f32 %v4689_v22, %v4688_v53  ;;  %v4652_v53 = vmul.f32 %v8743_v21, %v8743_v21  ;;  %v4711_v11 = vsel %vm324_vm0, %v4651_v40, 0.0 }
 0x802   : > { %v4692_v54 = vadd.f32 %v4691_v44, %v4690_v37  ;;  %v4653_v37 = vmul.f32 %v8745_v27, %v8745_v27 }
 0x804   : > { %v4694_v6 = vadd.f32 %v4693_v2, %v4692_v54  ;;  %v4713_v54 = vsel %vm324_vm0, %v4652_v53, 0.0  ;;  %v4715_v2 = vsel %vm324_vm0, %v4653_v37, 0.0 }
 0x806   : > { %v4696_v31 = vadd.f32 %v4695_v13, %v4694_v6 }
 0x808   : > { %v4698_v35 = vadd.f32 %v4697_v19, %v4696_v31 }
 0x80a   : > { %v4700_v59 = vadd.f32 %v4699_v42, %v4698_v35 }
 0x80c   : > { %v4702_v47 = vadd.f32 %v4701_v7, %v4700_v59 }
 0x80e   : > { %v4704_v4 = vadd.f32 %v4703_v10, %v4702_v47 }
 0x810   : > { %v4706_v29 = vadd.f32 %v4705_v38, %v4704_v4 }
 0x812   : > { %v4708_v36 = vadd.f32 %v4707_v30, %v4706_v29 }
 0x814   : > { %v4710_v22 = vadd.f32 %v4709_v14, %v4708_v36 }
 0x816   : > { %v4712_v44 = vadd.f32 %v4711_v11, %v4710_v22 }
 0x818   : > { %v4714_v28 = vadd.f32 %v4713_v54, %v4712_v44  ;;  %v4874_v44 = vld [vmem:[%s6704_s25] sm:$0xff]  ;;  %v4876_v54 = vld [vmem:[%s6704_s25 + $0x10] sm:$0xff] }
 0x81a   : > { %v4716_v6 = vadd.f32 %v4715_v2, %v4714_v28  ;;  %v4877_v28 = vld [vmem:[%s6704_s25 + $0x18] sm:$0xff] }
 0x81c   : > { %v4717_v34 = vrot.slane %v4716_v6, 4 }
 0x81e   : > { %v4718_v13 = vadd.f32 %v4717_v34, %v4716_v6 }
 0x820   : > { %v4719_v31 = vrot.slane %v4718_v13, 2 }
 0x822   : > { %v4720_v41 = vadd.f32 %v4719_v31, %v4718_v13  ;;  %v4878_v31 = vld [vmem:[%s6704_s25 + $0x20] sm:$0xff] }
 0x824   : > { %v4721_v19 = vrot.slane %v4720_v41, 1 }
 0x826   : > { %v4722_v35 = vadd.f32 %v4721_v19, %v4720_v41  ;;  %v4879_v41 = vld [vmem:[%s6704_s25 + $0x28] sm:$0xff]  ;;  %v4880_v19 = vld [vmem:[%s6704_s25 + $0x30] sm:$0xff] }
 0x828   : > { %5213 = vmatmul.mubr.msk.f32.vlgmr.msra.gmra.mrb[66].mxu0 %vm324_vm0, %v4722_v35  ;;  %v4881_v35 = vld [vmem:[%s6704_s25 + $0x38] sm:$0xff] }
 0x8fb   : > { %v4792_v25 = vpop.f32.mrb[66].mxu0 }
 0x8fc   : > { %v4793_v42 = vadd.f32 1e-05, %v4792_v25  ;;  %v5214_v59 = vpop.f32.mrb[67].mxu0 }
 0x8fe   : > { %6433 = vrsqrt.f32 %v4793_v42 }
 0x908   : > { %v6434_v7 = vpop.eup %6433 }
 0x909   : > { %v4798_v47 = vmul.f32 %v6434_v7, %v4797_v1  ;;  %v4882_v7 = vld [vmem:[%s6704_s25 + $0x40] sm:$0xff] }
 0x90b   : > { %v4802_v43 = vrot.slane %v4798_v47, %v7603_v3  ;;  %v4883_v47 = vld [vmem:[%s6704_s25 + $0x48] sm:$0xff] }
 0x90d   : > { %v4803_v10 = vmul.f32 %v4802_v43, %v8658_v46  ;;  %v4804_v4 = vmul.f32 %v4802_v43, %v8661_v17  ;;  %v4805_v57 = vmul.f32 %v4802_v43, %v8664_v48  ;;  %v4806_v38 = vmul.f32 %v4802_v43, %v8667_v56 }
 0x90e   : > { %v4807_v29 = vmul.f32 %v4802_v43, %v8670_v8  ;;  %v4808_v40 = vmul.f32 %v4802_v43, %v8673_v0  ;;  %v4809_v30 = vmul.f32 %v4802_v43, %v8676_v24  ;;  %v4810_v36 = vmul.f32 %v4802_v43, %v8679_v20 }
 0x90f   : > { %v4811_v53 = vmul.f32 %v4802_v43, %v8682_v58  ;;  %v4812_v3 = vmul.f32 %v4802_v43, %v8685_v50  ;;  %v4813_v46 = vmul.f32 %v4802_v43, %v8688_v63  ;;  %v4814_v17 = vmul.f32 %v4802_v43, %v8691_v39  ;;  %v5167_v63 = vld [vmem:[%s9100_s6] ss:$0 sm:$0xff] }
 0x910   : > { %v4815_v48 = vmul.f32 %v4802_v43, %v8694_v26  ;;  %v4816_v56 = vmul.f32 %v4802_v43, %v8697_v62  ;;  %v4817_v8 = vmul.f32 %v4802_v43, %v8700_v49  ;;  %v4818_v0 = vmul.f32 %v4802_v43, %v8703_v16 }
 0x911   : > { %v4819_v24 = vmul.f32 %v4802_v43, %v8706_v5  ;;  %v4820_v20 = vmul.f32 %v4802_v43, %v8709_v32  ;;  %v4821_v58 = vmul.f32 %v4802_v43, %v8712_v12  ;;  %v4822_v50 = vmul.f32 %v4802_v43, %v8715_v33 }
 0x912   : > { %v4823_v39 = vmul.f32 %v4802_v43, %v8718_v60  ;;  %v4824_v26 = vmul.f32 %v4802_v43, %v8721_v45  ;;  %v4825_v62 = vmul.f32 %v4802_v43, %v8724_v55  ;;  %v4826_v49 = vmul.f32 %v4802_v43, %v8727_v52 }
 0x913   : > { %v4827_v16 = vmul.f32 %v4802_v43, %v8730_v15  ;;  %v4828_v5 = vmul.f32 %v4802_v43, %v8733_v51  ;;  %v4829_v32 = vmul.f32 %v4802_v43, %v8735_v9  ;;  %v4830_v12 = vmul.f32 %v4802_v43, %v8737_v23 }
 0x914   : > { %v4831_v33 = vmul.f32 %v4802_v43, %v8739_v18  ;;  %v4832_v14 = vmul.f32 %v4802_v43, %v8741_v61  ;;  %v4833_v60 = vmul.f32 %v4802_v43, %v8743_v21  ;;  %v4834_v45 = vmul.f32 %v4802_v43, %v8745_v27  ;;  %v4875_v27 = vld [vmem:[%s6704_s25 + $0x8] sm:$0xff]  ;;  %v4884_v43 = vld [vmem:[%s6704_s25 + $0x50] sm:$0xff] }
 0x915   : > { %v4842_v55 = vadd.f32 %v5167_v63, %v4803_v10  ;;  %v4843_v52 = vadd.f32 %v5167_v63, %v4804_v4  ;;  %v4844_v15 = vadd.f32 %v5167_v63, %v4805_v57  ;;  %v4845_v51 = vadd.f32 %v5167_v63, %v4806_v38 }
 0x916   : > { %v4846_v22 = vadd.f32 %v5167_v63, %v4807_v29  ;;  %v4847_v9 = vadd.f32 %v5167_v63, %v4808_v40  ;;  %v4848_v23 = vadd.f32 %v5167_v63, %v4809_v30  ;;  %v4849_v18 = vadd.f32 %v5167_v63, %v4810_v36  ;;  %v4885_v29 = vld [vmem:[%s6704_s25 + $0x58] sm:$0xff]  ;;  %v4886_v40 = vld [vmem:[%s6704_s25 + $0x60] sm:$0xff]  ;;  %v4887_v30 = vld [vmem:[%s6704_s25 + $0x68] sm:$0xff] }
 0x917   : > { %v4850_v61 = vadd.f32 %v5167_v63, %v4811_v53  ;;  %v4851_v37 = vadd.f32 %v5167_v63, %v4812_v3  ;;  %v4852_v11 = vadd.f32 %v5167_v63, %v4813_v46  ;;  %v4853_v21 = vadd.f32 %v5167_v63, %v4814_v17  ;;  %v4888_v17 = vld [vmem:[%s6704_s25 + $0x70] sm:$0xff] }
 0x918   : > { %v4854_v2 = vadd.f32 %v5167_v63, %v4815_v48  ;;  %v4855_v6 = vadd.f32 %v5167_v63, %v4816_v56  ;;  %v4856_v34 = vadd.f32 %v5167_v63, %v4817_v8  ;;  %v4857_v13 = vadd.f32 %v5167_v63, %v4818_v0  ;;  %v4889_v48 = vld [vmem:[%s6704_s25 + $0x78] sm:$0xff]  ;;  %v4890_v56 = vld [vmem:[%s6704_s25 + $0x80] sm:$0xff] }
 0x919   : > { %v4858_v25 = vadd.f32 %v5167_v63, %v4819_v24  ;;  %v4859_v42 = vadd.f32 %v5167_v63, %v4820_v20  ;;  %v4860_v59 = vadd.f32 %v5167_v63, %v4821_v58  ;;  %v4861_v1 = vadd.f32 %v5167_v63, %v4822_v50  ;;  %v4891_v58 = vld [vmem:[%s6704_s25 + $0x88] sm:$0xff]  ;;  %v4892_v50 = vld [vmem:[%s6704_s25 + $0x90] sm:$0xff] }
 0x91a   : > { %v4862_v10 = vadd.f32 %v5167_v63, %v4823_v39  ;;  %v4863_v4 = vadd.f32 %v5167_v63, %v4824_v26  ;;  %v4864_v57 = vadd.f32 %v5167_v63, %v4825_v62  ;;  %v4865_v38 = vadd.f32 %v5167_v63, %v4826_v49  ;;  %v4893_v39 = vld [vmem:[%s6704_s25 + $0x98] sm:$0xff] }
 0x91b   : > { %v4866_v36 = vadd.f32 %v5167_v63, %v4827_v16  ;;  %v4867_v53 = vadd.f32 %v5167_v63, %v4828_v5  ;;  %v4868_v3 = vadd.f32 %v5167_v63, %v4829_v32  ;;  %v4869_v46 = vadd.f32 %v5167_v63, %v4830_v12  ;;  %v4894_v5 = vld [vmem:[%s6704_s25 + $0xa0] sm:$0xff]  ;;  %v4895_v32 = vld [vmem:[%s6704_s25 + $0xa8] sm:$0xff]  ;;  %v4896_v12 = vld [vmem:[%s6704_s25 + $0xb0] sm:$0xff] }
 0x91c   : > { %v4870_v8 = vadd.f32 %v5167_v63, %v4831_v33  ;;  %v4871_v0 = vadd.f32 %v5167_v63, %v4832_v14  ;;  %v4872_v24 = vadd.f32 %v5167_v63, %v4833_v60  ;;  %v4873_v20 = vadd.f32 %v5167_v63, %v4834_v45  ;;  %v4897_v45 = vld [vmem:[%s6704_s25 + $0xb8] sm:$0xff] }
 0x91d   : > { %v4906_v26 = vadd.f32 %v4874_v44, %v4842_v55  ;;  %v4907_v62 = vadd.f32 %v4875_v27, %v4843_v52  ;;  %v4908_v49 = vadd.f32 %v4876_v54, %v4844_v15  ;;  %v4909_v16 = vadd.f32 %v4877_v28, %v4845_v51  ;;  %v4898_v44 = vld [vmem:[%s6704_s25 + $0xc0] sm:$0xff]  ;;  %v4899_v55 = vld [vmem:[%s6704_s25 + $0xc8] sm:$0xff]  ;;  %v4900_v51 = vld [vmem:[%s6704_s25 + $0xd0] sm:$0xff] }
 0x91e   : > { %v4910_v33 = vadd.f32 %v4878_v31, %v4846_v22  ;;  %v4911_v14 = vadd.f32 %v4879_v41, %v4847_v9  ;;  %v4912_v60 = vadd.f32 %v4880_v19, %v4848_v23  ;;  %v4913_v63 = vadd.f32 %v4881_v35, %v4849_v18  ;;  %v4901_v28 = vld [vmem:[%s6704_s25 + $0xd8] sm:$0xff]  ;;  %v4902_v22 = vld [vmem:[%s6704_s25 + $0xe0] sm:$0xff]  ;;  %v4903_v18 = vld [vmem:[%s6704_s25 + $0xe8] sm:$0xff] }
 0x91f   : > { %v4914_v27 = vadd.f32 %v4882_v7, %v4850_v61  ;;  %v4915_v52 = vadd.f32 %v4883_v47, %v4851_v37  ;;  %v4916_v15 = vadd.f32 %v4884_v43, %v4852_v11  ;;  %v4917_v54 = vadd.f32 %v4885_v29, %v4853_v21  ;;  %v4904_v19 = vld [vmem:[%s6704_s25 + $0xf0] sm:$0xff]  ;;  %v4905_v35 = vld [vmem:[%s6704_s25 + $0xf8] sm:$0xff]  ;;  %s9133_s25 = sshll.u32 %s6698_s22, 8 }
 0x920   : > { %v8912_v31 = vadd.f32 %v4886_v40, %v4854_v2  ;;  %v8914_v9 = vadd.f32 %v4887_v30, %v4855_v6  ;;  %v8916_v41 = vadd.f32 %v4888_v17, %v4856_v34  ;;  %v8918_v23 = vadd.f32 %v4889_v48, %v4857_v13  ;;  %s8957_s26 = scalar_lea.vmem [#allocation6], %s9133_s25 }
 0x921   : > { %v8923_v7 = vadd.f32 %v4890_v56, %v4858_v25  ;;  %v8925_v61 = vadd.f32 %v4891_v58, %v4859_v42  ;;  %v8927_v37 = vadd.f32 %v4892_v50, %v4860_v59  ;;  %v8929_v11 = vadd.f32 %v4893_v39, %v4861_v1  ;;  %s5016_s20 = sshll.u32 %s8957_s26, 4  ;;  %s9022_s20 = int_to_ptr.vmem [resolvable:$true] %s5016_s20 }
 0x922   : > { %v8931_v21 = vadd.f32 %v4894_v5, %v4862_v10  ;;  %v8933_v2 = vadd.f32 %v4895_v32, %v4863_v4  ;;  %v8935_v6 = vadd.f32 %v4896_v12, %v4864_v57  ;;  %v8937_v34 = vadd.f32 %v4897_v45, %v4865_v38  ;;  %s6465_s15 = scalar_lea.vmem %s9022_s20, 4096  ;;  %p6472_p8 = scmp.lt.s32.totalorder %s9022_s20, %s6470_s0 }
 0x923   : > { %v8939_v13 = vadd.f32 %v4898_v44, %v4866_v36  ;;  %v8941_v47 = vadd.f32 %v4899_v55, %v4867_v53  ;;  %v8943_v25 = vadd.f32 %v4900_v51, %v4868_v3  ;;  %v8945_v42 = vadd.f32 %v4901_v28, %v4869_v46  ;;  %p6466_p6 = scmp.ne.s32.totalorder %s9022_s20, %s6465_s15  ;;  %p6473_p10 = scmp.lt.s32.totalorder %s6471_s24, %s6465_s15 }
 0x924   : > { %v8947_v59 = vadd.f32 %v4902_v22, %v4870_v8  ;;  %v8949_v1 = vadd.f32 %v4903_v18, %v4871_v0  ;;  %v8951_v43 = vadd.f32 %v4904_v19, %v4872_v24  ;;  %v8953_v10 = vadd.f32 %v4905_v35, %v4873_v20 }
 0x925   : > { %v4938_v4 = vmax.f32 %v4906_v26, 0.0  ;;  %v4939_v57 = vmax.f32 %v4907_v62, 0.0  ;;  %v4940_v38 = vmax.f32 %v4908_v49, 0.0  ;;  %v4941_v29 = vmax.f32 %v4909_v16, 0.0  ;;  %p6467_p12 = pnand %p6466_p6, %p9134_p11  ;;  %p6474_p0 = por %p6473_p10, %p6472_p8 }
 0x926   : > { %v4942_v40 = vmax.f32 %v4910_v33, 0.0  ;;  %v4943_v30 = vmax.f32 %v4911_v14, 0.0  ;;  %v4944_v36 = vmax.f32 %v4912_v60, 0.0  ;;  %v4945_v53 = vmax.f32 %v4913_v63, 0.0 }
 0x927   : > { %v4946_v3 = vmax.f32 %v4914_v27, 0.0  ;;  %v4947_v46 = vmax.f32 %v4915_v52, 0.0  ;;  %v4948_v17 = vmax.f32 %v4916_v15, 0.0  ;;  %v4949_v48 = vmax.f32 %v4917_v54, 0.0  ;;  %4970 = vst.msk [vmem:[%s8957_s26] sm:$0xff] %vm324_vm0, %v4938_v4  ;;  %4971 = vst.msk [vmem:[%s8957_s26 + $0x8] sm:$0xff] %vm324_vm0, %v4939_v57  ;;  %p6468_p13 = pneg %p6467_p12 }
 0x928   : > { %4972 = vst.msk [vmem:[%s8957_s26 + $0x10] sm:$0xff] %vm324_vm0, %v4940_v38  ;;  %4973 = vst.msk [vmem:[%s8957_s26 + $0x18] sm:$0xff] %vm324_vm0, %v4941_v29  ;;  %v4950_v56 = vmax.f32 %v8912_v31, 0.0  ;;  %v4951_v8 = vmax.f32 %v8914_v9, 0.0  ;;  %v4952_v0 = vmax.f32 %v8916_v41, 0.0  ;;  %v4953_v24 = vmax.f32 %v8918_v23, 0.0 }
 0x929   : > { %4974 = vst.msk [vmem:[%s8957_s26 + $0x20] sm:$0xff] %vm324_vm0, %v4942_v40  ;;  %4975 = vst.msk [vmem:[%s8957_s26 + $0x28] sm:$0xff] %vm324_vm0, %v4943_v30  ;;  %v4954_v20 = vmax.f32 %v8923_v7, 0.0  ;;  %v4955_v58 = vmax.f32 %v8925_v61, 0.0  ;;  %v4956_v50 = vmax.f32 %v8927_v37, 0.0  ;;  %v4957_v39 = vmax.f32 %v8929_v11, 0.0  ;;  %p6475_p2 = pnand %p6474_p0, %p6468_p13 }
 0x92a   : > { %4976 = vst.msk [vmem:[%s8957_s26 + $0x30] sm:$0xff] %vm324_vm0, %v4944_v36  ;;  %4977 = vst.msk [vmem:[%s8957_s26 + $0x38] sm:$0xff] %vm324_vm0, %v4945_v53  ;;  %v4958_v26 = vmax.f32 %v8931_v21, 0.0  ;;  %v4959_v62 = vmax.f32 %v8933_v2, 0.0  ;;  %v4960_v49 = vmax.f32 %v8935_v6, 0.0  ;;  %v4961_v16 = vmax.f32 %v8937_v34, 0.0 }
 0x92b   : > { %4978 = vst.msk [vmem:[%s8957_s26 + $0x40] sm:$0xff] %vm324_vm0, %v4946_v3  ;;  %4979 = vst.msk [vmem:[%s8957_s26 + $0x48] sm:$0xff] %vm324_vm0, %v4947_v46  ;;  %v4962_v5 = vmax.f32 %v8939_v13, 0.0  ;;  %v4963_v32 = vmax.f32 %v8941_v47, 0.0  ;;  %v4964_v12 = vmax.f32 %v8943_v25, 0.0  ;;  %v4965_v33 = vmax.f32 %v8945_v42, 0.0 }
 0x92c   : > { %4980 = vst.msk [vmem:[%s8957_s26 + $0x50] sm:$0xff] %vm324_vm0, %v4948_v17  ;;  %4981 = vst.msk [vmem:[%s8957_s26 + $0x58] sm:$0xff] %vm324_vm0, %v4949_v48  ;;  %v4966_v14 = vmax.f32 %v8947_v59, 0.0  ;;  %v4967_v60 = vmax.f32 %v8949_v1, 0.0  ;;  %v4968_v63 = vmax.f32 %v8951_v43, 0.0  ;;  %v4969_v45 = vmax.f32 %v8953_v10, 0.0 }
 0x92d   : > { %4982 = vst.msk [vmem:[%s8957_s26 + $0x60] sm:$0xff] %vm324_vm0, %v4950_v56  ;;  %4983 = vst.msk [vmem:[%s8957_s26 + $0x68] sm:$0xff] %vm324_vm0, %v4951_v8 }
 0x92e   : > { %4984 = vst.msk [vmem:[%s8957_s26 + $0x70] sm:$0xff] %vm324_vm0, %v4952_v0  ;;  %4985 = vst.msk [vmem:[%s8957_s26 + $0x78] sm:$0xff] %vm324_vm0, %v4953_v24 }
 0x92f   : > { %4986 = vst.msk [vmem:[%s8957_s26 + $0x80] sm:$0xff] %vm324_vm0, %v4954_v20  ;;  %4987 = vst.msk [vmem:[%s8957_s26 + $0x88] sm:$0xff] %vm324_vm0, %v4955_v58 }
 0x930   : > { %4988 = vst.msk [vmem:[%s8957_s26 + $0x90] sm:$0xff] %vm324_vm0, %v4956_v50  ;;  %4989 = vst.msk [vmem:[%s8957_s26 + $0x98] sm:$0xff] %vm324_vm0, %v4957_v39 }
 0x931   : > { %4990 = vst.msk [vmem:[%s8957_s26 + $0xa0] sm:$0xff] %vm324_vm0, %v4958_v26  ;;  %4991 = vst.msk [vmem:[%s8957_s26 + $0xa8] sm:$0xff] %vm324_vm0, %v4959_v62 }
 0x932   : > { %4992 = vst.msk [vmem:[%s8957_s26 + $0xb0] sm:$0xff] %vm324_vm0, %v4960_v49  ;;  %4993 = vst.msk [vmem:[%s8957_s26 + $0xb8] sm:$0xff] %vm324_vm0, %v4961_v16 }
 0x933   : > { %4994 = vst.msk [vmem:[%s8957_s26 + $0xc0] sm:$0xff] %vm324_vm0, %v4962_v5  ;;  %4995 = vst.msk [vmem:[%s8957_s26 + $0xc8] sm:$0xff] %vm324_vm0, %v4963_v32 }
 0x934   : > { %4996 = vst.msk [vmem:[%s8957_s26 + $0xd0] sm:$0xff] %vm324_vm0, %v4964_v12  ;;  %4997 = vst.msk [vmem:[%s8957_s26 + $0xd8] sm:$0xff] %vm324_vm0, %v4965_v33 }
 0x935   : > { %4998 = vst.msk [vmem:[%s8957_s26 + $0xe0] sm:$0xff] %vm324_vm0, %v4966_v14  ;;  %4999 = vst.msk [vmem:[%s8957_s26 + $0xe8] sm:$0xff] %vm324_vm0, %v4967_v60 }
 0x936   : > { %5000 = vst.msk [vmem:[%s8957_s26 + $0xf0] sm:$0xff] %vm324_vm0, %v4968_v63  ;;  %5001 = vst.msk [vmem:[%s8957_s26 + $0xf8] sm:$0xff] %vm324_vm0, %v4969_v45 }
 0x937   : > { %6478 = shalt.err (!%p6475_p2)
}
 0x938   : > { %s6479_s23 = scalar_lea.hbm %s9020_s13, 4096  ;;  %s6483_s26 = scalar_lea.hbm %s9102_s8, 8192 }
 0x939   : > { %p6480_p4 = scmp.ne.s32.totalorder %s9020_s13, %s6479_s23  ;;  %p6484_p9 = scmp.lt.u32.totalorder %s9020_s13, %s9102_s8 }
 0x93a   : > { %p6485_p1 = scmp.lt.u32.totalorder %s6483_s26, %s6479_s23  ;;  %p6487_p6 = scmp.lt.u32.totalorder %s6479_s23, %s9020_s13 }
 0x93b   : > { %p6481_p5 = pnand %p6480_p4, %p9134_p11 }
 0x93c   : > { %p6486_p3 = por %p6485_p1, %p6484_p9 }
 0x93d   : > { %p6482_p7 = pneg %p6481_p5 }
 0x93e   : > { %p6488_p12 = por %p6487_p6, %p6486_p3 }
 0x940   : > { %p6489_p13 = pnand %p6488_p12, %p6482_p7 }
 0x942   : > { %6492 = shalt.err (!%p6489_p13)
}
 0x943   : > { %s6547_s21 = smov 128   ;;  %s6548_s15 = smov 8  }
 0x944   : > { %5283 = dma.vmem_to_hbm [thread:$0]  (%p9134_p11), %s9022_s20, 4096, %s9020_s13, %s5003_s12, %s6547_s21, %s6547_s21, %s6548_s15  }
 0x945 PF: > { %s5031_s19 = sand.u32 1, %s6519_s27   ;;  %p9135_p8 = scmp.ne.s32.totalorder %s9123_s18, 0 }
 0x946   : > { %p9136_p10 = scmp.ge.s32.totalorder %s6531_s30, 2  ;;  %s5032_s0 = scalar_lea.sflag [#allocation5], %s5031_s19 }
 0x948   : > { %p5290_p0 = pnand %p9136_p10, %p9135_p8 }
 0x94a   : > { %6514 = dma.done.wait (!%p5290_p0), %s5032_s0, 4096  }
 0x94b   : > { %6516 = vsyncadd (!%p5290_p0), %s5032_s0, 4294963200  ;;  %p21_p2 = scmp.ge.s32.totalorder %s6619_s11, 4   ;;  %s9137_s27 = smov %s6523_s28 }
 0x94c   : > { %s9138_s28 = smov %s6527_s29  ;;  %s9139_s29 = smov %s6631_s14 }
 0x94d   : > { %s9140_s30 = smov %s6619_s11  ;;  %23 = sbr.rel (!%p21_p2) target bundleno = 7 (0x7), region = 99 }
 0x954   :  { %5037 = vsyncpa [#allocation4], 1 }
 0x955   :  { %5039 = vsyncpa [#allocation4 + $0x1], 1 }
 0x956   :  { %5040 = vsyncpa [#allocation5], 1 }
 0x957   :  { %5042 = vsyncpa [#allocation5 + $0x1], 1 }

</bundles_post_ra>
